<compile_context>
chip_gen: v7x
topology: tpu7x:2x2x1
jax: 0.10.0
libtpu: 0.0.40
codegen_flags: <defaults>
</compile_context>

<pallas_src>
import functools

import jax
import jax.numpy as jnp
from jax.experimental import pallas as pl
from jax.experimental.pallas import tpu as pltpu


def _attention_kernel(x_ref, ubias_ref, w1a_ref, w2_ref, b2_ref, w3_ref, out_ref):
    # Per grid step (Bt neighborhoods, natural layout):
    #   x_ref:     (Bt, N, E)  node1 rows            (streamed)
    #   ubias_ref: (Bt, E)     u_rep @ W1b + b1      (streamed, per neighborhood)
    #   w1a_ref:   (E, E)      node1-half of att1 W  (VMEM-resident)
    #   w2_ref:    (E, E)      att2 W                (VMEM-resident)
    #   b2_ref:    (1, E)      att2 b                (VMEM-resident)
    #   w3_ref:    (1, E)      att3 w (row)          (VMEM-resident)
    #   out_ref:   (Bt, N, 1)  per-neighborhood softmax weights
    bt, n, e = x_ref.shape
    mxu_dtype = w1a_ref.dtype

    # Collapse to (Bt*N, E): leading-dim merge, layout no-op for f32 when N % 8 == 0.
    x = x_ref[...].reshape(bt * n, e).astype(mxu_dtype)

    # Per-neighborhood bias broadcast across its N rows (sublane broadcast).
    ub = jnp.broadcast_to(ubias_ref[...][:, None, :], (bt, n, e)).reshape(bt * n, e)

    # h1 = relu(node1 @ W1a + (u_rep @ W1b + b1));  dropout (eval) -> identity.
    h1 = jnp.dot(x, w1a_ref[...], preferred_element_type=jnp.float32)
    h1 = jnp.maximum(h1 + ub, 0.0)                                   # (Bt*N, E) f32

    # h2 = relu(h1 @ W2 + b2);  dropout (eval) -> identity.
    h2 = jnp.dot(h1.astype(mxu_dtype), w2_ref[...],
                 preferred_element_type=jnp.float32)
    h2 = jnp.maximum(h2 + b2_ref[...], 0.0)                          # (Bt*N, E) f32

    # att3: 1-output Linear done as VPU multiply + lane reduce (no 1-col matmul).
    # b3 omitted: softmax is shift-invariant, softmax(x + c) == softmax(x).
    logits = jnp.sum(h2 * w3_ref[...], axis=-1, keepdims=True)       # (Bt*N, 1)
    logits = logits.reshape(bt, n, 1)                                # (Bt, N, 1)

    # Segmented softmax over the N neighbors of each neighborhood (axis=1).
    m = jnp.max(logits, axis=1, keepdims=True)                       # (Bt, 1, 1)
    ez = jnp.exp(logits - m)
    denom = jnp.sum(ez, axis=1, keepdims=True)                       # (Bt, 1, 1)
    out_ref[...] = ez * pl.reciprocal(denom, approx=False)           # exact norm


@functools.partial(jax.jit, static_argnames=("block_b", "mxu_dtype"))
def attention_forward(node1, u_rep, params, *, block_b=64, mxu_dtype=jnp.float32):
    """Batched forward: node1 (B, N, E) f32, u_rep (B, E) f32 -> (B, N, 1) f32.

    Softmax is taken over the N (neighbor) axis of each neighborhood, matching
    the PyTorch module's softmax over dim 0 of the (N, 1) logits.
    """
    b, n, e = node1.shape
    assert n % 8 == 0, "num_neighs must be a multiple of 8 (f32 sublane tile)"

    # Pick the largest tile of neighborhoods <= block_b that divides B.
    bt = min(block_b, b)
    while b % bt:
        bt -= 1
    grid = (b // bt,)

    # Bias folding + weight prep (tiny XLA ops, once per call, outside the grid).
    u_bias = u_rep @ params["w1b"] + params["b1"]          # (B, E)
    w1a = params["w1a"].astype(mxu_dtype)                  # (E, E)
    w2 = params["w2"].astype(mxu_dtype)                    # (E, E)
    b2 = params["b2"]                                      # (1, E)
    w3row = params["w3"].T                                 # (1, E)

    return pl.pallas_call(
        _attention_kernel,
        out_shape=jax.ShapeDtypeStruct((b, n, 1), jnp.float32),
        grid=grid,
        in_specs=[
            pl.BlockSpec((bt, n, e), lambda i: (i, 0, 0)),   # node1     -- streamed
            pl.BlockSpec((bt, e), lambda i: (i, 0)),         # folded u bias -- streamed
            pl.BlockSpec((e, e), lambda i: (0, 0)),          # W1a       -- resident
            pl.BlockSpec((e, e), lambda i: (0, 0)),          # W2        -- resident
            pl.BlockSpec((1, e), lambda i: (0, 0)),          # b2        -- resident
            pl.BlockSpec((1, e), lambda i: (0, 0)),          # w3 (row)  -- resident
        ],
        out_specs=pl.BlockSpec((bt, n, 1), lambda i: (i, 0, 0)),
        compiler_params=pltpu.CompilerParams(
            dimension_semantics=("parallel",)),
    )(node1, u_bias, w1a, w2, b2, w3row)


def attention_forward_single(node1, u_rep, params):
    """PyTorch-style single-neighborhood call: (N, E), (1, E) -> (N, 1)."""
    att = attention_forward(node1[None], u_rep.reshape(1, -1), params)
    return att[0]


def attention_reference(node1, u_rep, params):
    """Pure-JAX reference of the PyTorch forward (single neighborhood, eval mode)."""
    n, e = node1.shape
    u = jnp.broadcast_to(u_rep.reshape(1, -1), (n, e))
    x = jnp.concatenate([node1, u], axis=1)
    w1 = jnp.concatenate([params["w1a"], params["w1b"]], axis=0)
    h1 = jax.nn.relu(x @ w1 + params["b1"])
    h2 = jax.nn.relu(h1 @ params["w2"] + params["b2"])
    logits = h2 @ params["w3"] + params["b3"]
    return jax.nn.softmax(logits, axis=0)                             # (N, 1)


def init_params(key, embed_dim):
    """Deterministic init mirroring nn.Linear shapes (uniform +/- 1/sqrt(fan_in))."""
    ks = jax.random.split(key, 6)

    def lin(kw, kb, fan_in, fan_out):
        bound = 1.0 / jnp.sqrt(fan_in)
        w = jax.random.uniform(kw, (fan_in, fan_out), jnp.float32, -bound, bound)
        b = jax.random.uniform(kb, (1, fan_out), jnp.float32, -bound, bound)
        return w, b

    w1, b1 = lin(ks[0], ks[1], 2 * embed_dim, embed_dim)   # att1: Linear(2E, E)
    w2, b2 = lin(ks[2], ks[3], embed_dim, embed_dim)       # att2: Linear(E, E)
    w3, b3 = lin(ks[4], ks[5], embed_dim, 1)               # att3: Linear(E, 1)
    return {
        "w1a": w1[:embed_dim],      # multiplies node1
        "w1b": w1[embed_dim:],      # multiplies u_rep
        "b1": b1,
        "w2": w2, "b2": b2,
        "w3": w3, "b3": b3,
    }


if __name__ == "__main__":
    embed_dim = 32
    num_neighs = 8
    batch = 256          # neighborhoods; 64 per grid step -> grid=(4,) parallel

    key = jax.random.PRNGKey(0)
    k_node, k_u, k_params = jax.random.split(key, 3)

    node1 = jax.random.normal(k_node, (batch, num_neighs, embed_dim), jnp.float32)
    u_rep = jax.random.normal(k_u, (batch, embed_dim), jnp.float32)
    params = init_params(k_params, embed_dim)

    att = jax.block_until_ready(attention_forward(node1, u_rep, params))

    # Correctness: compare against pure-JAX reference of the PyTorch forward.
    ref = jax.vmap(attention_reference, in_axes=(0, 0, None))(node1, u_rep, params)

    assert att.shape == (batch, num_neighs, 1)
    assert bool(jnp.allclose(jnp.sum(att, axis=1), 1.0, atol=1e-5))
    assert bool(jnp.allclose(att, ref, atol=1e-5, rtol=1e-4))

    # Single-neighborhood call (original PyTorch contract).
    att0 = jax.block_until_ready(
        attention_forward_single(node1[0], u_rep[0:1], params))
    assert att0.shape == (num_neighs, 1)
    assert bool(jnp.allclose(att0, ref[0], atol=1e-5, rtol=1e-4))

    print("KERNEL_OK")
</pallas_src>

<mosaic_0001>
module attributes {stable_mosaic.version = 11 : i64} {
  func.func @_attention_kernel(%arg0: i32, %arg1: memref<64x8x32xf32, #tpu.memory_space<vmem>>, %arg2: memref<64x32xf32, #tpu.memory_space<vmem>>, %arg3: memref<32x32xf32, #tpu.memory_space<vmem>>, %arg4: memref<32x32xf32, #tpu.memory_space<vmem>>, %arg5: memref<1x32xf32, #tpu.memory_space<vmem>>, %arg6: memref<1x32xf32, #tpu.memory_space<vmem>>, %arg7: memref<64x8x1xf32, #tpu.memory_space<vmem>>) attributes {dimension_semantics = [#tpu.dimension_semantics<parallel>], iteration_bounds = array<i64: 4>, scalar_prefetch = 0 : i64, scratch_operands = 0 : i64, tpu.core_type = #tpu.core_type<tc>, window_params = [{transform_indices = @transform_0, window_bounds = array<i64: 64, 8, 32>}, {transform_indices = @transform_1, window_bounds = array<i64: 64, 32>}, {pipeline_mode = #tpu.pipeline_mode<synchronous>, transform_indices = @transform_2, window_bounds = array<i64: 32, 32>}, {pipeline_mode = #tpu.pipeline_mode<synchronous>, transform_indices = @transform_3, window_bounds = array<i64: 32, 32>}, {pipeline_mode = #tpu.pipeline_mode<synchronous>, transform_indices = @transform_4, window_bounds = array<i64: 1, 32>}, {pipeline_mode = #tpu.pipeline_mode<synchronous>, transform_indices = @transform_5, window_bounds = array<i64: 1, 32>}, {transform_indices = @transform_6, window_bounds = array<i64: 64, 8, 1>}]} {
    %c0 = arith.constant 0 : index
    %c0_0 = arith.constant 0 : index
    %c0_1 = arith.constant 0 : index
    %0 = vector.load %arg1[%c0, %c0_0, %c0_1] : memref<64x8x32xf32, #tpu.memory_space<vmem>>, vector<64x8x32xf32>
    %1 = vector.shape_cast %0 : vector<64x8x32xf32> to vector<512x32xf32>
    %c0_2 = arith.constant 0 : index
    %c0_3 = arith.constant 0 : index
    %2 = vector.load %arg2[%c0_2, %c0_3] : memref<64x32xf32, #tpu.memory_space<vmem>>, vector<64x32xf32>
    %3 = vector.shape_cast %2 : vector<64x32xf32> to vector<64x1x32xf32>
    %4 = vector.shape_cast %3 : vector<64x1x32xf32> to vector<64x1x32xf32>
    %5 = vector.broadcast %4 : vector<64x1x32xf32> to vector<64x8x32xf32>
    %6 = vector.shape_cast %5 : vector<64x8x32xf32> to vector<512x32xf32>
    %c0_4 = arith.constant 0 : index
    %c0_5 = arith.constant 0 : index
    %7 = vector.load %arg3[%c0_4, %c0_5] : memref<32x32xf32, #tpu.memory_space<vmem>>, vector<32x32xf32>
    %cst = arith.constant dense<0.000000e+00> : vector<512x32xf32>
    %8 = tpu.matmul %1, %7, %cst {dimension_numbers = #tpu.dot_dimension_numbers<[1], [0], [0], [1], [0, 0, 1, 1], [], []>} : vector<512x32xf32>, vector<32x32xf32>, vector<512x32xf32> -> vector<512x32xf32>
    %9 = arith.addf %8, %6 : vector<512x32xf32>
    %cst_6 = arith.constant 0.000000e+00 : f32
    %10 = vector.broadcast %cst_6 : f32 to vector<512x32xf32>
    %11 = arith.maximumf %9, %10 : vector<512x32xf32>
    %c0_7 = arith.constant 0 : index
    %c0_8 = arith.constant 0 : index
    %12 = vector.load %arg4[%c0_7, %c0_8] : memref<32x32xf32, #tpu.memory_space<vmem>>, vector<32x32xf32>
    %cst_9 = arith.constant dense<0.000000e+00> : vector<512x32xf32>
    %13 = tpu.matmul %11, %12, %cst_9 {dimension_numbers = #tpu.dot_dimension_numbers<[1], [0], [0], [1], [0, 0, 1, 1], [], []>} : vector<512x32xf32>, vector<32x32xf32>, vector<512x32xf32> -> vector<512x32xf32>
    %c0_10 = arith.constant 0 : index
    %c0_11 = arith.constant 0 : index
    %14 = vector.load %arg5[%c0_10, %c0_11] : memref<1x32xf32, #tpu.memory_space<vmem>>, vector<1x32xf32>
    %15 = vector.broadcast %14 : vector<1x32xf32> to vector<512x32xf32>
    %16 = arith.addf %13, %15 : vector<512x32xf32>
    %cst_12 = arith.constant 0.000000e+00 : f32
    %17 = vector.broadcast %cst_12 : f32 to vector<512x32xf32>
    %18 = arith.maximumf %16, %17 : vector<512x32xf32>
    %c0_13 = arith.constant 0 : index
    %c0_14 = arith.constant 0 : index
    %19 = vector.load %arg6[%c0_13, %c0_14] : memref<1x32xf32, #tpu.memory_space<vmem>>, vector<1x32xf32>
    %20 = vector.broadcast %19 : vector<1x32xf32> to vector<512x32xf32>
    %21 = arith.mulf %18, %20 : vector<512x32xf32>
    %cst_15 = arith.constant dense<0.000000e+00> : vector<512xf32>
    %22 = vector.multi_reduction <add>, %21, %cst_15 [1] : vector<512x32xf32> to vector<512xf32>
    %23 = vector.shape_cast %22 : vector<512xf32> to vector<512x1xf32>
    %24 = vector.shape_cast %23 : vector<512x1xf32> to vector<64x8x1xf32>
    %cst_16 = arith.constant dense<0xFF800000> : vector<64x1xf32>
    %25 = vector.multi_reduction <maximumf>, %24, %cst_16 [1] : vector<64x8x1xf32> to vector<64x1xf32>
    %26 = vector.shape_cast %25 : vector<64x1xf32> to vector<64x1x1xf32>
    %27 = vector.broadcast %26 : vector<64x1x1xf32> to vector<64x8x1xf32>
    %28 = arith.subf %24, %27 : vector<64x8x1xf32>
    %29 = math.exp %28 : vector<64x8x1xf32>
    %cst_17 = arith.constant dense<0.000000e+00> : vector<64x1xf32>
    %30 = vector.multi_reduction <add>, %29, %cst_17 [1] : vector<64x8x1xf32> to vector<64x1xf32>
    %31 = vector.shape_cast %30 : vector<64x1xf32> to vector<64x1x1xf32>
    %32 = tpu.reciprocal %31 : vector<64x1x1xf32> -> vector<64x1x1xf32>
    %33 = vector.broadcast %32 : vector<64x1x1xf32> to vector<64x8x1xf32>
    %34 = arith.mulf %29, %33 : vector<64x8x1xf32>
    %c0_18 = arith.constant 0 : index
    %c0_19 = arith.constant 0 : index
    %c0_20 = arith.constant 0 : index
    %35 = vector.load %arg7[%c0_18, %c0_19, %c0_20] : memref<64x8x1xf32, #tpu.memory_space<vmem>>, vector<64x8x1xf32>
    tpu.vector_store %arg7[%c0_18, %c0_19, %c0_20], %34 {strides = array<i32>} : memref<64x8x1xf32, #tpu.memory_space<vmem>>, vector<64x8x1xf32>,
    return
  }
  func.func @transform_0(%arg0: i32) -> (i32, i32, i32) {
    %c0_i32 = arith.constant 0 : i32
    %c0_i32_0 = arith.constant 0 : i32
    %c0_i32_1 = arith.constant 0 : i32
    return %arg0, %c0_i32, %c0_i32_0 : i32, i32, i32
  }
  func.func @transform_1(%arg0: i32) -> (i32, i32) {
    %c0_i32 = arith.constant 0 : i32
    %c0_i32_0 = arith.constant 0 : i32
    return %arg0, %c0_i32 : i32, i32
  }
  func.func @transform_2(%arg0: i32) -> (i32, i32) {
    %c0_i32 = arith.constant 0 : i32
    %c0_i32_0 = arith.constant 0 : i32
    %c0_i32_1 = arith.constant 0 : i32
    return %c0_i32, %c0_i32_0 : i32, i32
  }
  func.func @transform_3(%arg0: i32) -> (i32, i32) {
    %c0_i32 = arith.constant 0 : i32
    %c0_i32_0 = arith.constant 0 : i32
    %c0_i32_1 = arith.constant 0 : i32
    return %c0_i32, %c0_i32_0 : i32, i32
  }
  func.func @transform_4(%arg0: i32) -> (i32, i32) {
    %c0_i32 = arith.constant 0 : i32
    %c0_i32_0 = arith.constant 0 : i32
    %c0_i32_1 = arith.constant 0 : i32
    return %c0_i32, %c0_i32_0 : i32, i32
  }
  func.func @transform_5(%arg0: i32) -> (i32, i32) {
    %c0_i32 = arith.constant 0 : i32
    %c0_i32_0 = arith.constant 0 : i32
    %c0_i32_1 = arith.constant 0 : i32
    return %c0_i32, %c0_i32_0 : i32, i32
  }
  func.func @transform_6(%arg0: i32) -> (i32, i32, i32) {
    %c0_i32 = arith.constant 0 : i32
    %c0_i32_0 = arith.constant 0 : i32
    %c0_i32_1 = arith.constant 0 : i32
    return %arg0, %c0_i32, %c0_i32_0 : i32, i32, i32
  }
}

</mosaic_0001>

<bundles_post_ra>
// kernel: attention_forward.1
= control target key start
LH: loop header
LB: loop body
LE: loop exit
PB: predicated region body
PF: predicated region fallthrough
CT: control target
= control target key end

     0   :  { %s4671_s21 = smov 0   ;;  %s5973_s0 = inlined_call_operand.vmem [shape: f32[256,8,32], index: 0, kind: input, shape index: {}]   ;;  %s5974_s1 = inlined_call_operand.vmem [shape: f32[256,32], index: 1, kind: input, shape index: {}]   ;;  %s5975_s2 = inlined_call_operand.vmem [shape: f32[32,32], index: 2, kind: input, shape index: {}]   ;;  %s5976_s3 = inlined_call_operand.vmem [shape: f32[32,32], index: 3, kind: input, shape index: {}]   ;;  %s5977_s4 = inlined_call_operand.vmem [shape: f32[1,32], index: 4, kind: input, shape index: {}]   ;;  %s5978_s5 = inlined_call_operand.vmem [shape: f32[1,32], index: 5, kind: input, shape index: {}]   ;;  %s5979_s6 = inlined_call_operand.vmem [shape: f32[256,8,1], index: 6, kind: output, shape index: {}]  }
   0x1 LB: > { %s3851_s22 = sadd.s32 4294967295, %s4633_s21   ;;  %p3855_p0 = scmp.ge.s32.totalorder %s4633_s21, 1  ;;  %s4633_s21 = sphi %s4671_s21, %s16_s21  }
   0x2   : > { %p224_p1 = scmp.lt.s32.totalorder %s4633_s21, 5 }
   0x4   : > { %p225_p2 = pnand %p3855_p0, %p224_p1 }
   0x5   : > { %v1069_v0 = vld [vmem:[%s5975_s2] sm:$0xff] (!%p225_p2)  ;;  %v1070_v1 = vld [vmem:[%s5975_s2 + $0x8] sm:$0xff] (!%p225_p2)  ;;  %v1071_v2 = vld [vmem:[%s5975_s2 + $0x10] sm:$0xff] (!%p225_p2)  ;;  %s3856_s29 = sshll.u32 (!%p225_p2), %s3851_s22, 6  ;;  %vm1073_vm0 = vcmask (!%p225_p2), 261120   ;;  %s3858_s20 = sshll.u32 (!%p225_p2), %s3851_s22, 3 }
   0x6   : > { %228 = sbr.rel (%p225_p2) target bundleno = 905 (0x389), region = 44  ;;  %v4338_v3 = vpack.c.bf16 (!%p225_p2), %v1070_v1, %v1069_v0  ;;  %v1072_v4 = vld [vmem:[%s5975_s2 + $0x18] sm:$0xff] (!%p225_p2)  ;;  %p260_p3 = scmp.lt.s32.totalorder (!%p225_p2), %s3856_s29, 255  ;;  %v1715_v18 = vld [vmem:[%s5976_s3] sm:$0xff] (!%p225_p2)  ;;  %v1716_v19 = vld [vmem:[%s5976_s3 + $0x8] sm:$0xff] (!%p225_p2)  ;;  %vm3718_vm1 = vcmask (!%p225_p2), 7168  }
   0x7   : > { %v4342_v5 = vpack.c.bf16 (!%p225_p2), %v1072_v4, %v1071_v2  ;;  %v4346_v21 = vpack.c.bf16 (!%p225_p2), %v1716_v19, %v1715_v18  ;;  %v1717_v54 = vld [vmem:[%s5976_s3 + $0x10] sm:$0xff] (!%p225_p2)  ;;  %v1718_v55 = vld [vmem:[%s5976_s3 + $0x18] sm:$0xff] (!%p225_p2)  ;;  %p266_p4 = scmp.lt.s32.totalorder (!%p225_p2), %s3858_s20, 31 }
   0x8   : > { %4339 = vmatprep.subr.bf16.mxu0 (!%p225_p2), %v4338_v3  ;;  %v4350_v56 = vpack.c.bf16 (!%p225_p2), %v1718_v55, %v1717_v54 }
   0x9   : > { %4341 = vmatpush3.bf16.msra.mxu0 (!%p225_p2), %v4338_v3  ;;  %4347 = vmatprep.subr.bf16.mxu1 (!%p225_p2), %v4346_v21 }
   0xa   : > { %4343 = vmatprep.subr.bf16.mxu0 (!%p225_p2), %v4342_v5  ;;  %4349 = vmatpush3.bf16.msra.mxu1 (!%p225_p2), %v4346_v21 }
   0xb   : > { %4351 = vmatprep.subr.bf16.mxu1 (!%p225_p2), %v4350_v56 }
   0xd   : > { %s5981_s29 = smov (!%p260_p3, %s3856_s29), 255  ;;  %4345 = vmatpush3.bf16.msra.mxu0 %v4342_v5  ;;  %s5983_s20 = smov (!%p266_p4, %s3858_s20), 31 }
   0xe   : > { %s3857_s8 = sshll.u32 %s5981_s29, 3  ;;  %4353 = vmatpush3.bf16.msra.mxu1 %v4350_v56  ;;  %s3859_s23 = sshll.u32 %s5983_s20, 3 }
   0xf   : > { %s4701_s11 = scalar_lea.vmem %s5973_s0, %s3857_s8  ;;  %s4848_s26 = scalar_lea.vmem %s5974_s1, %s3859_s23 }
  0x10   : > { %v277_v6 = vld [vmem:[%s4701_s11] sm:$0xff]  ;;  %v278_v7 = vld [vmem:[%s4701_s11 + $0x8] sm:$0xff]  ;;  %v279_v8 = vld [vmem:[%s4701_s11 + $0x10] sm:$0xff]  ;;  %s5328_s10 = scalar_lea.vmem %s5979_s6, %s3857_s8 }
  0x11   : > { %4138 = vmatprep.mubr.msk.f32.mxu0 %vm1073_vm0, %v277_v6  ;;  %v280_v9 = vld [vmem:[%s4701_s11 + $0x18] sm:$0xff]  ;;  %v281_v10 = vld [vmem:[%s4701_s11 + $0x20] sm:$0xff]  ;;  %v282_v11 = vld [vmem:[%s4701_s11 + $0x28] sm:$0xff] }
  0x12   : > { %4139 = vmatmul.mubr.msk.f32.vlgmr.msra.gmra.mrb[0].mxu0 %vm1073_vm0, %v278_v7  ;;  %v283_v12 = vld [vmem:[%s4701_s11 + $0x30] sm:$0xff]  ;;  %v284_v13 = vld [vmem:[%s4701_s11 + $0x38] sm:$0xff]  ;;  %v285_v14 = vld [vmem:[%s4701_s11 + $0x40] sm:$0xff] }
  0x13   : > { %4141 = vmatprep.mubr.msk.f32.mxu0 %vm1073_vm0, %v279_v8  ;;  %v286_v15 = vld [vmem:[%s4701_s11 + $0x48] sm:$0xff]  ;;  %v287_v16 = vld [vmem:[%s4701_s11 + $0x50] sm:$0xff]  ;;  %v288_v17 = vld [vmem:[%s4701_s11 + $0x58] sm:$0xff] }
  0x14   : > { %v289_v20 = vld [vmem:[%s4701_s11 + $0x60] sm:$0xff]  ;;  %v290_v22 = vld [vmem:[%s4701_s11 + $0x68] sm:$0xff]  ;;  %v291_v23 = vld [vmem:[%s4701_s11 + $0x70] sm:$0xff] }
  0x15   : > { %v292_v24 = vld [vmem:[%s4701_s11 + $0x78] sm:$0xff]  ;;  %v293_v25 = vld [vmem:[%s4701_s11 + $0x80] sm:$0xff]  ;;  %v294_v26 = vld [vmem:[%s4701_s11 + $0x88] sm:$0xff] }
  0x16   : > { %4142 = vmatmul.mubr.msk.f32.gmra.mrb[2].mxu0 %vm1073_vm0, %v280_v9  ;;  %v295_v27 = vld [vmem:[%s4701_s11 + $0x90] sm:$0xff]  ;;  %v296_v28 = vld [vmem:[%s4701_s11 + $0x98] sm:$0xff]  ;;  %v297_v29 = vld [vmem:[%s4701_s11 + $0xa0] sm:$0xff] }
  0x17   : > { %4144 = vmatprep.mubr.msk.f32.mxu0 %vm1073_vm0, %v281_v10  ;;  %v298_v30 = vld [vmem:[%s4701_s11 + $0xa8] sm:$0xff]  ;;  %v299_v31 = vld [vmem:[%s4701_s11 + $0xb0] sm:$0xff]  ;;  %v300_v32 = vld [vmem:[%s4701_s11 + $0xb8] sm:$0xff] }
  0x18   : > { %v301_v33 = vld [vmem:[%s4701_s11 + $0xc0] sm:$0xff]  ;;  %v302_v34 = vld [vmem:[%s4701_s11 + $0xc8] sm:$0xff]  ;;  %v303_v35 = vld [vmem:[%s4701_s11 + $0xd0] sm:$0xff] }
  0x19   : > { %v304_v36 = vld [vmem:[%s4701_s11 + $0xd8] sm:$0xff]  ;;  %v305_v37 = vld [vmem:[%s4701_s11 + $0xe0] sm:$0xff]  ;;  %v306_v38 = vld [vmem:[%s4701_s11 + $0xe8] sm:$0xff] }
  0x1a   : > { %4145 = vmatmul.mubr.msk.f32.gmra.mrb[4].mxu0 %vm1073_vm0, %v282_v11  ;;  %v307_v39 = vld [vmem:[%s4701_s11 + $0xf0] sm:$0xff]  ;;  %v308_v40 = vld [vmem:[%s4701_s11 + $0xf8] sm:$0xff]  ;;  %v309_v41 = vld [vmem:[%s4701_s11 + $0x100] sm:$0xff] }
  0x1b   : > { %4147 = vmatprep.mubr.msk.f32.mxu0 %vm1073_vm0, %v283_v12  ;;  %v310_v42 = vld [vmem:[%s4701_s11 + $0x108] sm:$0xff]  ;;  %v311_v43 = vld [vmem:[%s4701_s11 + $0x110] sm:$0xff]  ;;  %v312_v44 = vld [vmem:[%s4701_s11 + $0x118] sm:$0xff]  ;;  %v4635_v12 = vmov 1966171168  }
  0x1c   : > { %v313_v45 = vld [vmem:[%s4701_s11 + $0x120] sm:$0xff]  ;;  %v314_v46 = vld [vmem:[%s4701_s11 + $0x128] sm:$0xff]  ;;  %v315_v47 = vld [vmem:[%s4701_s11 + $0x130] sm:$0xff] }
  0x1d   : > { %v316_v48 = vld [vmem:[%s4701_s11 + $0x138] sm:$0xff]  ;;  %v317_v49 = vld [vmem:[%s4701_s11 + $0x140] sm:$0xff]  ;;  %v318_v50 = vld [vmem:[%s4701_s11 + $0x148] sm:$0xff] }
  0x1e   : > { %4148 = vmatmul.mubr.msk.f32.gmra.mrb[6].mxu0 %vm1073_vm0, %v284_v13  ;;  %v319_v51 = vld [vmem:[%s4701_s11 + $0x150] sm:$0xff]  ;;  %v320_v52 = vld [vmem:[%s4701_s11 + $0x158] sm:$0xff]  ;;  %v321_v53 = vld [vmem:[%s4701_s11 + $0x160] sm:$0xff]  ;;  %v359_v13 = vunpack.c.l.s4 %v4635_v12 }
  0x1f   : > { %4150 = vmatprep.mubr.msk.f32.mxu0 %vm1073_vm0, %v285_v14  ;;  %v322_v57 = vld [vmem:[%s4701_s11 + $0x168] sm:$0xff]  ;;  %v323_v58 = vld [vmem:[%s4701_s11 + $0x170] sm:$0xff]  ;;  %v324_v59 = vld [vmem:[%s4701_s11 + $0x178] sm:$0xff]  ;;  %v361_v14 = vlaneseq }
  0x20   : > { %v325_v60 = vld [vmem:[%s4701_s11 + $0x180] sm:$0xff]  ;;  %v326_v61 = vld [vmem:[%s4701_s11 + $0x188] sm:$0xff]  ;;  %v327_v62 = vld [vmem:[%s4701_s11 + $0x190] sm:$0xff] }
  0x21   : > { %v328_v63 = vld [vmem:[%s4701_s11 + $0x198] sm:$0xff]  ;;  %v329_v0 = vld [vmem:[%s4701_s11 + $0x1a0] sm:$0xff]  ;;  %v330_v1 = vld [vmem:[%s4701_s11 + $0x1a8] sm:$0xff] }
  0x22   : > { %4151 = vmatmul.mubr.msk.f32.gmra.mrb[8].mxu0 %vm1073_vm0, %v286_v15  ;;  %v331_v2 = vld [vmem:[%s4701_s11 + $0x1b0] sm:$0xff]  ;;  %v332_v3 = vld [vmem:[%s4701_s11 + $0x1b8] sm:$0xff]  ;;  %v333_v4 = vld [vmem:[%s4701_s11 + $0x1c0] sm:$0xff]  ;;  %v360_v15 = vunpack.c.0.s8 %v359_v13 }
  0x23   : > { %4153 = vmatprep.mubr.msk.f32.mxu0 %vm1073_vm0, %v287_v16  ;;  %v334_v5 = vld [vmem:[%s4701_s11 + $0x1c8] sm:$0xff]  ;;  %v335_v6 = vld [vmem:[%s4701_s11 + $0x1d0] sm:$0xff]  ;;  %v336_v7 = vld [vmem:[%s4701_s11 + $0x1d8] sm:$0xff]  ;;  %v362_v16 = vshrl.u32 %v361_v14, 7 }
  0x24   : > { %v337_v8 = vld [vmem:[%s4701_s11 + $0x1e0] sm:$0xff]  ;;  %v338_v9 = vld [vmem:[%s4701_s11 + $0x1e8] sm:$0xff]  ;;  %v339_v10 = vld [vmem:[%s4701_s11 + $0x1f0] sm:$0xff] }
  0x25   : > { %v340_v11 = vld [vmem:[%s4701_s11 + $0x1f8] sm:$0xff]  ;;  %v341_v18 = vld [vmem:[%s4848_s26] sm:$0xff] }
  0x26   : > { %4154 = vmatmul.mubr.msk.f32.gmra.mrb[10].mxu0 %vm1073_vm0, %v288_v17  ;;  %v4850_v17 = vsub.s32 %v360_v15, %v362_v16 }
  0x27   : > { %4156 = vmatprep.mubr.msk.f32.mxu0 %vm1073_vm0, %v289_v20  ;;  %v357_v20 = vcombine.high %v341_v18, %v341_v18 }
  0x28   : > { %v364_v19 = vrot.slane %v341_v18, %v4850_v17 }
  0x2a   : > { %4157 = vmatmul.mubr.msk.f32.gmra.mrb[12].mxu0 %vm1073_vm0, %v290_v22  ;;  %v372_v21 = vcombine.high %v364_v19, %v364_v19  ;;  %v371_v22 = vrot.slane %v357_v20, %v4850_v17 }
  0x2b   : > { %4159 = vmatprep.mubr.msk.f32.mxu0 %vm1073_vm0, %v291_v23 }
  0x2c   : > { %v394_v23 = vrot.slane %v372_v21, %v4850_v17 }
  0x2e   : > { %4160 = vmatmul.mubr.msk.f32.gmra.mrb[14].mxu0 %vm1073_vm0, %v292_v24  ;;  %v4856_v24 = vsub.s32 0, %v362_v16 }
  0x2f   : > { %4162 = vmatprep.mubr.msk.f32.mxu0 %vm1073_vm0, %v293_v25  ;;  %v380_v25 = vrot.slane %v364_v19, %v4850_v17 }
  0x32   : > { %4163 = vmatmul.mubr.msk.f32.gmra.mrb[16].mxu0 %vm1073_vm0, %v294_v26  ;;  %v373_v26 = vcombine.high %v371_v22, %v371_v22 }
  0x33   : > { %4165 = vmatprep.mubr.msk.f32.mxu0 %vm1073_vm0, %v295_v27  ;;  %v756_v27 = vrot.slane %v394_v23, %v4856_v24 }
  0x36   : > { %4166 = vmatmul.mubr.msk.f32.gmra.mrb[18].mxu0 %vm1073_vm0, %v296_v28  ;;  %v404_v28 = vcombine.high %v394_v23, %v394_v23 }
  0x37   : > { %4168 = vmatprep.mubr.msk.f32.mxu0 %vm1073_vm0, %v297_v29  ;;  %v752_v29 = vrot.slane %v380_v25, %v4856_v24 }
  0x3a   : > { %4169 = vmatmul.mubr.msk.f32.gmra.mrb[20].mxu0 %vm1073_vm0, %v298_v30  ;;  %v402_v30 = vcombine.high %v380_v25, %v380_v25 }
  0x3b   : > { %4171 = vmatprep.mubr.msk.f32.mxu0 %vm1073_vm0, %v299_v31  ;;  %v342_v31 = vld [vmem:[%s4848_s26 + $0x8] sm:$0xff] }
  0x3e   : > { %4172 = vmatmul.mubr.msk.f32.gmra.mrb[22].mxu0 %vm1073_vm0, %v300_v32 }
  0x3f   : > { %4174 = vmatprep.mubr.msk.f32.mxu0 %vm1073_vm0, %v301_v33  ;;  %v401_v33 = vrot.slane %v373_v26, %v4850_v17 }
  0x42   : > { %4175 = vmatmul.mubr.msk.f32.gmra.mrb[24].mxu0 %vm1073_vm0, %v302_v34 }
  0x43   : > { %4177 = vmatprep.mubr.msk.f32.mxu0 %vm1073_vm0, %v303_v35 }
  0x46   : > { %4178 = vmatmul.mubr.msk.f32.gmra.mrb[26].mxu0 %vm1073_vm0, %v304_v36  ;;  %v764_v36 = vrot.slane %v404_v28, %v4856_v24 }
  0x47   : > { %4180 = vmatprep.mubr.msk.f32.mxu0 %vm1073_vm0, %v305_v37  ;;  %v413_v37 = vrot.slane %v342_v31, %v4850_v17 }
  0x4a   : > { %4181 = vmatmul.mubr.msk.f32.gmra.mrb[28].mxu0 %vm1073_vm0, %v306_v38 }
  0x4b   : > { %4183 = vmatprep.mubr.msk.f32.mxu0 %vm1073_vm0, %v307_v39  ;;  %v760_v39 = vrot.slane %v402_v30, %v4856_v24 }
  0x4e   : > { %4184 = vmatmul.mubr.msk.f32.gmra.mrb[30].mxu0 %vm1073_vm0, %v308_v40  ;;  %v387_v40 = vrot.slane %v371_v22, %v4850_v17 }
  0x4f   : > { %4186 = vmatprep.mubr.msk.f32.mxu0 %vm1073_vm0, %v309_v41 }
  0x52   : > { %4187 = vmatmul.mubr.msk.f32.gmra.mrb[32].mxu0 %vm1073_vm0, %v310_v42 }
  0x53   : > { %4189 = vmatprep.mubr.msk.f32.mxu0 %vm1073_vm0, %v311_v43  ;;  %v772_v43 = vrot.slane %v401_v33, %v4856_v24 }
  0x56   : > { %4190 = vmatmul.mubr.msk.f32.gmra.mrb[34].mxu0 %vm1073_vm0, %v312_v44  ;;  %v405_v44 = vcombine.high %v401_v33, %v401_v33 }
  0x57   : > { %4192 = vmatprep.mubr.msk.f32.mxu0 %vm1073_vm0, %v313_v45 }
  0x58   : > { %v780_v55 = vrot.slane %v405_v44, %v4856_v24 }
  0x5a   : > { %4193 = vmatmul.mubr.msk.f32.gmra.mrb[36].mxu0 %vm1073_vm0, %v314_v46 }
  0x5b   : > { %4195 = vmatprep.mubr.msk.f32.mxu0 %vm1073_vm0, %v315_v47 }
  0x5e   : > { %4196 = vmatmul.mubr.msk.f32.gmra.mrb[38].mxu0 %vm1073_vm0, %v316_v48  ;;  %v421_v48 = vcombine.high %v413_v37, %v413_v37 }
  0x5f   : > { %4198 = vmatprep.mubr.msk.f32.mxu0 %vm1073_vm0, %v317_v49  ;;  %v406_v49 = vcombine.high %v342_v31, %v342_v31 }
  0x62   : > { %4199 = vmatmul.mubr.msk.f32.gmra.mrb[40].mxu0 %vm1073_vm0, %v318_v50 }
  0x63   : > { %4201 = vmatprep.mubr.msk.f32.mxu0 %vm1073_vm0, %v319_v51  ;;  %v768_v51 = vrot.slane %v387_v40, %v4856_v24 }
  0x66   : > { %4202 = vmatmul.mubr.msk.f32.gmra.mrb[42].mxu0 %vm1073_vm0, %v320_v52  ;;  %v403_v52 = vcombine.high %v387_v40, %v387_v40 }
  0x67   : > { %4204 = vmatprep.mubr.msk.f32.mxu0 %vm1073_vm0, %v321_v53 }
  0x6a   : > { %4205 = vmatmul.mubr.msk.f32.gmra.mrb[44].mxu0 %vm1073_vm0, %v322_v57 }
  0x6b   : > { %4207 = vmatprep.mubr.msk.f32.mxu0 %vm1073_vm0, %v323_v58 }
  0x6e   : > { %4208 = vmatmul.mubr.msk.f32.gmra.mrb[46].mxu0 %vm1073_vm0, %v324_v59  ;;  %v443_v59 = vrot.slane %v421_v48, %v4850_v17 }
  0x6f   : > { %4210 = vmatprep.mubr.msk.f32.mxu0 %vm1073_vm0, %v325_v60  ;;  %v420_v60 = vrot.slane %v406_v49, %v4850_v17 }
  0x71   : > { %v436_v23 = vrot.slane %v420_v60, %v4850_v17 }
  0x72   : > { %4211 = vmatmul.mubr.msk.f32.gmra.mrb[48].mxu0 %vm1073_vm0, %v326_v61 }
  0x73   : > { %4213 = vmatprep.mubr.msk.f32.mxu0 %vm1073_vm0, %v327_v62  ;;  %v776_v62 = vrot.slane %v403_v52, %v4856_v24 }
  0x76   : > { %4214 = vmatmul.mubr.msk.f32.gmra.mrb[50].mxu0 %vm1073_vm0, %v328_v63  ;;  %v429_v63 = vrot.slane %v413_v37, %v4850_v17 }
  0x77   : > { %4216 = vmatprep.mubr.msk.f32.mxu0 %vm1073_vm0, %v329_v0 }
  0x7a   : > { %4217 = vmatmul.mubr.msk.f32.gmra.mrb[52].mxu0 %vm1073_vm0, %v330_v1 }
  0x7b   : > { %4219 = vmatprep.mubr.msk.f32.mxu0 %vm1073_vm0, %v331_v2 }
  0x7e   : > { %4220 = vmatmul.mubr.msk.f32.gmra.mrb[54].mxu0 %vm1073_vm0, %v332_v3 }
  0x7f   : > { %4222 = vmatprep.mubr.msk.f32.mxu0 %vm1073_vm0, %v333_v4 }
  0x82   : > { %4223 = vmatmul.mubr.msk.f32.gmra.mrb[56].mxu0 %vm1073_vm0, %v334_v5  ;;  %v788_v5 = vrot.slane %v443_v59, %v4856_v24 }
  0x83   : > { %4225 = vmatprep.mubr.msk.f32.mxu0 %vm1073_vm0, %v335_v6  ;;  %v453_v6 = vcombine.high %v443_v59, %v443_v59  ;;  %v344_v59 = vld [vmem:[%s4848_s26 + $0x18] sm:$0xff] }
  0x85   : > { %v796_v18 = vrot.slane %v453_v6, %v4856_v24 }
  0x86   : > { %4226 = vmatmul.mubr.msk.f32.gmra.mrb[58].mxu0 %vm1073_vm0, %v336_v7  ;;  %v422_v7 = vcombine.high %v420_v60, %v420_v60 }
  0x87   : > { %4228 = vmatprep.mubr.msk.f32.mxu0 %vm1073_vm0, %v337_v8 }
  0x88   : > { %v450_v19 = vrot.slane %v422_v7, %v4850_v17 }
  0x8a   : > { %4229 = vmatmul.mubr.msk.f32.gmra.mrb[60].mxu0 %vm1073_vm0, %v338_v9  ;;  %v784_v9 = vrot.slane %v429_v63, %v4856_v24  ;;  %v804_v31 = vrot.slane %v450_v19, %v4856_v24 }
  0x8b   : > { %4231 = vmatprep.mubr.msk.f32.mxu0 %vm1073_vm0, %v339_v10  ;;  %v451_v10 = vcombine.high %v429_v63, %v429_v63 }
  0x8d   : > { %v792_v22 = vrot.slane %v451_v10, %v4856_v24 }
  0x8e   : > { %4232 = vmatmul.mubr.msk.f32.gmra.mrb[62].mxu0 %vm1073_vm0, %v340_v11  ;;  %v343_v11 = vld [vmem:[%s4848_s26 + $0x10] sm:$0xff] }
  0x8f   : > { %v462_v20 = vrot.slane %v343_v11, %v4850_v17  ;;  %v455_v28 = vcombine.high %v343_v11, %v343_v11 }
  0x91   : > { %v470_v33 = vcombine.high %v462_v20, %v462_v20  ;;  %v469_v40 = vrot.slane %v455_v28, %v4850_v17 }
  0x93   : > { %v492_v44 = vrot.slane %v470_v33, %v4850_v17  ;;  %v485_v6 = vrot.slane %v469_v40, %v4850_v17 }
  0xe5   : > { %v4140_v32 = vpop.f32.mrb[0].mxu0 }
  0xe6   : > { %v1338_v34 = vadd.f32 %v4140_v32, %v756_v27  ;;  %v1332_v35 = vpop.f32.mrb[1].mxu0  ;;  %v454_v32 = vcombine.high %v450_v19, %v450_v19  ;;  %v501_v19 = vcombine.high %v485_v6, %v485_v6 }
  0xe7   : > { %v1333_v38 = vadd.f32 %v1332_v35, %v752_v29  ;;  %v800_v35 = vrot.slane %v436_v23, %v4856_v24 }
  0xe8   : > { %v1652_v45 = vmax.f32 %v1338_v34, 0.0 }
  0xe9   : > { %v1651_v41 = vmax.f32 %v1333_v38, 0.0  ;;  %v4143_v42 = vpop.f32.mrb[2].mxu0 }
  0xea   : > { %v1348_v46 = vadd.f32 %v4143_v42, %v764_v36  ;;  %v1342_v47 = vpop.f32.mrb[3].mxu0  ;;  %v452_v36 = vcombine.high %v436_v23, %v436_v23 }
  0xeb   : > { %v1343_v50 = vadd.f32 %v1342_v47, %v760_v39  ;;  %4242 = vmatprep.mubr.msk.f32.mxu1 %vm1073_vm0, %v1651_v41  ;;  %v478_v47 = vrot.slane %v462_v20, %v4850_v17 }
  0xec   : > { %4243 = vmatmul.mubr.msk.f32.vlgmr.msra.gmra.mrb[0].mxu1 %vm1073_vm0, %v1652_v45  ;;  %v1654_v56 = vmax.f32 %v1348_v46, 0.0  ;;  %v808_v46 = vrot.slane %v452_v36, %v4856_v24 }
  0xed   : > { %v1653_v53 = vmax.f32 %v1343_v50, 0.0  ;;  %v4146_v54 = vpop.f32.mrb[4].mxu0 }
  0xee   : > { %v1358_v57 = vadd.f32 %v4146_v54, %v772_v43  ;;  %v1352_v58 = vpop.f32.mrb[5].mxu0  ;;  %v812_v43 = vrot.slane %v454_v32, %v4856_v24  ;;  %v820_v54 = vrot.slane %v492_v44, %v4856_v24 }
  0xef   : > { %v1353_v61 = vadd.f32 %v1352_v58, %v768_v51  ;;  %4245 = vmatprep.mubr.msk.f32.mxu1 %vm1073_vm0, %v1653_v53  ;;  %v471_v51 = vcombine.high %v469_v40, %v469_v40  ;;  %v500_v58 = vcombine.high %v478_v47, %v478_v47 }
  0xf0   : > { %v1656_v0 = vmax.f32 %v1358_v57, 0.0  ;;  %4246 = vmatmul.mubr.msk.f32.gmra.mrb[2].mxu1 %vm1073_vm0, %v1654_v56  ;;  %v816_v57 = vrot.slane %v478_v47, %v4856_v24 }
  0xf1   : > { %v1655_v1 = vmax.f32 %v1353_v61, 0.0  ;;  %v4149_v2 = vpop.f32.mrb[6].mxu0  ;;  %v499_v63 = vrot.slane %v471_v51, %v4850_v17 }
  0xf2   : > { %v1368_v3 = vadd.f32 %v4149_v2, %v780_v55  ;;  %v1362_v4 = vpop.f32.mrb[7].mxu0  ;;  %v502_v55 = vcombine.high %v492_v44, %v492_v44 }
  0xf3   : > { %v1363_v8 = vadd.f32 %v1362_v4, %v776_v62  ;;  %4248 = vmatprep.mubr.msk.f32.mxu1 %vm1073_vm0, %v1655_v1  ;;  %v836_v10 = vrot.slane %v499_v63, %v4856_v24 }
  0xf4   : > { %v1658_v12 = vmax.f32 %v1368_v3, 0.0  ;;  %4249 = vmatmul.mubr.msk.f32.gmra.mrb[4].mxu1 %vm1073_vm0, %v1656_v0  ;;  %v828_v2 = vrot.slane %v502_v55, %v4856_v24  ;;  %v511_v3 = vrot.slane %v344_v59, %v4850_v17 }
  0xf5   : > { %v1657_v13 = vmax.f32 %v1363_v8, 0.0  ;;  %v4152_v14 = vpop.f32.mrb[8].mxu0 }
  0xf6   : > { %v1378_v15 = vadd.f32 %v4152_v14, %v788_v5  ;;  %v1372_v16 = vpop.f32.mrb[9].mxu0  ;;  %v824_v5 = vrot.slane %v500_v58, %v4856_v24  ;;  %v519_v14 = vcombine.high %v511_v3, %v511_v3 }
  0xf7   : > { %v1373_v21 = vadd.f32 %v1372_v16, %v784_v9  ;;  %4251 = vmatprep.mubr.msk.f32.mxu1 %vm1073_vm0, %v1657_v13  ;;  %v503_v13 = vcombine.high %v499_v63, %v499_v63 }
  0xf8   : > { %v1660_v25 = vmax.f32 %v1378_v15, 0.0  ;;  %4252 = vmatmul.mubr.msk.f32.gmra.mrb[6].mxu1 %vm1073_vm0, %v1658_v12  ;;  %v504_v15 = vcombine.high %v344_v59, %v344_v59 }
  0xf9   : > { %v1659_v26 = vmax.f32 %v1373_v21, 0.0  ;;  %v4155_v27 = vpop.f32.mrb[10].mxu0 }
  0xfa   : > { %v1388_v29 = vadd.f32 %v4155_v27, %v796_v18  ;;  %v1382_v30 = vpop.f32.mrb[11].mxu0  ;;  %v832_v18 = vrot.slane %v485_v6, %v4856_v24  ;;  %v541_v27 = vrot.slane %v519_v14, %v4850_v17  ;;  %v518_v28 = vrot.slane %v504_v15, %v4850_v17 }
  0xfb   : > { %v1383_v34 = vadd.f32 %v1382_v30, %v792_v22  ;;  %4254 = vmatprep.mubr.msk.f32.mxu1 %vm1073_vm0, %v1659_v26  ;;  %v844_v26 = vrot.slane %v503_v13, %v4856_v24  ;;  %v840_v30 = vrot.slane %v501_v19, %v4856_v24 }
  0xfc   : > { %v1662_v37 = vmax.f32 %v1388_v29, 0.0  ;;  %4255 = vmatmul.mubr.msk.f32.gmra.mrb[8].mxu1 %vm1073_vm0, %v1660_v25 }
  0xfd   : > { %v1661_v38 = vmax.f32 %v1383_v34, 0.0  ;;  %v4158_v39 = vpop.f32.mrb[12].mxu0 }
  0xfe   : > { %v1398_v41 = vadd.f32 %v4158_v39, %v804_v31  ;;  %v1392_v42 = vpop.f32.mrb[13].mxu0  ;;  %v527_v31 = vrot.slane %v511_v3, %v4850_v17  ;;  %v520_v39 = vcombine.high %v518_v28, %v518_v28 }
  0xff   : > { %v1393_v45 = vadd.f32 %v1392_v42, %v800_v35  ;;  %4257 = vmatprep.mubr.msk.f32.mxu1 %vm1073_vm0, %v1661_v38  ;;  %v551_v38 = vcombine.high %v541_v27, %v541_v27 }
 0x100   : > { %v1664_v48 = vmax.f32 %v1398_v41, 0.0  ;;  %4258 = vmatmul.mubr.msk.f32.gmra.mrb[10].mxu1 %vm1073_vm0, %v1662_v37  ;;  %v852_v37 = vrot.slane %v541_v27, %v4856_v24  ;;  %v848_v41 = vrot.slane %v527_v31, %v4856_v24  ;;  %v549_v42 = vcombine.high %v527_v31, %v527_v31  ;;  %v346_v27 = vld [vmem:[%s4848_s26 + $0x28] sm:$0xff] }
 0x101   : > { %v1663_v49 = vmax.f32 %v1393_v45, 0.0  ;;  %v4161_v50 = vpop.f32.mrb[14].mxu0 }
 0x102   : > { %v1408_v52 = vadd.f32 %v4161_v50, %v812_v43  ;;  %v1402_v53 = vpop.f32.mrb[15].mxu0  ;;  %v345_v43 = vld [vmem:[%s4848_s26 + $0x20] sm:$0xff]  ;;  %v548_v50 = vrot.slane %v520_v39, %v4850_v17 }
 0x103   : > { %v1403_v56 = vadd.f32 %v1402_v53, %v808_v46  ;;  %4260 = vmatprep.mubr.msk.f32.mxu1 %vm1073_vm0, %v1663_v49  ;;  %v860_v49 = vrot.slane %v551_v38, %v4856_v24  ;;  %v560_v51 = vrot.slane %v345_v43, %v4850_v17  ;;  %v856_v53 = vrot.slane %v549_v42, %v4856_v24 }
 0x104   : > { %v1666_v60 = vmax.f32 %v1408_v52, 0.0  ;;  %4261 = vmatmul.mubr.msk.f32.gmra.mrb[12].mxu1 %vm1073_vm0, %v1664_v48  ;;  %v553_v58 = vcombine.high %v345_v43, %v345_v43 }
 0x105   : > { %v1665_v61 = vmax.f32 %v1403_v56, 0.0  ;;  %v4164_v62 = vpop.f32.mrb[16].mxu0  ;;  %v568_v63 = vcombine.high %v560_v51, %v560_v51  ;;  %v576_v13 = vrot.slane %v560_v51, %v4850_v17 }
 0x106   : > { %v1418_v0 = vadd.f32 %v4164_v62, %v820_v54  ;;  %v1412_v1 = vpop.f32.mrb[17].mxu0  ;;  %v534_v54 = vrot.slane %v518_v28, %v4850_v17  ;;  %v552_v62 = vcombine.high %v548_v50, %v548_v50  ;;  %v567_v6 = vrot.slane %v553_v58, %v4850_v17 }
 0x107   : > { %v1413_v4 = vadd.f32 %v1412_v1, %v816_v57  ;;  %4263 = vmatprep.mubr.msk.f32.mxu1 %vm1073_vm0, %v1665_v61  ;;  %v868_v61 = vrot.slane %v548_v50, %v4856_v24 }
 0x108   : > { %v1668_v7 = vmax.f32 %v1418_v0, 0.0  ;;  %4264 = vmatmul.mubr.msk.f32.gmra.mrb[14].mxu1 %vm1073_vm0, %v1666_v60  ;;  %v864_v1 = vrot.slane %v534_v54, %v4856_v24  ;;  %v583_v38 = vrot.slane %v567_v6, %v4850_v17 }
 0x109   : > { %v1667_v8 = vmax.f32 %v1413_v4, 0.0  ;;  %v4167_v9 = vpop.f32.mrb[18].mxu0 }
 0x10a   : > { %v1428_v11 = vadd.f32 %v4167_v9, %v828_v2  ;;  %v1422_v12 = vpop.f32.mrb[19].mxu0  ;;  %v550_v2 = vcombine.high %v534_v54, %v534_v54  ;;  %v876_v9 = vrot.slane %v552_v62, %v4856_v24  ;;  %v599_v50 = vcombine.high %v583_v38, %v583_v38 }
 0x10b   : > { %v1423_v16 = vadd.f32 %v1422_v12, %v824_v5  ;;  %4266 = vmatprep.mubr.msk.f32.mxu1 %vm1073_vm0, %v1667_v8 }
 0x10c   : > { %v1670_v20 = vmax.f32 %v1428_v11, 0.0  ;;  %4267 = vmatmul.mubr.msk.f32.gmra.mrb[16].mxu1 %vm1073_vm0, %v1668_v7  ;;  %v872_v12 = vrot.slane %v550_v2, %v4856_v24 }
 0x10d   : > { %v1669_v21 = vmax.f32 %v1423_v16, 0.0  ;;  %v4170_v22 = vpop.f32.mrb[20].mxu0 }
 0x10e   : > { %v1438_v23 = vadd.f32 %v4170_v22, %v836_v10  ;;  %v1432_v25 = vpop.f32.mrb[21].mxu0  ;;  %v590_v10 = vrot.slane %v568_v63, %v4850_v17 }
 0x10f   : > { %v1433_v29 = vadd.f32 %v1432_v25, %v832_v18  ;;  %4269 = vmatprep.mubr.msk.f32.mxu1 %vm1073_vm0, %v1669_v21  ;;  %v569_v18 = vcombine.high %v567_v6, %v567_v6  ;;  %v880_v25 = vrot.slane %v576_v13, %v4856_v24 }
 0x110   : > { %v1672_v32 = vmax.f32 %v1438_v23, 0.0  ;;  %4270 = vmatmul.mubr.msk.f32.gmra.mrb[18].mxu1 %vm1073_vm0, %v1670_v20  ;;  %v884_v21 = vrot.slane %v590_v10, %v4856_v24  ;;  %v600_v22 = vcombine.high %v590_v10, %v590_v10 }
 0x111   : > { %v1671_v33 = vmax.f32 %v1433_v29, 0.0  ;;  %v4173_v34 = vpop.f32.mrb[22].mxu0  ;;  %v597_v31 = vrot.slane %v569_v18, %v4850_v17 }
 0x112   : > { %v1448_v35 = vadd.f32 %v4173_v34, %v844_v26  ;;  %v1442_v36 = vpop.f32.mrb[23].mxu0  ;;  %v598_v26 = vcombine.high %v576_v13, %v576_v13  ;;  %v892_v34 = vrot.slane %v600_v22, %v4856_v24 }
 0x113   : > { %v1443_v40 = vadd.f32 %v1442_v36, %v840_v30  ;;  %4272 = vmatprep.mubr.msk.f32.mxu1 %vm1073_vm0, %v1671_v33  ;;  %v900_v42 = vrot.slane %v597_v31, %v4856_v24 }
 0x114   : > { %v1674_v44 = vmax.f32 %v1448_v35, 0.0  ;;  %4273 = vmatmul.mubr.msk.f32.gmra.mrb[20].mxu1 %vm1073_vm0, %v1672_v32  ;;  %v609_v35 = vrot.slane %v346_v27, %v4850_v17 }
 0x115   : > { %v1673_v45 = vmax.f32 %v1443_v40, 0.0  ;;  %v4176_v46 = vpop.f32.mrb[24].mxu0 }
 0x116   : > { %v1458_v47 = vadd.f32 %v4176_v46, %v852_v37  ;;  %v1452_v48 = vpop.f32.mrb[25].mxu0  ;;  %v888_v37 = vrot.slane %v598_v26, %v4856_v24  ;;  %v617_v46 = vcombine.high %v609_v35, %v609_v35 }
 0x117   : > { %v1453_v52 = vadd.f32 %v1452_v48, %v848_v41  ;;  %4275 = vmatprep.mubr.msk.f32.mxu1 %vm1073_vm0, %v1673_v45  ;;  %v601_v45 = vcombine.high %v597_v31, %v597_v31 }
 0x118   : > { %v1676_v55 = vmax.f32 %v1458_v47, 0.0  ;;  %4276 = vmatmul.mubr.msk.f32.gmra.mrb[22].mxu1 %vm1073_vm0, %v1674_v44  ;;  %v602_v47 = vcombine.high %v346_v27, %v346_v27 }
 0x119   : > { %v1675_v56 = vmax.f32 %v1453_v52, 0.0  ;;  %v4179_v57 = vpop.f32.mrb[26].mxu0 }
 0x11a   : > { %v1468_v59 = vadd.f32 %v4179_v57, %v860_v49  ;;  %v1462_v60 = vpop.f32.mrb[27].mxu0  ;;  %v896_v49 = vrot.slane %v583_v38, %v4856_v24  ;;  %v639_v57 = vrot.slane %v617_v46, %v4850_v17  ;;  %v616_v58 = vrot.slane %v602_v47, %v4850_v17 }
 0x11b   : > { %v1463_v0 = vadd.f32 %v1462_v60, %v856_v53  ;;  %4278 = vmatprep.mubr.msk.f32.mxu1 %vm1073_vm0, %v1675_v56  ;;  %v908_v56 = vrot.slane %v601_v45, %v4856_v24  ;;  %v904_v60 = vrot.slane %v599_v50, %v4856_v24 }
 0x11c   : > { %v1678_v3 = vmax.f32 %v1468_v59, 0.0  ;;  %4279 = vmatmul.mubr.msk.f32.gmra.mrb[24].mxu1 %vm1073_vm0, %v1676_v55 }
 0x11d   : > { %v1677_v4 = vmax.f32 %v1463_v0, 0.0  ;;  %v4182_v5 = vpop.f32.mrb[28].mxu0 }
 0x11e   : > { %v1478_v7 = vadd.f32 %v4182_v5, %v868_v61  ;;  %v1472_v8 = vpop.f32.mrb[29].mxu0  ;;  %v625_v61 = vrot.slane %v609_v35, %v4850_v17  ;;  %v618_v5 = vcombine.high %v616_v58, %v616_v58 }
 0x11f   : > { %v1473_v11 = vadd.f32 %v1472_v8, %v864_v1  ;;  %4281 = vmatprep.mubr.msk.f32.mxu1 %vm1073_vm0, %v1677_v4  ;;  %v649_v4 = vcombine.high %v639_v57, %v639_v57 }
 0x120   : > { %v1680_v14 = vmax.f32 %v1478_v7, 0.0  ;;  %4282 = vmatmul.mubr.msk.f32.gmra.mrb[26].mxu1 %vm1073_vm0, %v1678_v3  ;;  %v916_v3 = vrot.slane %v639_v57, %v4856_v24  ;;  %v912_v7 = vrot.slane %v625_v61, %v4856_v24  ;;  %v647_v8 = vcombine.high %v625_v61, %v625_v61  ;;  %v348_v57 = vld [vmem:[%s4848_s26 + $0x38] sm:$0xff] }
 0x121   : > { %v1679_v15 = vmax.f32 %v1473_v11, 0.0  ;;  %v4185_v16 = vpop.f32.mrb[30].mxu0 }
 0x122   : > { %v1488_v19 = vadd.f32 %v4185_v16, %v876_v9  ;;  %v1482_v20 = vpop.f32.mrb[31].mxu0  ;;  %v347_v9 = vld [vmem:[%s4848_s26 + $0x30] sm:$0xff]  ;;  %v646_v16 = vrot.slane %v618_v5, %v4850_v17 }
 0x123   : > { %v1483_v23 = vadd.f32 %v1482_v20, %v872_v12  ;;  %4284 = vmatprep.mubr.msk.f32.mxu1 %vm1073_vm0, %v1679_v15  ;;  %v924_v15 = vrot.slane %v649_v4, %v4856_v24  ;;  %v658_v18 = vrot.slane %v347_v9, %v4850_v17  ;;  %v920_v20 = vrot.slane %v647_v8, %v4856_v24 }
 0x124   : > { %v1682_v28 = vmax.f32 %v1488_v19, 0.0  ;;  %4285 = vmatmul.mubr.msk.f32.gmra.mrb[28].mxu1 %vm1073_vm0, %v1680_v14  ;;  %v651_v26 = vcombine.high %v347_v9, %v347_v9 }
 0x125   : > { %v1681_v29 = vmax.f32 %v1483_v23, 0.0  ;;  %v4188_v30 = vpop.f32.mrb[32].mxu0  ;;  %v666_v31 = vcombine.high %v658_v18, %v658_v18  ;;  %v674_v45 = vrot.slane %v658_v18, %v4850_v17 }
 0x126   : > { %v1498_v32 = vadd.f32 %v4188_v30, %v884_v21  ;;  %v1492_v33 = vpop.f32.mrb[33].mxu0  ;;  %v632_v21 = vrot.slane %v616_v58, %v4850_v17  ;;  %v650_v30 = vcombine.high %v646_v16, %v646_v16  ;;  %v665_v38 = vrot.slane %v651_v26, %v4850_v17 }
 0x127   : > { %v1493_v36 = vadd.f32 %v1492_v33, %v880_v25  ;;  %4287 = vmatprep.mubr.msk.f32.mxu1 %vm1073_vm0, %v1681_v29  ;;  %v932_v29 = vrot.slane %v646_v16, %v4856_v24 }
 0x128   : > { %v1684_v39 = vmax.f32 %v1498_v32, 0.0  ;;  %4288 = vmatmul.mubr.msk.f32.gmra.mrb[30].mxu1 %vm1073_vm0, %v1682_v28  ;;  %v928_v33 = vrot.slane %v632_v21, %v4856_v24  ;;  %v681_v4 = vrot.slane %v665_v38, %v4850_v17 }
 0x129   : > { %v1683_v40 = vmax.f32 %v1493_v36, 0.0  ;;  %v4191_v41 = vpop.f32.mrb[34].mxu0 }
 0x12a   : > { %v1508_v43 = vadd.f32 %v4191_v41, %v892_v34  ;;  %v1502_v44 = vpop.f32.mrb[35].mxu0  ;;  %v648_v34 = vcombine.high %v632_v21, %v632_v21  ;;  %v940_v41 = vrot.slane %v650_v30, %v4856_v24  ;;  %v697_v16 = vcombine.high %v681_v4, %v681_v4 }
 0x12b   : > { %v1503_v48 = vadd.f32 %v1502_v44, %v888_v37  ;;  %4290 = vmatprep.mubr.msk.f32.mxu1 %vm1073_vm0, %v1683_v40 }
 0x12c   : > { %v1686_v51 = vmax.f32 %v1508_v43, 0.0  ;;  %4291 = vmatmul.mubr.msk.f32.gmra.mrb[32].mxu1 %vm1073_vm0, %v1684_v39  ;;  %v936_v44 = vrot.slane %v648_v34, %v4856_v24 }
 0x12d   : > { %v1685_v52 = vmax.f32 %v1503_v48, 0.0  ;;  %v4194_v53 = vpop.f32.mrb[36].mxu0 }
 0x12e   : > { %v1518_v54 = vadd.f32 %v4194_v53, %v900_v42  ;;  %v1512_v55 = vpop.f32.mrb[37].mxu0  ;;  %v688_v42 = vrot.slane %v666_v31, %v4850_v17 }
 0x12f   : > { %v1513_v59 = vadd.f32 %v1512_v55, %v896_v49  ;;  %4293 = vmatprep.mubr.msk.f32.mxu1 %vm1073_vm0, %v1685_v52  ;;  %v667_v49 = vcombine.high %v665_v38, %v665_v38  ;;  %v944_v55 = vrot.slane %v674_v45, %v4856_v24 }
 0x130   : > { %v1688_v62 = vmax.f32 %v1518_v54, 0.0  ;;  %4294 = vmatmul.mubr.msk.f32.gmra.mrb[34].mxu1 %vm1073_vm0, %v1686_v51  ;;  %v948_v52 = vrot.slane %v688_v42, %v4856_v24  ;;  %v698_v53 = vcombine.high %v688_v42, %v688_v42 }
 0x131   : > { %v1687_v63 = vmax.f32 %v1513_v59, 0.0  ;;  %v4197_v0 = vpop.f32.mrb[38].mxu0  ;;  %v695_v61 = vrot.slane %v667_v49, %v4850_v17 }
 0x132   : > { %v1528_v1 = vadd.f32 %v4197_v0, %v908_v56  ;;  %v1522_v2 = vpop.f32.mrb[39].mxu0  ;;  %v696_v56 = vcombine.high %v674_v45, %v674_v45  ;;  %v956_v0 = vrot.slane %v698_v53, %v4856_v24 }
 0x133   : > { %v1523_v6 = vadd.f32 %v1522_v2, %v904_v60  ;;  %4296 = vmatprep.mubr.msk.f32.mxu1 %vm1073_vm0, %v1687_v63  ;;  %v964_v8 = vrot.slane %v695_v61, %v4856_v24 }
 0x134   : > { %v1690_v10 = vmax.f32 %v1528_v1, 0.0  ;;  %4297 = vmatmul.mubr.msk.f32.gmra.mrb[36].mxu1 %vm1073_vm0, %v1688_v62  ;;  %v707_v1 = vrot.slane %v348_v57, %v4850_v17 }
 0x135   : > { %v1689_v11 = vmax.f32 %v1523_v6, 0.0  ;;  %v4200_v12 = vpop.f32.mrb[40].mxu0 }
 0x136   : > { %v1538_v13 = vadd.f32 %v4200_v12, %v916_v3  ;;  %v1532_v14 = vpop.f32.mrb[41].mxu0  ;;  %v952_v3 = vrot.slane %v696_v56, %v4856_v24  ;;  %v715_v12 = vcombine.high %v707_v1, %v707_v1 }
 0x137   : > { %v1533_v19 = vadd.f32 %v1532_v14, %v912_v7  ;;  %4299 = vmatprep.mubr.msk.f32.mxu1 %vm1073_vm0, %v1689_v11  ;;  %v699_v11 = vcombine.high %v695_v61, %v695_v61 }
 0x138   : > { %v1692_v22 = vmax.f32 %v1538_v13, 0.0  ;;  %4300 = vmatmul.mubr.msk.f32.gmra.mrb[38].mxu1 %vm1073_vm0, %v1690_v10  ;;  %v700_v13 = vcombine.high %v348_v57, %v348_v57 }
 0x139   : > { %v1691_v23 = vmax.f32 %v1533_v19, 0.0  ;;  %v4203_v25 = vpop.f32.mrb[42].mxu0 }
 0x13a   : > { %v1548_v27 = vadd.f32 %v4203_v25, %v924_v15  ;;  %v1542_v28 = vpop.f32.mrb[43].mxu0  ;;  %v960_v15 = vrot.slane %v681_v4, %v4856_v24  ;;  %v737_v25 = vrot.slane %v715_v12, %v4850_v17  ;;  %v714_v26 = vrot.slane %v700_v13, %v4850_v17 }
 0x13b   : > { %v1543_v32 = vadd.f32 %v1542_v28, %v920_v20  ;;  %4302 = vmatprep.mubr.msk.f32.mxu1 %vm1073_vm0, %v1691_v23  ;;  %v972_v23 = vrot.slane %v699_v11, %v4856_v24  ;;  %v968_v28 = vrot.slane %v697_v16, %v4856_v24  ;;  %v5048_v16 = vld [vmem:[%s5978_s5] ss:$0 sm:$0xff] }
 0x13c   : > { %v1694_v35 = vmax.f32 %v1548_v27, 0.0  ;;  %4303 = vmatmul.mubr.msk.f32.gmra.mrb[40].mxu1 %vm1073_vm0, %v1692_v22 }
 0x13d   : > { %v1693_v36 = vmax.f32 %v1543_v32, 0.0  ;;  %v4206_v37 = vpop.f32.mrb[44].mxu0 }
 0x13e   : > { %v1558_v39 = vadd.f32 %v4206_v37, %v932_v29  ;;  %v1552_v40 = vpop.f32.mrb[45].mxu0  ;;  %v723_v29 = vrot.slane %v707_v1, %v4850_v17  ;;  %v716_v37 = vcombine.high %v714_v26, %v714_v26 }
 0x13f   : > { %v1553_v43 = vadd.f32 %v1552_v40, %v928_v33  ;;  %4305 = vmatprep.mubr.msk.f32.mxu1 %vm1073_vm0, %v1693_v36  ;;  %v747_v36 = vcombine.high %v737_v25, %v737_v25 }
 0x140   : > { %v1696_v46 = vmax.f32 %v1558_v39, 0.0  ;;  %4306 = vmatmul.mubr.msk.f32.gmra.mrb[42].mxu1 %vm1073_vm0, %v1694_v35  ;;  %v980_v35 = vrot.slane %v737_v25, %v4856_v24  ;;  %v976_v39 = vrot.slane %v723_v29, %v4856_v24  ;;  %v745_v40 = vcombine.high %v723_v29, %v723_v29 }
 0x141   : > { %v1695_v47 = vmax.f32 %v1553_v43, 0.0  ;;  %v4209_v48 = vpop.f32.mrb[46].mxu0 }
 0x142   : > { %v1568_v50 = vadd.f32 %v4209_v48, %v940_v41  ;;  %v1562_v51 = vpop.f32.mrb[47].mxu0  ;;  %v984_v49 = vrot.slane %v745_v40, %v4856_v24 }
 0x143   : > { %v1563_v54 = vadd.f32 %v1562_v51, %v936_v44  ;;  %4308 = vmatprep.mubr.msk.f32.mxu1 %vm1073_vm0, %v1695_v47  ;;  %v744_v47 = vrot.slane %v716_v37, %v4850_v17 }
 0x144   : > { %v1698_v58 = vmax.f32 %v1568_v50, 0.0  ;;  %4309 = vmatmul.mubr.msk.f32.gmra.mrb[44].mxu1 %vm1073_vm0, %v1696_v46  ;;  %v988_v46 = vrot.slane %v747_v36, %v4856_v24  ;;  %v730_v50 = vrot.slane %v714_v26, %v4850_v17 }
 0x145   : > { %v1697_v59 = vmax.f32 %v1563_v54, 0.0  ;;  %v4212_v60 = vpop.f32.mrb[48].mxu0  ;;  %v996_v56 = vrot.slane %v744_v47, %v4856_v24  ;;  %v748_v57 = vcombine.high %v744_v47, %v744_v47 }
 0x146   : > { %v1578_v62 = vadd.f32 %v4212_v60, %v948_v52  ;;  %v1572_v63 = vpop.f32.mrb[49].mxu0  ;;  %v746_v60 = vcombine.high %v730_v50, %v730_v50 }
 0x147   : > { %v1573_v2 = vadd.f32 %v1572_v63, %v944_v55  ;;  %4311 = vmatprep.mubr.msk.f32.mxu1 %vm1073_vm0, %v1697_v59  ;;  %v992_v59 = vrot.slane %v730_v50, %v4856_v24  ;;  %v1004_v1 = vrot.slane %v748_v57, %v4856_v24 }
 0x148   : > { %v1700_v5 = vmax.f32 %v1578_v62, 0.0  ;;  %4312 = vmatmul.mubr.msk.f32.gmra.mrb[46].mxu1 %vm1073_vm0, %v1698_v58 }
 0x149   : > { %v1699_v6 = vmax.f32 %v1573_v2, 0.0  ;;  %v4215_v7 = vpop.f32.mrb[50].mxu0 }
 0x14a   : > { %v1588_v9 = vadd.f32 %v4215_v7, %v956_v0  ;;  %v1582_v10 = vpop.f32.mrb[51].mxu0 }
 0x14b   : > { %v1583_v14 = vadd.f32 %v1582_v10, %v952_v3  ;;  %4314 = vmatprep.mubr.msk.f32.mxu1 %vm1073_vm0, %v1699_v6  ;;  %v1000_v3 = vrot.slane %v746_v60, %v4856_v24  ;;  %v5041_v24 = vld [vmem:[%s5977_s4] ss:$0 sm:$0xff] }
 0x14c   : > { %v1702_v18 = vmax.f32 %v1588_v9, 0.0  ;;  %4315 = vmatmul.mubr.msk.f32.gmra.mrb[48].mxu1 %vm1073_vm0, %v1700_v5 }
 0x14d   : > { %v1701_v19 = vmax.f32 %v1583_v14, 0.0  ;;  %v4218_v20 = vpop.f32.mrb[52].mxu0 }
 0x14e   : > { %v1598_v21 = vadd.f32 %v4218_v20, %v964_v8  ;;  %v1592_v22 = vpop.f32.mrb[53].mxu0 }
 0x14f   : > { %v1593_v27 = vadd.f32 %v1592_v22, %v960_v15  ;;  %4317 = vmatprep.mubr.msk.f32.mxu1 %vm1073_vm0, %v1701_v19 }
 0x150   : > { %v1704_v30 = vmax.f32 %v1598_v21, 0.0  ;;  %4318 = vmatmul.mubr.msk.f32.gmra.mrb[50].mxu1 %vm1073_vm0, %v1702_v18 }
 0x151   : > { %v1703_v31 = vmax.f32 %v1593_v27, 0.0  ;;  %v4221_v32 = vpop.f32.mrb[54].mxu0 }
 0x152   : > { %v1608_v33 = vadd.f32 %v4221_v32, %v972_v23  ;;  %v1602_v34 = vpop.f32.mrb[55].mxu0 }
 0x153   : > { %v1603_v38 = vadd.f32 %v1602_v34, %v968_v28  ;;  %4320 = vmatprep.mubr.msk.f32.mxu1 %vm1073_vm0, %v1703_v31 }
 0x154   : > { %v1706_v41 = vmax.f32 %v1608_v33, 0.0  ;;  %4321 = vmatmul.mubr.msk.f32.gmra.mrb[52].mxu1 %vm1073_vm0, %v1704_v30 }
 0x155   : > { %v1705_v42 = vmax.f32 %v1603_v38, 0.0  ;;  %v4224_v43 = vpop.f32.mrb[56].mxu0 }
 0x156   : > { %v1618_v44 = vadd.f32 %v4224_v43, %v980_v35  ;;  %v1612_v45 = vpop.f32.mrb[57].mxu0 }
 0x157   : > { %v1613_v48 = vadd.f32 %v1612_v45, %v976_v39  ;;  %4323 = vmatprep.mubr.msk.f32.mxu1 %vm1073_vm0, %v1705_v42 }
 0x158   : > { %v1708_v51 = vmax.f32 %v1618_v44, 0.0  ;;  %4324 = vmatmul.mubr.msk.f32.gmra.mrb[54].mxu1 %vm1073_vm0, %v1706_v41 }
 0x159   : > { %v1707_v52 = vmax.f32 %v1613_v48, 0.0  ;;  %v4227_v53 = vpop.f32.mrb[58].mxu0 }
 0x15a   : > { %v1628_v54 = vadd.f32 %v4227_v53, %v988_v46  ;;  %v1622_v55 = vpop.f32.mrb[59].mxu0 }
 0x15b   : > { %v1623_v58 = vadd.f32 %v1622_v55, %v984_v49  ;;  %4326 = vmatprep.mubr.msk.f32.mxu1 %vm1073_vm0, %v1707_v52 }
 0x15c   : > { %v1710_v61 = vmax.f32 %v1628_v54, 0.0  ;;  %4327 = vmatmul.mubr.msk.f32.gmra.mrb[56].mxu1 %vm1073_vm0, %v1708_v51 }
 0x15d   : > { %v1709_v17 = vmax.f32 %v1623_v58, 0.0  ;;  %v4230_v62 = vpop.f32.mrb[60].mxu0 }
 0x15e   : > { %v1638_v63 = vadd.f32 %v4230_v62, %v996_v56  ;;  %v1632_v0 = vpop.f32.mrb[61].mxu0 }
 0x15f   : > { %v1633_v2 = vadd.f32 %v1632_v0, %v992_v59  ;;  %4329 = vmatprep.mubr.msk.f32.mxu1 %vm1073_vm0, %v1709_v17 }
 0x160   : > { %v1712_v4 = vmax.f32 %v1638_v63, 0.0  ;;  %4330 = vmatmul.mubr.msk.f32.gmra.mrb[58].mxu1 %vm1073_vm0, %v1710_v61 }
 0x161   : > { %v1711_v5 = vmax.f32 %v1633_v2, 0.0  ;;  %v4233_v6 = vpop.f32.mrb[62].mxu0 }
 0x162   : > { %v1648_v7 = vadd.f32 %v4233_v6, %v1004_v1  ;;  %v1642_v8 = vpop.f32.mrb[63].mxu0 }
 0x163   : > { %v1643_v9 = vadd.f32 %v1642_v8, %v1000_v3  ;;  %4332 = vmatprep.mubr.msk.f32.mxu1 %vm1073_vm0, %v1711_v5 }
 0x164   : > { %v1714_v10 = vmax.f32 %v1648_v7, 0.0  ;;  %4333 = vmatmul.mubr.msk.f32.gmra.mrb[60].mxu1 %vm1073_vm0, %v1712_v4 }
 0x165   : > { %v1713_v11 = vmax.f32 %v1643_v9, 0.0 }
 0x167   : > { %4335 = vmatprep.mubr.msk.f32.mxu1 %vm1073_vm0, %v1713_v11 }
 0x168   : > { %4336 = vmatmul.mubr.msk.f32.gmra.mrb[62].mxu1 %vm1073_vm0, %v1714_v10 }
 0x1bf   : > { %v4244_v12 = vpop.f32.mrb[0].mxu1 }
 0x1c0   : > { %v1990_v13 = vadd.f32 %v4244_v12, %v5041_v24  ;;  %v1984_v14 = vpop.f32.mrb[1].mxu1 }
 0x1c1   : > { %v1985_v15 = vadd.f32 %v5041_v24, %v1984_v14 }
 0x1c2   : > { %v2304_v18 = vmax.f32 %v1990_v13, 0.0 }
 0x1c3   : > { %v2303_v19 = vmax.f32 %v1985_v15, 0.0  ;;  %v4247_v20 = vpop.f32.mrb[2].mxu1 }
 0x1c4   : > { %v2000_v21 = vadd.f32 %v4247_v20, %v5041_v24  ;;  %v1994_v22 = vpop.f32.mrb[3].mxu1  ;;  %v2375_v23 = vmul.f32 %v5048_v16, %v2304_v18 }
 0x1c5   : > { %v1995_v25 = vadd.f32 %v5041_v24, %v1994_v22  ;;  %v2374_v28 = vmul.f32 %v5048_v16, %v2303_v19 }
 0x1c6   : > { %v2306_v26 = vmax.f32 %v2000_v21, 0.0  ;;  %v2441_v27 = vsel %vm1073_vm0, %v2375_v23, 0.0 }
 0x1c7   : > { %v2305_v29 = vmax.f32 %v1995_v25, 0.0  ;;  %2442 = vadd.xlane.f32.xlu0 %v2441_v27  ;;  %v4250_v30 = vpop.f32.mrb[4].mxu1  ;;  %v2438_v37 = vsel %vm1073_vm0, %v2374_v28, 0.0 }
 0x1c8   : > { %v2010_v31 = vadd.f32 %v4250_v30, %v5041_v24  ;;  %v2004_v32 = vpop.f32.mrb[5].mxu1  ;;  %v2377_v33 = vmul.f32 %v5048_v16, %v2306_v26 }
 0x1c9   : > { %v2005_v34 = vadd.f32 %v5041_v24, %v2004_v32  ;;  %v2376_v38 = vmul.f32 %v5048_v16, %v2305_v29 }
 0x1ca   : > { %v2308_v35 = vmax.f32 %v2010_v31, 0.0  ;;  %v2447_v36 = vsel %vm1073_vm0, %v2377_v33, 0.0 }
 0x1cb   : > { %v2307_v39 = vmax.f32 %v2005_v34, 0.0  ;;  %2448 = vadd.xlane.f32.xlu1 %v2447_v36  ;;  %v4253_v40 = vpop.f32.mrb[6].mxu1  ;;  %2439 = vadd.xlane.f32.xlu0 %v2438_v37  ;;  %v2444_v46 = vsel %vm1073_vm0, %v2376_v38, 0.0 }
 0x1cc   : > { %v2020_v41 = vadd.f32 %v4253_v40, %v5041_v24  ;;  %v2014_v42 = vpop.f32.mrb[7].mxu1  ;;  %v2379_v47 = vmul.f32 %v5048_v16, %v2308_v35 }
 0x1cd   : > { %v2015_v43 = vadd.f32 %v5041_v24, %v2014_v42  ;;  %v2378_v44 = vmul.f32 %v5048_v16, %v2307_v39 }
 0x1ce   : > { %v2310_v45 = vmax.f32 %v2020_v41, 0.0  ;;  %v2453_v56 = vsel %vm1073_vm0, %v2379_v47, 0.0 }
 0x1cf   : > { %v2309_v48 = vmax.f32 %v2015_v43, 0.0  ;;  %v4256_v49 = vpop.f32.mrb[8].mxu1  ;;  %2445 = vadd.xlane.f32.xlu1 %v2444_v46  ;;  %v2450_v50 = vsel %vm1073_vm0, %v2378_v44, 0.0 }
 0x1d0   : > { %v2030_v51 = vadd.f32 %v4256_v49, %v5041_v24  ;;  %v2024_v52 = vpop.f32.mrb[9].mxu1  ;;  %2451 = vadd.xlane.f32.xlu0 %v2450_v50  ;;  %v2381_v57 = vmul.f32 %v5048_v16, %v2310_v45 }
 0x1d1   : > { %v2025_v53 = vadd.f32 %v5041_v24, %v2024_v52  ;;  %v2380_v54 = vmul.f32 %v5048_v16, %v2309_v48 }
 0x1d2   : > { %v2312_v55 = vmax.f32 %v2030_v51, 0.0  ;;  %v2459_v1 = vsel %vm1073_vm0, %v2381_v57, 0.0 }
 0x1d3   : > { %v2311_v58 = vmax.f32 %v2025_v53, 0.0  ;;  %v4259_v59 = vpop.f32.mrb[10].mxu1  ;;  %2454 = vadd.xlane.f32.xlu1 %v2453_v56  ;;  %v2456_v60 = vsel %vm1073_vm0, %v2380_v54, 0.0 }
 0x1d4   : > { %v2040_v61 = vadd.f32 %v4259_v59, %v5041_v24  ;;  %v2034_v17 = vpop.f32.mrb[11].mxu1  ;;  %2457 = vadd.xlane.f32.xlu0 %v2456_v60  ;;  %v2383_v2 = vmul.f32 %v5048_v16, %v2312_v55 }
 0x1d5   : > { %v2035_v62 = vadd.f32 %v5041_v24, %v2034_v17  ;;  %v2382_v63 = vmul.f32 %v5048_v16, %v2311_v58 }
 0x1d6   : > { %v2314_v0 = vmax.f32 %v2040_v61, 0.0  ;;  %v2465_v11 = vsel %vm1073_vm0, %v2383_v2, 0.0 }
 0x1d7   : > { %v2313_v3 = vmax.f32 %v2035_v62, 0.0  ;;  %v4262_v4 = vpop.f32.mrb[12].mxu1  ;;  %2460 = vadd.xlane.f32.xlu1 %v2459_v1  ;;  %v2462_v5 = vsel %vm1073_vm0, %v2382_v63, 0.0 }
 0x1d8   : > { %v2050_v6 = vadd.f32 %v4262_v4, %v5041_v24  ;;  %v2044_v7 = vpop.f32.mrb[13].mxu1  ;;  %2463 = vadd.xlane.f32.xlu0 %v2462_v5  ;;  %v2385_v12 = vmul.f32 %v5048_v16, %v2314_v0 }
 0x1d9   : > { %v2045_v8 = vadd.f32 %v5041_v24, %v2044_v7  ;;  %v2384_v9 = vmul.f32 %v5048_v16, %v2313_v3 }
 0x1da   : > { %v2316_v10 = vmax.f32 %v2050_v6, 0.0  ;;  %v2471_v23 = vsel %vm1073_vm0, %v2385_v12, 0.0 }
 0x1db   : > { %v2315_v13 = vmax.f32 %v2045_v8, 0.0  ;;  %v4265_v14 = vpop.f32.mrb[14].mxu1  ;;  %2466 = vadd.xlane.f32.xlu1 %v2465_v11  ;;  %v2468_v15 = vsel %vm1073_vm0, %v2384_v9, 0.0 }
 0x1dc   : > { %v2060_v18 = vadd.f32 %v4265_v14, %v5041_v24  ;;  %v2054_v19 = vpop.f32.mrb[15].mxu1  ;;  %2469 = vadd.xlane.f32.xlu0 %v2468_v15  ;;  %v2387_v25 = vmul.f32 %v5048_v16, %v2316_v10 }
 0x1dd   : > { %v2055_v20 = vadd.f32 %v5041_v24, %v2054_v19  ;;  %v2386_v21 = vmul.f32 %v5048_v16, %v2315_v13 }
 0x1de   : > { %v2318_v22 = vmax.f32 %v2060_v18, 0.0  ;;  %v2477_v34 = vsel %vm1073_vm0, %v2387_v25, 0.0 }
 0x1df   : > { %v2317_v26 = vmax.f32 %v2055_v20, 0.0  ;;  %v4268_v27 = vpop.f32.mrb[16].mxu1  ;;  %2472 = vadd.xlane.f32.xlu1 %v2471_v23  ;;  %v2474_v28 = vsel %vm1073_vm0, %v2386_v21, 0.0 }
 0x1e0   : > { %v2070_v29 = vadd.f32 %v4268_v27, %v5041_v24  ;;  %v2064_v30 = vpop.f32.mrb[17].mxu1  ;;  %2475 = vadd.xlane.f32.xlu0 %v2474_v28  ;;  %v2389_v35 = vmul.f32 %v5048_v16, %v2318_v22 }
 0x1e1   : > { %v2065_v31 = vadd.f32 %v5041_v24, %v2064_v30  ;;  %v2388_v32 = vmul.f32 %v5048_v16, %v2317_v26 }
 0x1e2   : > { %v2320_v33 = vmax.f32 %v2070_v29, 0.0  ;;  %v2483_v44 = vsel %vm1073_vm0, %v2389_v35, 0.0 }
 0x1e3   : > { %v2319_v36 = vmax.f32 %v2065_v31, 0.0  ;;  %v4271_v37 = vpop.f32.mrb[18].mxu1  ;;  %2478 = vadd.xlane.f32.xlu1 %v2477_v34  ;;  %v2480_v38 = vsel %vm1073_vm0, %v2388_v32, 0.0 }
 0x1e4   : > { %v2080_v39 = vadd.f32 %v4271_v37, %v5041_v24  ;;  %v2074_v40 = vpop.f32.mrb[19].mxu1  ;;  %2481 = vadd.xlane.f32.xlu0 %v2480_v38  ;;  %v2391_v45 = vmul.f32 %v5048_v16, %v2320_v33 }
 0x1e5   : > { %v2075_v41 = vadd.f32 %v5041_v24, %v2074_v40  ;;  %v2390_v42 = vmul.f32 %v5048_v16, %v2319_v36 }
 0x1e6   : > { %v2322_v43 = vmax.f32 %v2080_v39, 0.0  ;;  %v2489_v54 = vsel %vm1073_vm0, %v2391_v45, 0.0 }
 0x1e7   : > { %v2321_v46 = vmax.f32 %v2075_v41, 0.0  ;;  %v4274_v47 = vpop.f32.mrb[20].mxu1  ;;  %2484 = vadd.xlane.f32.xlu1 %v2483_v44  ;;  %v2486_v48 = vsel %vm1073_vm0, %v2390_v42, 0.0 }
 0x1e8   : > { %v2090_v49 = vadd.f32 %v4274_v47, %v5041_v24  ;;  %v2084_v50 = vpop.f32.mrb[21].mxu1  ;;  %2487 = vadd.xlane.f32.xlu0 %v2486_v48  ;;  %v2393_v55 = vmul.f32 %v5048_v16, %v2322_v43 }
 0x1e9   : > { %v2085_v51 = vadd.f32 %v5041_v24, %v2084_v50  ;;  %v2392_v52 = vmul.f32 %v5048_v16, %v2321_v46 }
 0x1ea   : > { %v2324_v53 = vmax.f32 %v2090_v49, 0.0  ;;  %v2495_v63 = vsel %vm1073_vm0, %v2393_v55, 0.0 }
 0x1eb   : > { %v2323_v56 = vmax.f32 %v2085_v51, 0.0  ;;  %v4277_v57 = vpop.f32.mrb[22].mxu1  ;;  %2490 = vadd.xlane.f32.xlu1 %v2489_v54  ;;  %v2492_v58 = vsel %vm1073_vm0, %v2392_v52, 0.0 }
 0x1ec   : > { %v2100_v59 = vadd.f32 %v4277_v57, %v5041_v24  ;;  %v2094_v60 = vpop.f32.mrb[23].mxu1  ;;  %2493 = vadd.xlane.f32.xlu0 %v2492_v58  ;;  %v2395_v0 = vmul.f32 %v5048_v16, %v2324_v53 }
 0x1ed   : > { %v2095_v61 = vadd.f32 %v5041_v24, %v2094_v60  ;;  %v2394_v17 = vmul.f32 %v5048_v16, %v2323_v56 }
 0x1ee   : > { %v2326_v62 = vmax.f32 %v2100_v59, 0.0  ;;  %v2501_v9 = vsel %vm1073_vm0, %v2395_v0, 0.0 }
 0x1ef   : > { %v2325_v1 = vmax.f32 %v2095_v61, 0.0  ;;  %v4280_v2 = vpop.f32.mrb[24].mxu1  ;;  %2496 = vadd.xlane.f32.xlu1 %v2495_v63  ;;  %v2498_v3 = vsel %vm1073_vm0, %v2394_v17, 0.0 }
 0x1f0   : > { %v2110_v4 = vadd.f32 %v4280_v2, %v5041_v24  ;;  %v2104_v5 = vpop.f32.mrb[25].mxu1  ;;  %2499 = vadd.xlane.f32.xlu0 %v2498_v3  ;;  %v2397_v10 = vmul.f32 %v5048_v16, %v2326_v62 }
 0x1f1   : > { %v2105_v6 = vadd.f32 %v5041_v24, %v2104_v5  ;;  %v2396_v7 = vmul.f32 %v5048_v16, %v2325_v1 }
 0x1f2   : > { %v2328_v8 = vmax.f32 %v2110_v4, 0.0  ;;  %v2507_v21 = vsel %vm1073_vm0, %v2397_v10, 0.0 }
 0x1f3   : > { %v2327_v11 = vmax.f32 %v2105_v6, 0.0  ;;  %v4283_v12 = vpop.f32.mrb[26].mxu1  ;;  %2502 = vadd.xlane.f32.xlu1 %v2501_v9  ;;  %v2504_v13 = vsel %vm1073_vm0, %v2396_v7, 0.0 }
 0x1f4   : > { %v2120_v14 = vadd.f32 %v4283_v12, %v5041_v24  ;;  %v2114_v15 = vpop.f32.mrb[27].mxu1  ;;  %2505 = vadd.xlane.f32.xlu0 %v2504_v13  ;;  %v2399_v22 = vmul.f32 %v5048_v16, %v2328_v8 }
 0x1f5   : > { %v2115_v18 = vadd.f32 %v5041_v24, %v2114_v15  ;;  %v2398_v19 = vmul.f32 %v5048_v16, %v2327_v11 }
 0x1f6   : > { %v2330_v20 = vmax.f32 %v2120_v14, 0.0  ;;  %v2513_v32 = vsel %vm1073_vm0, %v2399_v22, 0.0 }
 0x1f7   : > { %v2329_v23 = vmax.f32 %v2115_v18, 0.0  ;;  %v4286_v25 = vpop.f32.mrb[28].mxu1  ;;  %2508 = vadd.xlane.f32.xlu1 %v2507_v21  ;;  %v2510_v26 = vsel %vm1073_vm0, %v2398_v19, 0.0 }
 0x1f8   : > { %v2130_v27 = vadd.f32 %v4286_v25, %v5041_v24  ;;  %v2124_v28 = vpop.f32.mrb[29].mxu1  ;;  %2511 = vadd.xlane.f32.xlu0 %v2510_v26  ;;  %v2401_v33 = vmul.f32 %v5048_v16, %v2330_v20 }
 0x1f9   : > { %v2125_v29 = vadd.f32 %v5041_v24, %v2124_v28  ;;  %v2400_v30 = vmul.f32 %v5048_v16, %v2329_v23 }
 0x1fa   : > { %v2332_v31 = vmax.f32 %v2130_v27, 0.0  ;;  %v2519_v42 = vsel %vm1073_vm0, %v2401_v33, 0.0 }
 0x1fb   : > { %v2331_v34 = vmax.f32 %v2125_v29, 0.0  ;;  %v4289_v35 = vpop.f32.mrb[30].mxu1  ;;  %2514 = vadd.xlane.f32.xlu1 %v2513_v32  ;;  %v2516_v36 = vsel %vm1073_vm0, %v2400_v30, 0.0 }
 0x1fc   : > { %v2140_v37 = vadd.f32 %v4289_v35, %v5041_v24  ;;  %v2134_v38 = vpop.f32.mrb[31].mxu1  ;;  %2517 = vadd.xlane.f32.xlu0 %v2516_v36  ;;  %v2403_v43 = vmul.f32 %v5048_v16, %v2332_v31 }
 0x1fd   : > { %v2135_v39 = vadd.f32 %v5041_v24, %v2134_v38  ;;  %v2402_v40 = vmul.f32 %v5048_v16, %v2331_v34 }
 0x1fe   : > { %v2334_v41 = vmax.f32 %v2140_v37, 0.0  ;;  %v2525_v52 = vsel %vm1073_vm0, %v2403_v43, 0.0 }
 0x1ff   : > { %v2333_v44 = vmax.f32 %v2135_v39, 0.0  ;;  %v4292_v45 = vpop.f32.mrb[32].mxu1  ;;  %2520 = vadd.xlane.f32.xlu1 %v2519_v42  ;;  %v2522_v46 = vsel %vm1073_vm0, %v2402_v40, 0.0 }
 0x200   : > { %v2150_v47 = vadd.f32 %v4292_v45, %v5041_v24  ;;  %v2144_v48 = vpop.f32.mrb[33].mxu1  ;;  %2523 = vadd.xlane.f32.xlu0 %v2522_v46  ;;  %v2405_v53 = vmul.f32 %v5048_v16, %v2334_v41 }
 0x201   : > { %v2145_v49 = vadd.f32 %v5041_v24, %v2144_v48  ;;  %v2404_v50 = vmul.f32 %v5048_v16, %v2333_v44 }
 0x202   : > { %v2336_v51 = vmax.f32 %v2150_v47, 0.0  ;;  %v2531_v17 = vsel %vm1073_vm0, %v2405_v53, 0.0 }
 0x203   : > { %v2335_v54 = vmax.f32 %v2145_v49, 0.0  ;;  %v4295_v55 = vpop.f32.mrb[34].mxu1  ;;  %2526 = vadd.xlane.f32.xlu1 %v2525_v52  ;;  %v2528_v56 = vsel %vm1073_vm0, %v2404_v50, 0.0 }
 0x204   : > { %v2160_v57 = vadd.f32 %v4295_v55, %v5041_v24  ;;  %v2154_v58 = vpop.f32.mrb[35].mxu1  ;;  %2529 = vadd.xlane.f32.xlu0 %v2528_v56  ;;  %v2407_v62 = vmul.f32 %v5048_v16, %v2336_v51 }
 0x205   : > { %v2155_v59 = vadd.f32 %v5041_v24, %v2154_v58  ;;  %v2406_v60 = vmul.f32 %v5048_v16, %v2335_v54 }
 0x206   : > { %v2338_v61 = vmax.f32 %v2160_v57, 0.0  ;;  %v2537_v7 = vsel %vm1073_vm0, %v2407_v62, 0.0 }
 0x207   : > { %v2337_v63 = vmax.f32 %v2155_v59, 0.0  ;;  %v4298_v0 = vpop.f32.mrb[36].mxu1  ;;  %2532 = vadd.xlane.f32.xlu1 %v2531_v17  ;;  %v2534_v1 = vsel %vm1073_vm0, %v2406_v60, 0.0 }
 0x208   : > { %v2170_v2 = vadd.f32 %v4298_v0, %v5041_v24  ;;  %v2164_v3 = vpop.f32.mrb[37].mxu1  ;;  %2535 = vadd.xlane.f32.xlu0 %v2534_v1  ;;  %v2409_v8 = vmul.f32 %v5048_v16, %v2338_v61 }
 0x209   : > { %v2165_v4 = vadd.f32 %v5041_v24, %v2164_v3  ;;  %v2408_v5 = vmul.f32 %v5048_v16, %v2337_v63 }
 0x20a   : > { %v2340_v6 = vmax.f32 %v2170_v2, 0.0  ;;  %v2543_v19 = vsel %vm1073_vm0, %v2409_v8, 0.0 }
 0x20b   : > { %v2339_v9 = vmax.f32 %v2165_v4, 0.0  ;;  %v4301_v10 = vpop.f32.mrb[38].mxu1  ;;  %2538 = vadd.xlane.f32.xlu1 %v2537_v7  ;;  %v2540_v11 = vsel %vm1073_vm0, %v2408_v5, 0.0 }
 0x20c   : > { %v2180_v12 = vadd.f32 %v4301_v10, %v5041_v24  ;;  %v2174_v13 = vpop.f32.mrb[39].mxu1  ;;  %2541 = vadd.xlane.f32.xlu0 %v2540_v11  ;;  %v2411_v20 = vmul.f32 %v5048_v16, %v2340_v6 }
 0x20d   : > { %v2175_v14 = vadd.f32 %v5041_v24, %v2174_v13  ;;  %v2410_v15 = vmul.f32 %v5048_v16, %v2339_v9 }
 0x20e   : > { %v2342_v18 = vmax.f32 %v2180_v12, 0.0  ;;  %v2549_v30 = vsel %vm1073_vm0, %v2411_v20, 0.0 }
 0x20f   : > { %v2341_v21 = vmax.f32 %v2175_v14, 0.0  ;;  %v4304_v22 = vpop.f32.mrb[40].mxu1  ;;  %2544 = vadd.xlane.f32.xlu1 %v2543_v19  ;;  %v2546_v23 = vsel %vm1073_vm0, %v2410_v15, 0.0 }
 0x210   : > { %v2190_v25 = vadd.f32 %v4304_v22, %v5041_v24  ;;  %v2184_v26 = vpop.f32.mrb[41].mxu1  ;;  %2547 = vadd.xlane.f32.xlu0 %v2546_v23  ;;  %v2413_v31 = vmul.f32 %v5048_v16, %v2342_v18 }
 0x211   : > { %v2185_v27 = vadd.f32 %v5041_v24, %v2184_v26  ;;  %v2412_v28 = vmul.f32 %v5048_v16, %v2341_v21 }
 0x212   : > { %v2344_v29 = vmax.f32 %v2190_v25, 0.0  ;;  %v2555_v40 = vsel %vm1073_vm0, %v2413_v31, 0.0 }
 0x213   : > { %v2343_v32 = vmax.f32 %v2185_v27, 0.0  ;;  %v4307_v33 = vpop.f32.mrb[42].mxu1  ;;  %2550 = vadd.xlane.f32.xlu1 %v2549_v30  ;;  %v2552_v34 = vsel %vm1073_vm0, %v2412_v28, 0.0 }
 0x214   : > { %v2200_v35 = vadd.f32 %v4307_v33, %v5041_v24  ;;  %v2194_v36 = vpop.f32.mrb[43].mxu1  ;;  %2553 = vadd.xlane.f32.xlu0 %v2552_v34  ;;  %v2415_v41 = vmul.f32 %v5048_v16, %v2344_v29 }
 0x215   : > { %v2195_v37 = vadd.f32 %v5041_v24, %v2194_v36  ;;  %v2414_v38 = vmul.f32 %v5048_v16, %v2343_v32 }
 0x216   : > { %v2346_v39 = vmax.f32 %v2200_v35, 0.0  ;;  %v2561_v50 = vsel %vm1073_vm0, %v2415_v41, 0.0 }
 0x217   : > { %v2345_v42 = vmax.f32 %v2195_v37, 0.0  ;;  %v4310_v43 = vpop.f32.mrb[44].mxu1  ;;  %2556 = vadd.xlane.f32.xlu1 %v2555_v40  ;;  %v2558_v44 = vsel %vm1073_vm0, %v2414_v38, 0.0 }
 0x218   : > { %v2210_v45 = vadd.f32 %v4310_v43, %v5041_v24  ;;  %v2204_v46 = vpop.f32.mrb[45].mxu1  ;;  %2559 = vadd.xlane.f32.xlu0 %v2558_v44  ;;  %v2417_v51 = vmul.f32 %v5048_v16, %v2346_v39 }
 0x219   : > { %v2205_v47 = vadd.f32 %v5041_v24, %v2204_v46  ;;  %v2416_v48 = vmul.f32 %v5048_v16, %v2345_v42 }
 0x21a   : > { %v2348_v49 = vmax.f32 %v2210_v45, 0.0  ;;  %v2567_v60 = vsel %vm1073_vm0, %v2417_v51, 0.0 }
 0x21b   : > { %v2347_v52 = vmax.f32 %v2205_v47, 0.0  ;;  %v4313_v53 = vpop.f32.mrb[46].mxu1  ;;  %2562 = vadd.xlane.f32.xlu1 %v2561_v50  ;;  %v2564_v54 = vsel %vm1073_vm0, %v2416_v48, 0.0 }
 0x21c   : > { %v2220_v55 = vadd.f32 %v4313_v53, %v5041_v24  ;;  %v2214_v56 = vpop.f32.mrb[47].mxu1  ;;  %2565 = vadd.xlane.f32.xlu0 %v2564_v54  ;;  %v2419_v61 = vmul.f32 %v5048_v16, %v2348_v49 }
 0x21d   : > { %v2215_v57 = vadd.f32 %v5041_v24, %v2214_v56  ;;  %v2418_v58 = vmul.f32 %v5048_v16, %v2347_v52 }
 0x21e   : > { %v2350_v59 = vmax.f32 %v2220_v55, 0.0  ;;  %v2573_v5 = vsel %vm1073_vm0, %v2419_v61, 0.0 }
 0x21f   : > { %v2349_v17 = vmax.f32 %v2215_v57, 0.0  ;;  %v4316_v62 = vpop.f32.mrb[48].mxu1  ;;  %2568 = vadd.xlane.f32.xlu1 %v2567_v60  ;;  %v2570_v63 = vsel %vm1073_vm0, %v2418_v58, 0.0 }
 0x220   : > { %v2230_v0 = vadd.f32 %v4316_v62, %v5041_v24  ;;  %v2224_v1 = vpop.f32.mrb[49].mxu1  ;;  %2571 = vadd.xlane.f32.xlu0 %v2570_v63  ;;  %v2421_v6 = vmul.f32 %v5048_v16, %v2350_v59 }
 0x221   : > { %v2225_v2 = vadd.f32 %v5041_v24, %v2224_v1  ;;  %v2420_v3 = vmul.f32 %v5048_v16, %v2349_v17 }
 0x222   : > { %v2352_v4 = vmax.f32 %v2230_v0, 0.0  ;;  %v2579_v15 = vsel %vm1073_vm0, %v2421_v6, 0.0 }
 0x223   : > { %v2351_v7 = vmax.f32 %v2225_v2, 0.0  ;;  %v4319_v8 = vpop.f32.mrb[50].mxu1  ;;  %2574 = vadd.xlane.f32.xlu1 %v2573_v5  ;;  %v2576_v9 = vsel %vm1073_vm0, %v2420_v3, 0.0 }
 0x224   : > { %v2240_v10 = vadd.f32 %v4319_v8, %v5041_v24  ;;  %v2234_v11 = vpop.f32.mrb[51].mxu1  ;;  %2577 = vadd.xlane.f32.xlu0 %v2576_v9  ;;  %v2423_v18 = vmul.f32 %v5048_v16, %v2352_v4 }
 0x225   : > { %v2235_v12 = vadd.f32 %v5041_v24, %v2234_v11  ;;  %v2422_v13 = vmul.f32 %v5048_v16, %v2351_v7 }
 0x226   : > { %v2354_v14 = vmax.f32 %v2240_v10, 0.0  ;;  %v2585_v28 = vsel %vm1073_vm0, %v2423_v18, 0.0 }
 0x227   : > { %v2353_v19 = vmax.f32 %v2235_v12, 0.0  ;;  %v4322_v20 = vpop.f32.mrb[52].mxu1  ;;  %2580 = vadd.xlane.f32.xlu1 %v2579_v15  ;;  %v2582_v21 = vsel %vm1073_vm0, %v2422_v13, 0.0 }
 0x228   : > { %v2250_v22 = vadd.f32 %v4322_v20, %v5041_v24  ;;  %v2244_v23 = vpop.f32.mrb[53].mxu1  ;;  %2583 = vadd.xlane.f32.xlu0 %v2582_v21  ;;  %v2425_v29 = vmul.f32 %v5048_v16, %v2354_v14 }
 0x229   : > { %v2245_v25 = vadd.f32 %v5041_v24, %v2244_v23  ;;  %v2424_v26 = vmul.f32 %v5048_v16, %v2353_v19 }
 0x22a   : > { %v2356_v27 = vmax.f32 %v2250_v22, 0.0  ;;  %v2591_v38 = vsel %vm1073_vm0, %v2425_v29, 0.0 }
 0x22b   : > { %v2355_v30 = vmax.f32 %v2245_v25, 0.0  ;;  %v4325_v31 = vpop.f32.mrb[54].mxu1  ;;  %2586 = vadd.xlane.f32.xlu1 %v2585_v28  ;;  %v2588_v32 = vsel %vm1073_vm0, %v2424_v26, 0.0 }
 0x22c   : > { %v2260_v33 = vadd.f32 %v4325_v31, %v5041_v24  ;;  %v2254_v34 = vpop.f32.mrb[55].mxu1  ;;  %2589 = vadd.xlane.f32.xlu0 %v2588_v32  ;;  %v2427_v39 = vmul.f32 %v5048_v16, %v2356_v27 }
 0x22d   : > { %v2255_v35 = vadd.f32 %v5041_v24, %v2254_v34  ;;  %v2426_v36 = vmul.f32 %v5048_v16, %v2355_v30 }
 0x22e   : > { %v2358_v37 = vmax.f32 %v2260_v33, 0.0  ;;  %v2597_v48 = vsel %vm1073_vm0, %v2427_v39, 0.0 }
 0x22f   : > { %v2357_v40 = vmax.f32 %v2255_v35, 0.0  ;;  %v4328_v41 = vpop.f32.mrb[56].mxu1  ;;  %2592 = vadd.xlane.f32.xlu1 %v2591_v38  ;;  %v2594_v42 = vsel %vm1073_vm0, %v2426_v36, 0.0 }
 0x230   : > { %v2270_v43 = vadd.f32 %v4328_v41, %v5041_v24  ;;  %v2264_v44 = vpop.f32.mrb[57].mxu1  ;;  %2595 = vadd.xlane.f32.xlu0 %v2594_v42  ;;  %v2429_v49 = vmul.f32 %v5048_v16, %v2358_v37 }
 0x231   : > { %v2265_v45 = vadd.f32 %v5041_v24, %v2264_v44  ;;  %v2428_v46 = vmul.f32 %v5048_v16, %v2357_v40 }
 0x232   : > { %v2360_v47 = vmax.f32 %v2270_v43, 0.0  ;;  %v2603_v58 = vsel %vm1073_vm0, %v2429_v49, 0.0 }
 0x233   : > { %v2359_v50 = vmax.f32 %v2265_v45, 0.0  ;;  %v4331_v51 = vpop.f32.mrb[58].mxu1  ;;  %2598 = vadd.xlane.f32.xlu1 %v2597_v48  ;;  %v2600_v52 = vsel %vm1073_vm0, %v2428_v46, 0.0 }
 0x234   : > { %v2280_v53 = vadd.f32 %v4331_v51, %v5041_v24  ;;  %v2274_v54 = vpop.f32.mrb[59].mxu1  ;;  %2601 = vadd.xlane.f32.xlu0 %v2600_v52  ;;  %v2431_v59 = vmul.f32 %v5048_v16, %v2360_v47 }
 0x235   : > { %v2275_v55 = vadd.f32 %v5041_v24, %v2274_v54  ;;  %v2430_v56 = vmul.f32 %v5048_v16, %v2359_v50 }
 0x236   : > { %v2362_v57 = vmax.f32 %v2280_v53, 0.0  ;;  %v2609_v3 = vsel %vm1073_vm0, %v2431_v59, 0.0 }
 0x237   : > { %v2361_v60 = vmax.f32 %v2275_v55, 0.0  ;;  %v4334_v61 = vpop.f32.mrb[60].mxu1  ;;  %2604 = vadd.xlane.f32.xlu1 %v2603_v58  ;;  %v2606_v17 = vsel %vm1073_vm0, %v2430_v56, 0.0 }
 0x238   : > { %v2290_v62 = vadd.f32 %v4334_v61, %v5041_v24  ;;  %v2284_v63 = vpop.f32.mrb[61].mxu1  ;;  %2607 = vadd.xlane.f32.xlu0 %v2606_v17  ;;  %v2433_v4 = vmul.f32 %v5048_v16, %v2362_v57 }
 0x239   : > { %v2285_v0 = vadd.f32 %v5041_v24, %v2284_v63  ;;  %v2432_v1 = vmul.f32 %v5048_v16, %v2361_v60 }
 0x23a   : > { %v2364_v2 = vmax.f32 %v2290_v62, 0.0  ;;  %v2615_v13 = vsel %vm1073_vm0, %v2433_v4, 0.0 }
 0x23b   : > { %v2363_v5 = vmax.f32 %v2285_v0, 0.0  ;;  %v4337_v6 = vpop.f32.mrb[62].mxu1  ;;  %2610 = vadd.xlane.f32.xlu1 %v2609_v3  ;;  %v2612_v7 = vsel %vm1073_vm0, %v2432_v1, 0.0 }
 0x23c   : > { %v2300_v8 = vadd.f32 %v4337_v6, %v5041_v24  ;;  %v2294_v9 = vpop.f32.mrb[63].mxu1  ;;  %2613 = vadd.xlane.f32.xlu0 %v2612_v7  ;;  %v2435_v14 = vmul.f32 %v5048_v16, %v2364_v2 }
 0x23d   : > { %v2295_v10 = vadd.f32 %v5041_v24, %v2294_v9  ;;  %v2434_v11 = vmul.f32 %v5048_v16, %v2363_v5 }
 0x23e   : > { %v2366_v12 = vmax.f32 %v2300_v8, 0.0  ;;  %v2621_v20 = vsel %vm1073_vm0, %v2435_v14, 0.0 }
 0x23f   : > { %v2365_v15 = vmax.f32 %v2295_v10, 0.0  ;;  %2616 = vadd.xlane.f32.xlu1 %v2615_v13  ;;  %v2618_v18 = vsel %vm1073_vm0, %v2434_v11, 0.0 }
 0x240   : > { %2619 = vadd.xlane.f32.xlu0 %v2618_v18  ;;  %v2437_v21 = vmul.f32 %v5048_v16, %v2366_v12 }
 0x241   : > { %v2436_v19 = vmul.f32 %v5048_v16, %v2365_v15 }
 0x242   : > { %v2627_v22 = vsel %vm1073_vm0, %v2437_v21, 0.0 }
 0x243   : > { %2622 = vadd.xlane.f32.xlu1 %v2621_v20  ;;  %v2624_v24 = vsel %vm1073_vm0, %v2436_v19, 0.0 }
 0x244   : > { %2625 = vadd.xlane.f32.xlu0 %v2624_v24 }
 0x247   : > { %2628 = vadd.xlane.f32.xlu1 %v2627_v22 }
 0x254   : > { %v2443_v23 = vpop.xlane.xlu0 %2442 }
 0x255   : > { %v2636_v25 = vrot.slane %v2443_v23, 4 }
 0x257   : > { %v2637_v26 = vmax.f32 %v2443_v23, %v2636_v25 }
 0x258   : > { %v2449_v27 = vpop.xlane.xlu1 %2448  ;;  %v2440_v28 = vpop.xlane.xlu0 %2439 }
 0x259   : > { %v2638_v29 = vrot.slane %v2637_v26, 2  ;;  %v2648_v30 = vrot.slane %v2449_v27, 4  ;;  %v2630_v31 = vrot.slane %v2440_v28, 4 }
 0x25b   : > { %v2639_v32 = vmax.f32 %v2637_v26, %v2638_v29  ;;  %v2649_v33 = vmax.f32 %v2449_v27, %v2648_v30  ;;  %v2631_v34 = vmax.f32 %v2440_v28, %v2630_v31 }
 0x25c   : > { %v2446_v35 = vpop.xlane.xlu1 %2445 }
 0x25d   : > { %v2640_v16 = vrot.slane %v2639_v32, 1  ;;  %v2650_v36 = vrot.slane %v2649_v33, 2  ;;  %v2632_v37 = vrot.slane %v2631_v34, 2  ;;  %v2642_v38 = vrot.slane %v2446_v35, 4  ;;  %v2452_v39 = vpop.xlane.xlu0 %2451 }
 0x25e   : > { %v2654_v40 = vrot.slane %v2452_v39, 4 }
 0x25f   : > { %v2641_v41 = vmax.f32 %v2639_v32, %v2640_v16  ;;  %v2651_v42 = vmax.f32 %v2649_v33, %v2650_v36  ;;  %v2633_v43 = vmax.f32 %v2631_v34, %v2632_v37  ;;  %v2643_v44 = vmax.f32 %v2446_v35, %v2642_v38 }
 0x260   : > { %v2655_v45 = vmax.f32 %v2452_v39, %v2654_v40  ;;  %v5240_v46 = vpop.xlane.xlu1 %2454 }
 0x261   : > { %v3015_v47 = vsub.f32 %v2443_v23, %v2641_v41  ;;  %v2652_v48 = vrot.slane %v2651_v42, 1  ;;  %v2634_v49 = vrot.slane %v2633_v43, 1  ;;  %v2644_v50 = vrot.slane %v2643_v44, 2  ;;  %v5242_v51 = vpop.xlane.xlu0 %2457 }
 0x262   : > { %v2656_v52 = vrot.slane %v2655_v45, 2  ;;  %v2660_v53 = vrot.slane %v5240_v46, 4  ;;  %v2666_v54 = vrot.slane %v5242_v51, 4 }
 0x263   : > { %v3080_v55 = vmul.f32 1.442695, %v3015_v47  ;;  %v2653_v56 = vmax.f32 %v2651_v42, %v2652_v48  ;;  %v2635_v57 = vmax.f32 %v2633_v43, %v2634_v49  ;;  %v2645_v58 = vmax.f32 %v2643_v44, %v2644_v50 }
 0x264   : > { %v2657_v59 = vmax.f32 %v2655_v45, %v2656_v52  ;;  %v2661_v60 = vmax.f32 %v5240_v46, %v2660_v53  ;;  %v2667_v61 = vmax.f32 %v5242_v51, %v2666_v54  ;;  %v5248_v17 = vpop.xlane.xlu1 %2460 }
 0x265   : > { %4371 = vpow2.f32 %v3080_v55  ;;  %v3017_v62 = vsub.f32 %v2449_v27, %v2653_v56  ;;  %v3014_v63 = vsub.f32 %v2440_v28, %v2635_v57  ;;  %v2646_v0 = vrot.slane %v2645_v58, 1  ;;  %v5250_v1 = vpop.xlane.xlu0 %2463 }
 0x266   : > { %v2658_v2 = vrot.slane %v2657_v59, 1  ;;  %v2662_v3 = vrot.slane %v2661_v60, 2  ;;  %v2668_v4 = vrot.slane %v2667_v61, 2  ;;  %v2672_v5 = vrot.slane %v5248_v17, 4 }
 0x267   : > { %v3084_v6 = vmul.f32 1.442695, %v3017_v62  ;;  %v3078_v7 = vmul.f32 1.442695, %v3014_v63  ;;  %v2647_v8 = vmax.f32 %v2645_v58, %v2646_v0  ;;  %v2678_v9 = vrot.slane %v5250_v1, 4 }
 0x268   : > { %v2659_v10 = vmax.f32 %v2657_v59, %v2658_v2  ;;  %v2663_v11 = vmax.f32 %v2661_v60, %v2662_v3  ;;  %v2669_v12 = vmax.f32 %v2667_v61, %v2668_v4  ;;  %v2673_v13 = vmax.f32 %v5248_v17, %v2672_v5  ;;  %v5255_v14 = vpop.xlane.xlu1 %2466 }
 0x269   : > { %4373 = vpow2.f32 %v3084_v6  ;;  %v3016_v15 = vsub.f32 %v2446_v35, %v2647_v8  ;;  %v2679_v18 = vmax.f32 %v5250_v1, %v2678_v9  ;;  %v2684_v19 = vrot.slane %v5255_v14, 4  ;;  %v5259_v20 = vpop.xlane.xlu0 %2469 }
 0x26a   : > { %4375 = vpow2.f32 %v3078_v7  ;;  %v3018_v21 = vsub.f32 %v2452_v39, %v2659_v10  ;;  %v2664_v24 = vrot.slane %v2663_v11, 1  ;;  %v2670_v22 = vrot.slane %v2669_v12, 1 }
 0x26b   : > { %v3082_v23 = vmul.f32 1.442695, %v3016_v15  ;;  %v2674_v25 = vrot.slane %v2673_v13, 2  ;;  %v2680_v26 = vrot.slane %v2679_v18, 2  ;;  %v2685_v27 = vmax.f32 %v5255_v14, %v2684_v19 }
 0x26c   : > { %v3086_v28 = vmul.f32 1.442695, %v3018_v21  ;;  %v2665_v29 = vmax.f32 %v2663_v11, %v2664_v24  ;;  %v2671_v30 = vmax.f32 %v2669_v12, %v2670_v22  ;;  %v2690_v31 = vrot.slane %v5259_v20, 4  ;;  %v5263_v32 = vpop.xlane.xlu1 %2472 }
 0x26d   : > { %4377 = vpow2.f32 %v3082_v23  ;;  %v2675_v33 = vmax.f32 %v2673_v13, %v2674_v25  ;;  %v2681_v34 = vmax.f32 %v2679_v18, %v2680_v26  ;;  %v2686_v35 = vrot.slane %v2685_v27, 2  ;;  %v5271_v43 = vpop.xlane.xlu0 %2475 }
 0x26e   : > { %4379 = vpow2.f32 %v3086_v28  ;;  %v3019_v16 = vsub.f32 %v5240_v46, %v2665_v29  ;;  %v3020_v36 = vsub.f32 %v5242_v51, %v2671_v30  ;;  %v2691_v37 = vmax.f32 %v5259_v20, %v2690_v31 }
 0x26f   : > { %v5268_v38 = vpop.eup %4371  ;;  %v2676_v39 = vrot.slane %v2675_v33, 1  ;;  %v2682_v40 = vrot.slane %v2681_v34, 1  ;;  %v2687_v41 = vmax.f32 %v2685_v27, %v2686_v35  ;;  %v2696_v42 = vrot.slane %v5263_v32, 4 }
 0x270   : > { %v3212_v44 = vrot.slane %v5268_v38, 4  ;;  %v3088_v45 = vmul.f32 1.442695, %v3019_v16  ;;  %v3090_v47 = vmul.f32 1.442695, %v3020_v36  ;;  %v2692_v48 = vrot.slane %v2691_v37, 2 }
 0x271   : > { %v2677_v49 = vmax.f32 %v2675_v33, %v2676_v39  ;;  %v2683_v46 = vmax.f32 %v2681_v34, %v2682_v40  ;;  %v2688_v50 = vrot.slane %v2687_v41, 1  ;;  %v2697_v51 = vmax.f32 %v5263_v32, %v2696_v42 }
 0x272   : > { %v3213_v52 = vadd.f32 %v5268_v38, %v3212_v44  ;;  %4381 = vpow2.f32 %v3088_v45  ;;  %v2693_v53 = vmax.f32 %v2691_v37, %v2692_v48  ;;  %v2702_v54 = vrot.slane %v5271_v43, 4 }
 0x273   : > { %v5277_v55 = vpop.eup %4373  ;;  %4383 = vpow2.f32 %v3090_v47  ;;  %v3021_v56 = vsub.f32 %v5248_v17, %v2677_v49  ;;  %v3022_v57 = vsub.f32 %v5250_v1, %v2683_v46  ;;  %v2689_v58 = vmax.f32 %v2687_v41, %v2688_v50 }
 0x274   : > { %v5281_v59 = vpop.eup %4375  ;;  %v3214_v60 = vrot.slane %v3213_v52, 2  ;;  %v3224_v61 = vrot.slane %v5277_v55, 4  ;;  %v2694_v62 = vrot.slane %v2693_v53, 1  ;;  %v2698_v63 = vrot.slane %v2697_v51, 2 }
 0x275   : > { %v3206_v0 = vrot.slane %v5281_v59, 4  ;;  %v3092_v2 = vmul.f32 1.442695, %v3021_v56  ;;  %v3094_v3 = vmul.f32 1.442695, %v3022_v57  ;;  %v3023_v4 = vsub.f32 %v5255_v14, %v2689_v58 }
 0x276   : > { %v3215_v5 = vadd.f32 %v3214_v60, %v3213_v52  ;;  %v3225_v6 = vadd.f32 %v5277_v55, %v3224_v61  ;;  %v2695_v17 = vmax.f32 %v2693_v53, %v2694_v62  ;;  %v2699_v7 = vmax.f32 %v2697_v51, %v2698_v63  ;;  %v5315_v63 = vpop.xlane.xlu1 %2478 }
 0x277   : > { %v5287_v1 = vpop.eup %4377  ;;  %v3207_v8 = vadd.f32 %v5281_v59, %v3206_v0  ;;  %4385 = vpow2.f32 %v3092_v2  ;;  %v3096_v9 = vmul.f32 1.442695, %v3023_v4  ;;  %v2703_v10 = vmax.f32 %v5271_v43, %v2702_v54  ;;  %v5317_v0 = vpop.xlane.xlu0 %2481 }
 0x278   : > { %v5291_v11 = vpop.eup %4379  ;;  %v3216_v12 = vrot.slane %v3215_v5, 1  ;;  %v3226_v13 = vrot.slane %v3225_v6, 2  ;;  %v3218_v15 = vrot.slane %v5287_v1, 4  ;;  %4387 = vpow2.f32 %v3094_v3 }
 0x279   : > { %v3208_v14 = vrot.slane %v3207_v8, 2  ;;  %v3230_v18 = vrot.slane %v5291_v11, 4  ;;  %4389 = vpow2.f32 %v3096_v9  ;;  %v3024_v19 = vsub.f32 %v5259_v20, %v2695_v17 }
 0x27a   : > { %v3217_v21 = vadd.f32 %v3216_v12, %v3215_v5  ;;  %v3227_v24 = vadd.f32 %v3226_v13, %v3225_v6  ;;  %v3219_v22 = vadd.f32 %v5287_v1, %v3218_v15  ;;  %v2700_v23 = vrot.slane %v2699_v7, 1 }
 0x27b   : > { %v3209_v25 = vadd.f32 %v3208_v14, %v3207_v8  ;;  %v3231_v26 = vadd.f32 %v5291_v11, %v3230_v18  ;;  %v3098_v27 = vmul.f32 1.442695, %v3024_v19  ;;  %v2704_v28 = vrot.slane %v2703_v10, 2 }
 0x27c   : > { %v5298_v29 = vpop.eup %4381  ;;  %4391 = vrcp.f32 %v3217_v21  ;;  %v3228_v30 = vrot.slane %v3227_v24, 1  ;;  %v3220_v31 = vrot.slane %v3219_v22, 2  ;;  %v2701_v33 = vmax.f32 %v2699_v7, %v2700_v23 }
 0x27d   : > { %v5300_v34 = vpop.eup %4383  ;;  %v3210_v35 = vrot.slane %v3209_v25, 1  ;;  %v3232_v20 = vrot.slane %v3231_v26, 2  ;;  %v3236_v16 = vrot.slane %v5298_v29, 4  ;;  %4393 = vpow2.f32 %v3098_v27  ;;  %v5340_v27 = vpop.xlane.xlu1 %2484 }
 0x27e   : > { %v3229_v36 = vadd.f32 %v3228_v30, %v3227_v24  ;;  %v3221_v37 = vadd.f32 %v3220_v31, %v3219_v22  ;;  %v3242_v39 = vrot.slane %v5300_v34, 4  ;;  %v3025_v40 = vsub.f32 %v5263_v32, %v2701_v33 }
 0x27f   : > { %v3211_v41 = vadd.f32 %v3210_v35, %v3209_v25  ;;  %v3233_v42 = vadd.f32 %v3232_v20, %v3231_v26  ;;  %v3237_v44 = vadd.f32 %v5298_v29, %v3236_v16  ;;  %v2705_v45 = vmax.f32 %v2703_v10, %v2704_v28  ;;  %v5342_v28 = vpop.xlane.xlu0 %2487 }
 0x280   : > { %4395 = vrcp.f32 %v3229_v36  ;;  %v3222_v47 = vrot.slane %v3221_v37, 1  ;;  %v3243_v48 = vadd.f32 %v5300_v34, %v3242_v39  ;;  %v3100_v49 = vmul.f32 1.442695, %v3025_v40 }
 0x281   : > { %v5307_v46 = vpop.eup %4385  ;;  %4397 = vrcp.f32 %v3211_v41  ;;  %v3234_v50 = vrot.slane %v3233_v42, 1  ;;  %v3238_v51 = vrot.slane %v3237_v44, 2  ;;  %v2706_v52 = vrot.slane %v2705_v45, 1 }
 0x282   : > { %v5309_v53 = vpop.eup %4387  ;;  %v3223_v54 = vadd.f32 %v3222_v47, %v3221_v37  ;;  %v3244_v32 = vrot.slane %v3243_v48, 2  ;;  %v3248_v56 = vrot.slane %v5307_v46, 4  ;;  %4399 = vpow2.f32 %v3100_v49 }
 0x283   : > { %v5312_v57 = vpop.eup %4389  ;;  %v3235_v58 = vadd.f32 %v3234_v50, %v3233_v42  ;;  %v3239_v60 = vadd.f32 %v3238_v51, %v3237_v44  ;;  %v3254_v61 = vrot.slane %v5309_v53, 4  ;;  %v2707_v62 = vmax.f32 %v2705_v45, %v2706_v52 }
 0x284   : > { %4401 = vrcp.f32 %v3223_v54  ;;  %v3245_v2 = vadd.f32 %v3244_v32, %v3243_v48  ;;  %v3249_v3 = vadd.f32 %v5307_v46, %v3248_v56  ;;  %v3260_v4 = vrot.slane %v5312_v57, 4  ;;  %v5358_v56 = vpop.xlane.xlu1 %2490 }
 0x285   : > { %4403 = vrcp.f32 %v3235_v58  ;;  %v3240_v5 = vrot.slane %v3239_v60, 1  ;;  %v3255_v6 = vadd.f32 %v5309_v53, %v3254_v61  ;;  %v3026_v17 = vsub.f32 %v5271_v43, %v2707_v62  ;;  %v5360_v58 = vpop.xlane.xlu0 %2493 }
 0x286   : > { %v4392_v7 = vpop.eup %4391  ;;  %v3246_v8 = vrot.slane %v3245_v2, 1  ;;  %v3250_v9 = vrot.slane %v3249_v3, 2  ;;  %v3261_v10 = vadd.f32 %v5312_v57, %v3260_v4  ;;  %v2708_v12 = vrot.slane %v5315_v63, 4 }
 0x287   : > { %v5332_v13 = vpop.eup %4393  ;;  %v3655_v15 = vmul.f32 %v4392_v7, %v5268_v38  ;;  %v3241_v14 = vadd.f32 %v3240_v5, %v3239_v60  ;;  %v3256_v43 = vrot.slane %v3255_v6, 2  ;;  %v3102_v18 = vmul.f32 1.442695, %v3026_v17 }
 0x288   : > { %v3247_v19 = vadd.f32 %v3246_v8, %v3245_v2  ;;  %v3251_v21 = vadd.f32 %v3250_v9, %v3249_v3  ;;  %v3262_v24 = vrot.slane %v3261_v10, 2  ;;  %v3266_v22 = vrot.slane %v5332_v13, 4 }
 0x289   : > { %3720 = vst.msk [vmem:[%s5328_s10 + $0x8] sm:$0xff] %vm3718_vm1, %v3655_v15  ;;  %4405 = vrcp.f32 %v3241_v14  ;;  %v3257_v23 = vadd.f32 %v3256_v43, %v3255_v6  ;;  %v2709_v25 = vmax.f32 %v5315_v63, %v2708_v12  ;;  %v2714_v26 = vrot.slane %v5317_v0, 4 }
 0x28a   : > { %v4396_v38 = vpop.eup %4395  ;;  %4407 = vrcp.f32 %v3247_v19  ;;  %v3252_v30 = vrot.slane %v3251_v21, 1  ;;  %v3263_v31 = vadd.f32 %v3262_v24, %v3261_v10  ;;  %v3267_v33 = vadd.f32 %v5332_v13, %v3266_v22 }
 0x28b   : > { %v4398_v35 = vpop.eup %4397  ;;  %v3657_v20 = vmul.f32 %v4396_v38, %v5277_v55  ;;  %v3258_v16 = vrot.slane %v3257_v23, 1  ;;  %4409 = vpow2.f32 %v3102_v18  ;;  %v2710_v36 = vrot.slane %v2709_v25, 2 }
 0x28c   : > { %v5346_v37 = vpop.eup %4399  ;;  %v3654_v39 = vmul.f32 %v4398_v35, %v5281_v59  ;;  %v3253_v40 = vadd.f32 %v3252_v30, %v3251_v21  ;;  %v3264_v41 = vrot.slane %v3263_v31, 1  ;;  %v3268_v42 = vrot.slane %v3267_v33, 2 }
 0x28d   : > { %3722 = vst.msk [vmem:[%s5328_s10 + $0x18] sm:$0xff] %vm3718_vm1, %v3657_v20  ;;  %v3259_v44 = vadd.f32 %v3258_v16, %v3257_v23  ;;  %v3272_v45 = vrot.slane %v5346_v37, 4  ;;  %v2711_v47 = vmax.f32 %v2709_v25, %v2710_v36  ;;  %v2715_v48 = vmax.f32 %v5317_v0, %v2714_v26  ;;  %v5378_v25 = vpop.xlane.xlu1 %2496 }
 0x28e   : > { %v4402_v49 = vpop.eup %4401  ;;  %3719 = vst.msk [vmem:[%s5328_s10] sm:$0xff] %vm3718_vm1, %v3654_v39  ;;  %4411 = vrcp.f32 %v3253_v40  ;;  %v3265_v55 = vadd.f32 %v3264_v41, %v3263_v31  ;;  %v3269_v50 = vadd.f32 %v3268_v42, %v3267_v33  ;;  %v2720_v59 = vrot.slane %v5340_v27, 4 }
 0x28f   : > { %v4404_v51 = vpop.eup %4403  ;;  %v3656_v52 = vmul.f32 %v4402_v49, %v5287_v1  ;;  %4413 = vrcp.f32 %v3259_v44  ;;  %v3273_v54 = vadd.f32 %v5346_v37, %v3272_v45  ;;  %v2712_v32 = vrot.slane %v2711_v47, 1 }
 0x290   : > { %v3658_v60 = vmul.f32 %v4404_v51, %v5291_v11  ;;  %4415 = vrcp.f32 %v3265_v55  ;;  %v3270_v61 = vrot.slane %v3269_v50, 1  ;;  %v2716_v62 = vrot.slane %v2715_v48, 2 }
 0x291   : > { %3721 = vst.msk [vmem:[%s5328_s10 + $0x10] sm:$0xff] %vm3718_vm1, %v3656_v52  ;;  %v3274_v2 = vrot.slane %v3273_v54, 2  ;;  %v2713_v3 = vmax.f32 %v2711_v47, %v2712_v32  ;;  %v2721_v4 = vmax.f32 %v5340_v27, %v2720_v59  ;;  %v2726_v1 = vrot.slane %v5342_v28, 4  ;;  %v5396_v52 = vpop.xlane.xlu1 %2502 }
 0x292   : > { %3723 = vst.msk [vmem:[%s5328_s10 + $0x20] sm:$0xff] %vm3718_vm1, %v3658_v60  ;;  %v3271_v5 = vadd.f32 %v3270_v61, %v3269_v50  ;;  %v2717_v6 = vmax.f32 %v2715_v48, %v2716_v62  ;;  %v2732_v17 = vrot.slane %v5358_v56, 4  ;;  %v2738_v7 = vrot.slane %v5360_v58, 4 }
 0x293   : > { %v4406_v11 = vpop.eup %4405  ;;  %v3275_v8 = vadd.f32 %v3274_v2, %v3273_v54  ;;  %v3027_v9 = vsub.f32 %v5315_v63, %v2713_v3  ;;  %v2722_v10 = vrot.slane %v2721_v4, 2  ;;  %v2727_v12 = vmax.f32 %v5342_v28, %v2726_v1 }
 0x294   : > { %v4408_v15 = vpop.eup %4407  ;;  %v3659_v14 = vmul.f32 %v4406_v11, %v5298_v29  ;;  %4417 = vrcp.f32 %v3271_v5  ;;  %v2718_v43 = vrot.slane %v2717_v6, 1  ;;  %v2733_v18 = vmax.f32 %v5358_v56, %v2732_v17 }
 0x295   : > { %v5375_v19 = vpop.eup %4409  ;;  %v3660_v21 = vmul.f32 %v4408_v15, %v5300_v34  ;;  %v3276_v24 = vrot.slane %v3275_v8, 1  ;;  %v3104_v22 = vmul.f32 1.442695, %v3027_v9  ;;  %v2723_v23 = vmax.f32 %v2721_v4, %v2722_v10  ;;  %v5386_v34 = vpop.xlane.xlu0 %2499 }
 0x296   : > { %3724 = vst.msk [vmem:[%s5328_s10 + $0x28] sm:$0xff] %vm3718_vm1, %v3659_v14  ;;  %v3278_v63 = vrot.slane %v5375_v19, 4  ;;  %v2719_v26 = vmax.f32 %v2717_v6, %v2718_v43  ;;  %v2728_v38 = vrot.slane %v2727_v12, 2  ;;  %v2734_v29 = vrot.slane %v2733_v18, 2 }
 0x297   : > { %3725 = vst.msk [vmem:[%s5328_s10 + $0x30] sm:$0xff] %vm3718_vm1, %v3660_v21  ;;  %v3277_v30 = vadd.f32 %v3276_v24, %v3275_v8  ;;  %4419 = vpow2.f32 %v3104_v22  ;;  %v2724_v31 = vrot.slane %v2723_v23, 1  ;;  %v2739_v33 = vmax.f32 %v5360_v58, %v2738_v7 }
 0x298   : > { %v4412_v35 = vpop.eup %4411  ;;  %v3279_v20 = vadd.f32 %v5375_v19, %v3278_v63  ;;  %v3028_v16 = vsub.f32 %v5317_v0, %v2719_v26  ;;  %v2729_v36 = vmax.f32 %v2727_v12, %v2728_v38  ;;  %v2735_v39 = vmax.f32 %v2733_v18, %v2734_v29 }
 0x299   : > { %v4414_v40 = vpop.eup %4413  ;;  %v3661_v41 = vmul.f32 %v4412_v35, %v5307_v46  ;;  %4421 = vrcp.f32 %v3277_v30  ;;  %v2725_v42 = vmax.f32 %v2723_v23, %v2724_v31  ;;  %v2740_v44 = vrot.slane %v2739_v33, 2  ;;  %v5421_v23 = vpop.xlane.xlu1 %2508 }
 0x29a   : > { %v4416_v45 = vpop.eup %4415  ;;  %v3662_v47 = vmul.f32 %v4414_v40, %v5309_v53  ;;  %v3280_v48 = vrot.slane %v3279_v20, 2  ;;  %v3106_v49 = vmul.f32 1.442695, %v3028_v16  ;;  %v2730_v55 = vrot.slane %v2729_v36, 1 }
 0x29b   : > { %3726 = vst.msk [vmem:[%s5328_s10 + $0x38] sm:$0xff] %vm3718_vm1, %v3661_v41  ;;  %v3663_v0 = vmul.f32 %v4416_v45, %v5312_v57  ;;  %v3029_v50 = vsub.f32 %v5340_v27, %v2725_v42  ;;  %v2736_v59 = vrot.slane %v2735_v39, 1  ;;  %v2741_v51 = vmax.f32 %v2739_v33, %v2740_v44  ;;  %v5404_v27 = vpop.xlane.xlu0 %2505 }
 0x29c   : > { %3727 = vst.msk [vmem:[%s5328_s10 + $0x40] sm:$0xff] %vm3718_vm1, %v3662_v47  ;;  %v3281_v46 = vadd.f32 %v3280_v48, %v3279_v20  ;;  %4423 = vpow2.f32 %v3106_v49  ;;  %v2731_v54 = vmax.f32 %v2729_v36, %v2730_v55  ;;  %v2744_v53 = vrot.slane %v5378_v25, 4 }
 0x29d   : > { %3728 = vst.msk [vmem:[%s5328_s10 + $0x48] sm:$0xff] %vm3718_vm1, %v3663_v0  ;;  %v3108_v32 = vmul.f32 1.442695, %v3029_v50  ;;  %v2737_v60 = vmax.f32 %v2735_v39, %v2736_v59  ;;  %v2742_v61 = vrot.slane %v2741_v51, 1  ;;  %v2750_v57 = vrot.slane %v5386_v34, 4 }
 0x29e   : > { %v4418_v62 = vpop.eup %4417  ;;  %v3282_v2 = vrot.slane %v3281_v46, 1  ;;  %v3030_v3 = vsub.f32 %v5342_v28, %v2731_v54  ;;  %v2745_v4 = vmax.f32 %v5378_v25, %v2744_v53  ;;  %v2756_v1 = vrot.slane %v5396_v52, 4 }
 0x29f   : > { %v3664_v5 = vmul.f32 %v4418_v62, %v5332_v13  ;;  %4425 = vpow2.f32 %v3108_v32  ;;  %v3031_v6 = vsub.f32 %v5358_v56, %v2737_v60  ;;  %v2743_v17 = vmax.f32 %v2741_v51, %v2742_v61  ;;  %v5423_v63 = vpop.xlane.xlu0 %2511 }
 0x2a0   : > { %v3283_v7 = vadd.f32 %v3282_v2, %v3281_v46  ;;  %v3110_v11 = vmul.f32 1.442695, %v3030_v3  ;;  %v2746_v8 = vrot.slane %v2745_v4, 2  ;;  %v2751_v9 = vmax.f32 %v5386_v34, %v2750_v57 }
 0x2a1   : > { %v5412_v10 = vpop.eup %4419  ;;  %3729 = vst.msk [vmem:[%s5328_s10 + $0x50] sm:$0xff] %vm3718_vm1, %v3664_v5  ;;  %v3112_v28 = vmul.f32 1.442695, %v3031_v6  ;;  %v3032_v12 = vsub.f32 %v5360_v58, %v2743_v17  ;;  %v2757_v15 = vmax.f32 %v5396_v52, %v2756_v1  ;;  %v2762_v13 = vrot.slane %v5404_v27, 4 }
 0x2a2   : > { %4427 = vrcp.f32 %v3283_v7  ;;  %v3284_v56 = vrot.slane %v5412_v10, 4  ;;  %v2747_v14 = vmax.f32 %v2745_v4, %v2746_v8  ;;  %v2752_v43 = vrot.slane %v2751_v9, 2 }
 0x2a3   : > { %v4422_v18 = vpop.eup %4421  ;;  %4429 = vpow2.f32 %v3110_v11  ;;  %v3114_v21 = vmul.f32 1.442695, %v3032_v12  ;;  %v2758_v24 = vrot.slane %v2757_v15, 2  ;;  %v2763_v22 = vmax.f32 %v5404_v27, %v2762_v13  ;;  %v5458_v13 = vpop.xlane.xlu1 %2514 }
 0x2a4   : > { %v3665_v58 = vmul.f32 %v4422_v18, %v5346_v37  ;;  %v3285_v26 = vadd.f32 %v5412_v10, %v3284_v56  ;;  %4431 = vpow2.f32 %v3112_v28  ;;  %v2748_v38 = vrot.slane %v2747_v14, 1 }
 0x2a5   : > { %4433 = vpow2.f32 %v3114_v21  ;;  %v2753_v29 = vmax.f32 %v2751_v9, %v2752_v43  ;;  %v2759_v30 = vmax.f32 %v2757_v15, %v2758_v24  ;;  %v2764_v31 = vrot.slane %v2763_v22, 2 }
 0x2a6   : > { %v5427_v33 = vpop.eup %4423  ;;  %3730 = vst.msk [vmem:[%s5328_s10 + $0x58] sm:$0xff] %vm3718_vm1, %v3665_v58  ;;  %v3286_v35 = vrot.slane %v3285_v26, 2  ;;  %v2749_v20 = vmax.f32 %v2747_v14, %v2748_v38  ;;  %v2768_v16 = vrot.slane %v5421_v23, 4  ;;  %v2774_v36 = vrot.slane %v5423_v63, 4 }
 0x2a7   : > { %v3290_v37 = vrot.slane %v5427_v33, 4  ;;  %v2754_v39 = vrot.slane %v2753_v29, 1  ;;  %v2760_v40 = vrot.slane %v2759_v30, 1  ;;  %v2765_v41 = vmax.f32 %v2763_v22, %v2764_v31 }
 0x2a8   : > { %v3287_v42 = vadd.f32 %v3286_v35, %v3285_v26  ;;  %v3033_v44 = vsub.f32 %v5378_v25, %v2749_v20  ;;  %v2769_v45 = vmax.f32 %v5421_v23, %v2768_v16  ;;  %v2775_v47 = vmax.f32 %v5423_v63, %v2774_v36 }
 0x2a9   : > { %v5437_v48 = vpop.eup %4425  ;;  %v3291_v49 = vadd.f32 %v5427_v33, %v3290_v37  ;;  %v2755_v55 = vmax.f32 %v2753_v29, %v2754_v39  ;;  %v2761_v0 = vmax.f32 %v2759_v30, %v2760_v40  ;;  %v2766_v50 = vrot.slane %v2765_v41, 1  ;;  %v5464_v29 = vpop.xlane.xlu0 %2517 }
 0x2aa   : > { %v3288_v59 = vrot.slane %v3287_v42, 1  ;;  %v3296_v51 = vrot.slane %v5437_v48, 4  ;;  %v3116_v46 = vmul.f32 1.442695, %v3033_v44  ;;  %v2770_v54 = vrot.slane %v2769_v45, 2 }
 0x2ab   : > { %v3292_v53 = vrot.slane %v3291_v49, 2  ;;  %v3034_v32 = vsub.f32 %v5386_v34, %v2755_v55  ;;  %v3035_v25 = vsub.f32 %v5396_v52, %v2761_v0  ;;  %v2767_v60 = vmax.f32 %v2765_v41, %v2766_v50 }
 0x2ac   : > { %v4428_v61 = vpop.eup %4427  ;;  %v3289_v57 = vadd.f32 %v3288_v59, %v3287_v42  ;;  %v3297_v62 = vadd.f32 %v5437_v48, %v3296_v51  ;;  %4435 = vpow2.f32 %v3116_v46  ;;  %v2771_v2 = vmax.f32 %v2769_v45, %v2770_v54 }
 0x2ad   : > { %v5444_v3 = vpop.eup %4429  ;;  %v3666_v4 = vmul.f32 %v4428_v61, %v5375_v19  ;;  %v3293_v1 = vadd.f32 %v3292_v53, %v3291_v49  ;;  %v3118_v5 = vmul.f32 1.442695, %v3034_v32  ;;  %v3120_v6 = vmul.f32 1.442695, %v3035_v25 }
 0x2ae   : > { %v5447_v17 = vpop.eup %4431  ;;  %4437 = vrcp.f32 %v3289_v57  ;;  %v3298_v34 = vrot.slane %v3297_v62, 2  ;;  %v3302_v52 = vrot.slane %v5444_v3, 4  ;;  %v3036_v7 = vsub.f32 %v5404_v27, %v2767_v60  ;;  %v5479_v57 = vpop.xlane.xlu1 %2520 }
 0x2af   : > { %v5451_v11 = vpop.eup %4433  ;;  %3731 = vst.msk [vmem:[%s5328_s10 + $0x60] sm:$0xff] %vm3718_vm1, %v3666_v4  ;;  %v3294_v8 = vrot.slane %v3293_v1, 1  ;;  %v3308_v9 = vrot.slane %v5447_v17, 4  ;;  %4439 = vpow2.f32 %v3118_v5  ;;  %v2772_v19 = vrot.slane %v2771_v2, 1 }
 0x2b0   : > { %v3299_v28 = vadd.f32 %v3298_v34, %v3297_v62  ;;  %v3303_v12 = vadd.f32 %v5444_v3, %v3302_v52  ;;  %v3314_v15 = vrot.slane %v5451_v11, 4  ;;  %4441 = vpow2.f32 %v3120_v6 }
 0x2b1   : > { %v3295_v56 = vadd.f32 %v3294_v8, %v3293_v1  ;;  %v3309_v27 = vadd.f32 %v5447_v17, %v3308_v9  ;;  %v3122_v14 = vmul.f32 1.442695, %v3036_v7  ;;  %v2773_v43 = vmax.f32 %v2771_v2, %v2772_v19 }
 0x2b2   : > { %v3300_v18 = vrot.slane %v3299_v28, 1  ;;  %v3304_v21 = vrot.slane %v3303_v12, 2  ;;  %v3315_v24 = vadd.f32 %v5451_v11, %v3314_v15  ;;  %v2776_v22 = vrot.slane %v2775_v47, 2  ;;  %v5491_v15 = vpop.xlane.xlu0 %2523 }
 0x2b3   : > { %4443 = vrcp.f32 %v3295_v56  ;;  %v3310_v58 = vrot.slane %v3309_v27, 2  ;;  %v3037_v26 = vsub.f32 %v5421_v23, %v2773_v43  ;;  %v2780_v38 = vrot.slane %v5458_v13, 4 }
 0x2b4   : > { %v3301_v30 = vadd.f32 %v3300_v18, %v3299_v28  ;;  %v3305_v31 = vadd.f32 %v3304_v21, %v3303_v12  ;;  %v3316_v35 = vrot.slane %v3315_v24, 2  ;;  %4445 = vpow2.f32 %v3122_v14 }
 0x2b5   : > { %v3311_v20 = vadd.f32 %v3310_v58, %v3309_v27  ;;  %v3124_v16 = vmul.f32 1.442695, %v3037_v26  ;;  %v2777_v36 = vmax.f32 %v2775_v47, %v2776_v22  ;;  %v2781_v37 = vmax.f32 %v5458_v13, %v2780_v38  ;;  %v5498_v22 = vpop.xlane.xlu1 %2526 }
 0x2b6   : > { %v5467_v39 = vpop.eup %4435  ;;  %4447 = vrcp.f32 %v3301_v30  ;;  %v3306_v40 = vrot.slane %v3305_v31, 1  ;;  %v3317_v41 = vadd.f32 %v3316_v35, %v3315_v24  ;;  %v2786_v23 = vrot.slane %v5464_v29, 4 }
 0x2b7   : > { %v3312_v42 = vrot.slane %v3311_v20, 1  ;;  %v3320_v44 = vrot.slane %v5467_v39, 4  ;;  %4449 = vpow2.f32 %v3124_v16  ;;  %v2778_v45 = vrot.slane %v2777_v36, 1 }
 0x2b8   : > { %v4438_v49 = vpop.eup %4437  ;;  %v3307_v55 = vadd.f32 %v3306_v40, %v3305_v31  ;;  %v3318_v0 = vrot.slane %v3317_v41, 1  ;;  %v2782_v50 = vrot.slane %v2781_v37, 2  ;;  %v2787_v47 = vmax.f32 %v5464_v29, %v2786_v23 }
 0x2b9   : > { %v5472_v59 = vpop.eup %4439  ;;  %v3667_v51 = vmul.f32 %v4438_v49, %v5412_v10  ;;  %v3313_v46 = vadd.f32 %v3312_v42, %v3311_v20  ;;  %v3321_v54 = vadd.f32 %v5467_v39, %v3320_v44  ;;  %v2779_v53 = vmax.f32 %v2777_v36, %v2778_v45  ;;  %v5509_v44 = vpop.xlane.xlu0 %2529 }
 0x2ba   : > { %v5476_v32 = vpop.eup %4441  ;;  %4451 = vrcp.f32 %v3307_v55  ;;  %v3319_v25 = vadd.f32 %v3318_v0, %v3317_v41  ;;  %v3326_v60 = vrot.slane %v5472_v59, 4  ;;  %v2783_v61 = vmax.f32 %v2781_v37, %v2782_v50 }
 0x2bb   : > { %3732 = vst.msk [vmem:[%s5328_s10 + $0x68] sm:$0xff] %vm3718_vm1, %v3667_v51  ;;  %4453 = vrcp.f32 %v3313_v46  ;;  %v3322_v62 = vrot.slane %v3321_v54, 2  ;;  %v3332_v2 = vrot.slane %v5476_v32, 4  ;;  %v3038_v10 = vsub.f32 %v5423_v63, %v2779_v53  ;;  %v5513_v53 = vpop.xlane.xlu1 %2532 }
 0x2bc   : > { %4455 = vrcp.f32 %v3319_v25  ;;  %v3327_v4 = vadd.f32 %v5472_v59, %v3326_v60  ;;  %v2784_v1 = vrot.slane %v2783_v61, 1  ;;  %v2788_v5 = vrot.slane %v2787_v47, 2 }
 0x2bd   : > { %v4444_v6 = vpop.eup %4443  ;;  %v3323_v34 = vadd.f32 %v3322_v62, %v3321_v54  ;;  %v3333_v52 = vadd.f32 %v5476_v32, %v3332_v2  ;;  %v3126_v7 = vmul.f32 1.442695, %v3038_v10  ;;  %v2792_v8 = vrot.slane %v5479_v57, 4 }
 0x2be   : > { %v5488_v9 = vpop.eup %4445  ;;  %v3668_v19 = vmul.f32 %v4444_v6, %v5427_v33  ;;  %v3328_v28 = vrot.slane %v3327_v4, 2  ;;  %v2785_v12 = vmax.f32 %v2783_v61, %v2784_v1  ;;  %v2789_v63 = vmax.f32 %v2787_v47, %v2788_v5 }
 0x2bf   : > { %v3324_v56 = vrot.slane %v3323_v34, 1  ;;  %v3334_v27 = vrot.slane %v3333_v52, 2  ;;  %v3338_v14 = vrot.slane %v5488_v9, 4  ;;  %4457 = vpow2.f32 %v3126_v7 }
 0x2c0   : > { %v4448_v43 = vpop.eup %4447  ;;  %3733 = vst.msk [vmem:[%s5328_s10 + $0x70] sm:$0xff] %vm3718_vm1, %v3668_v19  ;;  %v3329_v18 = vadd.f32 %v3328_v28, %v3327_v4  ;;  %v3039_v21 = vsub.f32 %v5458_v13, %v2785_v12  ;;  %v2790_v24 = vrot.slane %v2789_v63, 1  ;;  %v2793_v33 = vmax.f32 %v5479_v57, %v2792_v8 }
 0x2c1   : > { %v5500_v58 = vpop.eup %4449  ;;  %v3669_v26 = vmul.f32 %v4448_v43, %v5437_v48  ;;  %v3325_v38 = vadd.f32 %v3324_v56, %v3323_v34  ;;  %v3335_v30 = vadd.f32 %v3334_v27, %v3333_v52  ;;  %v3339_v31 = vadd.f32 %v5488_v9, %v3338_v14  ;;  %v5531_v52 = vpop.xlane.xlu0 %2535 }
 0x2c2   : > { %v3330_v35 = vrot.slane %v3329_v18, 1  ;;  %v3344_v20 = vrot.slane %v5500_v58, 4  ;;  %v3128_v16 = vmul.f32 1.442695, %v3039_v21  ;;  %v2791_v36 = vmax.f32 %v2789_v63, %v2790_v24 }
 0x2c3   : > { %3734 = vst.msk [vmem:[%s5328_s10 + $0x78] sm:$0xff] %vm3718_vm1, %v3669_v26  ;;  %4459 = vrcp.f32 %v3325_v38  ;;  %v3336_v13 = vrot.slane %v3335_v30, 1  ;;  %v3340_v37 = vrot.slane %v3339_v31, 2  ;;  %v2794_v40 = vrot.slane %v2793_v33, 2 }
 0x2c4   : > { %v4452_v41 = vpop.eup %4451  ;;  %v3331_v23 = vadd.f32 %v3330_v35, %v3329_v18  ;;  %v3345_v48 = vadd.f32 %v5500_v58, %v3344_v20  ;;  %4461 = vpow2.f32 %v3128_v16  ;;  %v3040_v42 = vsub.f32 %v5464_v29, %v2791_v36  ;;  %v5542_v35 = vpop.xlane.xlu1 %2538 }
 0x2c5   : > { %v4454_v45 = vpop.eup %4453  ;;  %v3670_v49 = vmul.f32 %v4452_v41, %v5444_v3  ;;  %v3337_v55 = vadd.f32 %v3336_v13, %v3335_v30  ;;  %v3341_v0 = vadd.f32 %v3340_v37, %v3339_v31  ;;  %v2795_v50 = vmax.f32 %v2793_v33, %v2794_v40 }
 0x2c6   : > { %v4456_v47 = vpop.eup %4455  ;;  %v3671_v51 = vmul.f32 %v4454_v45, %v5447_v17  ;;  %4463 = vrcp.f32 %v3331_v23  ;;  %v3346_v46 = vrot.slane %v3345_v48, 2  ;;  %v3130_v54 = vmul.f32 1.442695, %v3040_v42 }
 0x2c7   : > { %3735 = vst.msk [vmem:[%s5328_s10 + $0x80] sm:$0xff] %vm3718_vm1, %v3670_v49  ;;  %v3672_v29 = vmul.f32 %v4456_v47, %v5451_v11  ;;  %4465 = vrcp.f32 %v3337_v55  ;;  %v3342_v25 = vrot.slane %v3341_v0, 1  ;;  %v2796_v60 = vrot.slane %v2795_v50, 1 }
 0x2c8   : > { %3736 = vst.msk [vmem:[%s5328_s10 + $0x88] sm:$0xff] %vm3718_vm1, %v3671_v51  ;;  %v3347_v3 = vadd.f32 %v3346_v46, %v3345_v48  ;;  %4467 = vpow2.f32 %v3130_v54  ;;  %v2798_v61 = vrot.slane %v5491_v15, 4  ;;  %v2804_v17 = vrot.slane %v5498_v22, 4 }
 0x2c9   : > { %v5522_v62 = vpop.eup %4457  ;;  %3737 = vst.msk [vmem:[%s5328_s10 + $0x90] sm:$0xff] %vm3718_vm1, %v3672_v29  ;;  %v3343_v2 = vadd.f32 %v3342_v25, %v3341_v0  ;;  %v2797_v10 = vmax.f32 %v2795_v50, %v2796_v60  ;;  %v2810_v4 = vrot.slane %v5509_v44, 4  ;;  %v2816_v11 = vrot.slane %v5513_v53, 4  ;;  %v5558_v60 = vpop.xlane.xlu0 %2541 }
 0x2ca   : > { %v3348_v1 = vrot.slane %v3347_v3, 1  ;;  %v3350_v5 = vrot.slane %v5522_v62, 4  ;;  %v2799_v6 = vmax.f32 %v5491_v15, %v2798_v61  ;;  %v2805_v34 = vmax.f32 %v5498_v22, %v2804_v17 }
 0x2cb   : > { %4469 = vrcp.f32 %v3343_v2  ;;  %v3041_v7 = vsub.f32 %v5479_v57, %v2797_v10  ;;  %v2811_v8 = vmax.f32 %v5509_v44, %v2810_v4  ;;  %v2817_v19 = vmax.f32 %v5513_v53, %v2816_v11  ;;  %v5563_v10 = vpop.xlane.xlu1 %2544 }
 0x2cc   : > { %v3349_v28 = vadd.f32 %v3348_v1, %v3347_v3  ;;  %v3351_v12 = vadd.f32 %v5522_v62, %v3350_v5  ;;  %v2800_v63 = vrot.slane %v2799_v6, 2  ;;  %v2806_v56 = vrot.slane %v2805_v34, 2 }
 0x2cd   : > { %v4460_v27 = vpop.eup %4459  ;;  %v3132_v14 = vmul.f32 1.442695, %v3041_v7  ;;  %v2812_v43 = vrot.slane %v2811_v8, 2  ;;  %v2818_v18 = vrot.slane %v2817_v19, 2  ;;  %v2822_v21 = vrot.slane %v5531_v52, 4 }
 0x2ce   : > { %v5538_v24 = vpop.eup %4461  ;;  %v3673_v57 = vmul.f32 %v4460_v27, %v5467_v39  ;;  %4471 = vrcp.f32 %v3349_v28  ;;  %v3352_v33 = vrot.slane %v3351_v12, 2  ;;  %v2801_v26 = vmax.f32 %v2799_v6, %v2800_v63  ;;  %v5575_v27 = vpop.xlane.xlu0 %2547 }
 0x2cf   : > { %v3356_v38 = vrot.slane %v5538_v24, 4  ;;  %4473 = vpow2.f32 %v3132_v14  ;;  %v2807_v30 = vmax.f32 %v2805_v34, %v2806_v56  ;;  %v2813_v31 = vmax.f32 %v2811_v8, %v2812_v43 }
 0x2d0   : > { %v4464_v20 = vpop.eup %4463  ;;  %3738 = vst.msk [vmem:[%s5328_s10 + $0x98] sm:$0xff] %vm3718_vm1, %v3673_v57  ;;  %v3353_v16 = vadd.f32 %v3352_v33, %v3351_v12  ;;  %v2802_v36 = vrot.slane %v2801_v26, 1  ;;  %v2819_v13 = vmax.f32 %v2817_v19, %v2818_v18  ;;  %v2823_v37 = vmax.f32 %v5531_v52, %v2822_v21 }
 0x2d1   : > { %v4466_v39 = vpop.eup %4465  ;;  %v3674_v40 = vmul.f32 %v4464_v20, %v5472_v59  ;;  %v3357_v41 = vadd.f32 %v5538_v24, %v3356_v38  ;;  %v2808_v23 = vrot.slane %v2807_v30, 1  ;;  %v2814_v48 = vrot.slane %v2813_v31, 1 }
 0x2d2   : > { %v5549_v42 = vpop.eup %4467  ;;  %v3675_v45 = vmul.f32 %v4466_v39, %v5476_v32  ;;  %v3354_v49 = vrot.slane %v3353_v16, 1  ;;  %v2803_v55 = vmax.f32 %v2801_v26, %v2802_v36  ;;  %v2820_v0 = vrot.slane %v2819_v13, 1 }
 0x2d3   : > { %3739 = vst.msk [vmem:[%s5328_s10 + $0xa0] sm:$0xff] %vm3718_vm1, %v3674_v40  ;;  %v3358_v50 = vrot.slane %v3357_v41, 2  ;;  %v3362_v47 = vrot.slane %v5549_v42, 4  ;;  %v2809_v51 = vmax.f32 %v2807_v30, %v2808_v23  ;;  %v2815_v46 = vmax.f32 %v2813_v31, %v2814_v48 }
 0x2d4   : > { %3740 = vst.msk [vmem:[%s5328_s10 + $0xa8] sm:$0xff] %vm3718_vm1, %v3675_v45  ;;  %v3355_v59 = vadd.f32 %v3354_v49, %v3353_v16  ;;  %v3042_v54 = vsub.f32 %v5491_v15, %v2803_v55  ;;  %v2821_v29 = vmax.f32 %v2819_v13, %v2820_v0  ;;  %v2824_v25 = vrot.slane %v2823_v37, 2 }
 0x2d5   : > { %v4470_v32 = vpop.eup %4469  ;;  %v3359_v3 = vadd.f32 %v3358_v50, %v3357_v41  ;;  %v3363_v61 = vadd.f32 %v5549_v42, %v3362_v47  ;;  %v3043_v17 = vsub.f32 %v5498_v22, %v2809_v51  ;;  %v3044_v2 = vsub.f32 %v5509_v44, %v2815_v46 }
 0x2d6   : > { %v3676_v4 = vmul.f32 %v4470_v32, %v5488_v9  ;;  %4475 = vrcp.f32 %v3355_v59  ;;  %v3134_v11 = vmul.f32 1.442695, %v3042_v54  ;;  %v3045_v15 = vsub.f32 %v5513_v53, %v2821_v29 }
 0x2d7   : > { %v3360_v1 = vrot.slane %v3359_v3, 1  ;;  %v3364_v5 = vrot.slane %v3363_v61, 2  ;;  %v3136_v6 = vmul.f32 1.442695, %v3043_v17  ;;  %v3138_v34 = vmul.f32 1.442695, %v3044_v2 }
 0x2d8   : > { %v4472_v7 = vpop.eup %4471  ;;  %3741 = vst.msk [vmem:[%s5328_s10 + $0xb0] sm:$0xff] %vm3718_vm1, %v3676_v4  ;;  %4477 = vpow2.f32 %v3134_v11  ;;  %v3140_v22 = vmul.f32 1.442695, %v3045_v15  ;;  %v2825_v8 = vmax.f32 %v2823_v37, %v2824_v25  ;;  %v2828_v44 = vrot.slane %v5542_v35, 4 }
 0x2d9   : > { %v5570_v19 = vpop.eup %4473  ;;  %v3677_v9 = vmul.f32 %v4472_v7, %v5500_v58  ;;  %v3361_v28 = vadd.f32 %v3360_v1, %v3359_v3  ;;  %v3365_v12 = vadd.f32 %v3364_v5, %v3363_v61  ;;  %4479 = vpow2.f32 %v3136_v6  ;;  %v5581_v58 = vpop.xlane.xlu1 %2550 }
 0x2da   : > { %v3368_v53 = vrot.slane %v5570_v19, 4  ;;  %4481 = vpow2.f32 %v3138_v34  ;;  %v2826_v63 = vrot.slane %v2825_v8, 1  ;;  %v2829_v56 = vmax.f32 %v5542_v35, %v2828_v44  ;;  %v5609_v44 = vpop.xlane.xlu0 %2553 }
 0x2db   : > { %3742 = vst.msk [vmem:[%s5328_s10 + $0xb8] sm:$0xff] %vm3718_vm1, %v3677_v9  ;;  %4483 = vrcp.f32 %v3361_v28  ;;  %v3366_v14 = vrot.slane %v3365_v12, 1  ;;  %v2834_v43 = vrot.slane %v5558_v60, 4  ;;  %v2840_v18 = vrot.slane %v5563_v10, 4 }
 0x2dc   : > { %v3369_v21 = vadd.f32 %v5570_v19, %v3368_v53  ;;  %4485 = vpow2.f32 %v3140_v22  ;;  %v2827_v57 = vmax.f32 %v2825_v8, %v2826_v63  ;;  %v2830_v33 = vrot.slane %v2829_v56, 2 }
 0x2dd   : > { %v3367_v26 = vadd.f32 %v3366_v14, %v3365_v12  ;;  %v2835_v38 = vmax.f32 %v5558_v60, %v2834_v43  ;;  %v2841_v30 = vmax.f32 %v5563_v10, %v2840_v18  ;;  %v2846_v31 = vrot.slane %v5575_v27, 4 }
 0x2de   : > { %v3370_v20 = vrot.slane %v3369_v21, 2  ;;  %v3046_v16 = vsub.f32 %v5531_v52, %v2827_v57  ;;  %v2831_v36 = vmax.f32 %v2829_v56, %v2830_v33  ;;  %v2852_v13 = vrot.slane %v5581_v58, 4 }
 0x2df   : > { %4487 = vrcp.f32 %v3367_v26  ;;  %v2836_v37 = vrot.slane %v2835_v38, 2  ;;  %v2842_v39 = vrot.slane %v2841_v30, 2  ;;  %v2847_v40 = vmax.f32 %v5575_v27, %v2846_v31 }
 0x2e0   : > { %v4476_v41 = vpop.eup %4475  ;;  %v3371_v23 = vadd.f32 %v3370_v20, %v3369_v21  ;;  %v3142_v48 = vmul.f32 1.442695, %v3046_v16  ;;  %v2832_v45 = vrot.slane %v2831_v36, 1  ;;  %v2853_v49 = vmax.f32 %v5581_v58, %v2852_v13  ;;  %v5619_v20 = vpop.xlane.xlu1 %2556 }
 0x2e1   : > { %v3678_v55 = vmul.f32 %v4476_v41, %v5522_v62  ;;  %v2837_v0 = vmax.f32 %v2835_v38, %v2836_v37  ;;  %v2843_v50 = vmax.f32 %v2841_v30, %v2842_v39  ;;  %v2848_v52 = vrot.slane %v2847_v40, 2  ;;  %v5626_v37 = vpop.xlane.xlu0 %2559 }
 0x2e2   : > { %v5592_v47 = vpop.eup %4477  ;;  %v3372_v51 = vrot.slane %v3371_v23, 1  ;;  %4489 = vpow2.f32 %v3142_v48  ;;  %v2833_v46 = vmax.f32 %v2831_v36, %v2832_v45  ;;  %v2854_v59 = vrot.slane %v2853_v49, 2 }
 0x2e3   : > { %v5594_v54 = vpop.eup %4479  ;;  %3743 = vst.msk [vmem:[%s5328_s10 + $0xc0] sm:$0xff] %vm3718_vm1, %v3678_v55  ;;  %v3374_v29 = vrot.slane %v5592_v47, 4  ;;  %v2838_v25 = vrot.slane %v2837_v0, 1  ;;  %v2844_v32 = vrot.slane %v2843_v50, 1  ;;  %v2849_v3 = vmax.f32 %v2847_v40, %v2848_v52 }
 0x2e4   : > { %v5599_v61 = vpop.eup %4481  ;;  %v3373_v62 = vadd.f32 %v3372_v51, %v3371_v23  ;;  %v3380_v17 = vrot.slane %v5594_v54, 4  ;;  %v3047_v2 = vsub.f32 %v5542_v35, %v2833_v46  ;;  %v2855_v4 = vmax.f32 %v2853_v49, %v2854_v59 }
 0x2e5   : > { %v4484_v11 = vpop.eup %4483  ;;  %v3375_v15 = vadd.f32 %v5592_v47, %v3374_v29  ;;  %v3386_v1 = vrot.slane %v5599_v61, 4  ;;  %v2839_v5 = vmax.f32 %v2837_v0, %v2838_v25  ;;  %v2845_v6 = vmax.f32 %v2843_v50, %v2844_v32  ;;  %v5635_v32 = vpop.xlane.xlu1 %2562 }
 0x2e6   : > { %v5605_v34 = vpop.eup %4485  ;;  %v3679_v7 = vmul.f32 %v4484_v11, %v5538_v24  ;;  %4491 = vrcp.f32 %v3373_v62  ;;  %v3381_v22 = vadd.f32 %v5594_v54, %v3380_v17  ;;  %v3144_v8 = vmul.f32 1.442695, %v3047_v2 }
 0x2e7   : > { %v3376_v35 = vrot.slane %v3375_v15, 2  ;;  %v3387_v9 = vadd.f32 %v5599_v61, %v3386_v1  ;;  %v3392_v28 = vrot.slane %v5605_v34, 4  ;;  %v3048_v12 = vsub.f32 %v5558_v60, %v2839_v5 }
 0x2e8   : > { %3744 = vst.msk [vmem:[%s5328_s10 + $0xc8] sm:$0xff] %vm3718_vm1, %v3679_v7  ;;  %v3382_v53 = vrot.slane %v3381_v22, 2  ;;  %4493 = vpow2.f32 %v3144_v8  ;;  %v3049_v63 = vsub.f32 %v5563_v10, %v2845_v6  ;;  %v2850_v24 = vrot.slane %v2849_v3, 1 }
 0x2e9   : > { %v4488_v56 = vpop.eup %4487  ;;  %v3377_v14 = vadd.f32 %v3376_v35, %v3375_v15  ;;  %v3388_v43 = vrot.slane %v3387_v9, 2  ;;  %v3393_v18 = vadd.f32 %v5605_v34, %v3392_v28  ;;  %v3146_v21 = vmul.f32 1.442695, %v3048_v12 }
 0x2ea   : > { %v3680_v57 = vmul.f32 %v4488_v56, %v5549_v42  ;;  %v3383_v33 = vadd.f32 %v3382_v53, %v3381_v22  ;;  %v3148_v26 = vmul.f32 1.442695, %v3049_v63  ;;  %v2851_v38 = vmax.f32 %v2849_v3, %v2850_v24 }
 0x2eb   : > { %v3378_v60 = vrot.slane %v3377_v14, 1  ;;  %v3389_v30 = vadd.f32 %v3388_v43, %v3387_v9  ;;  %v3394_v31 = vrot.slane %v3393_v18, 2  ;;  %4495 = vpow2.f32 %v3146_v21 }
 0x2ec   : > { %v5621_v10 = vpop.eup %4489  ;;  %3745 = vst.msk [vmem:[%s5328_s10 + $0xd0] sm:$0xff] %vm3718_vm1, %v3680_v57  ;;  %v3384_v16 = vrot.slane %v3383_v33, 1  ;;  %4497 = vpow2.f32 %v3148_v26  ;;  %v3050_v36 = vsub.f32 %v5575_v27, %v2851_v38  ;;  %v2856_v13 = vrot.slane %v2855_v4, 1 }
 0x2ed   : > { %v3379_v42 = vadd.f32 %v3378_v60, %v3377_v14  ;;  %v3390_v39 = vrot.slane %v3389_v30, 1  ;;  %v3395_v40 = vadd.f32 %v3394_v31, %v3393_v18  ;;  %v3398_v41 = vrot.slane %v5621_v10, 4 }
 0x2ee   : > { %v3385_v23 = vadd.f32 %v3384_v16, %v3383_v33  ;;  %v3150_v48 = vmul.f32 1.442695, %v3050_v36  ;;  %v2857_v45 = vmax.f32 %v2855_v4, %v2856_v13  ;;  %v2858_v49 = vrot.slane %v5609_v44, 4  ;;  %v5640_v4 = vpop.xlane.xlu0 %2565 }
 0x2ef   : > { %4499 = vrcp.f32 %v3379_v42  ;;  %v3391_v55 = vadd.f32 %v3390_v39, %v3389_v30  ;;  %v3396_v0 = vrot.slane %v3395_v40, 1  ;;  %v3399_v50 = vadd.f32 %v5621_v10, %v3398_v41 }
 0x2f0   : > { %v4492_v52 = vpop.eup %4491  ;;  %4501 = vrcp.f32 %v3385_v23  ;;  %v3051_v27 = vsub.f32 %v5581_v58, %v2857_v45  ;;  %v2859_v51 = vmax.f32 %v5609_v44, %v2858_v49  ;;  %v2864_v46 = vrot.slane %v5619_v20, 4 }
 0x2f1   : > { %v3681_v59 = vmul.f32 %v4492_v52, %v5570_v19  ;;  %4503 = vrcp.f32 %v3391_v55  ;;  %v3397_v29 = vadd.f32 %v3396_v0, %v3395_v40  ;;  %v3400_v25 = vrot.slane %v3399_v50, 2 }
 0x2f2   : > { %v5637_v3 = vpop.eup %4493  ;;  %4505 = vpow2.f32 %v3150_v48  ;;  %v3152_v62 = vmul.f32 1.442695, %v3051_v27  ;;  %v2860_v17 = vrot.slane %v2859_v51, 2  ;;  %v2865_v2 = vmax.f32 %v5619_v20, %v2864_v46  ;;  %v5673_v46 = vpop.xlane.xlu0 %2571 }
 0x2f3   : > { %3746 = vst.msk [vmem:[%s5328_s10 + $0xd8] sm:$0xff] %vm3718_vm1, %v3681_v59  ;;  %4507 = vrcp.f32 %v3397_v29  ;;  %v3401_v58 = vadd.f32 %v3400_v25, %v3399_v50  ;;  %v3404_v19 = vrot.slane %v5637_v3, 4  ;;  %v2870_v11 = vrot.slane %v5626_v37, 4 }
 0x2f4   : > { %4509 = vpow2.f32 %v3152_v62  ;;  %v2861_v15 = vmax.f32 %v2859_v51, %v2860_v17  ;;  %v2866_v1 = vrot.slane %v2865_v2, 2  ;;  %v2876_v5 = vrot.slane %v5635_v32, 4  ;;  %v5671_v51 = vpop.xlane.xlu1 %2568 }
 0x2f5   : > { %v5647_v6 = vpop.eup %4495  ;;  %v3402_v7 = vrot.slane %v3401_v58, 1  ;;  %v3405_v22 = vadd.f32 %v5637_v3, %v3404_v19  ;;  %v2871_v8 = vmax.f32 %v5626_v37, %v2870_v11  ;;  %v2882_v35 = vrot.slane %v5640_v4, 4 }
 0x2f6   : > { %v5652_v9 = vpop.eup %4497  ;;  %v3410_v28 = vrot.slane %v5647_v6, 4  ;;  %v2862_v12 = vrot.slane %v2861_v15, 1  ;;  %v2867_v53 = vmax.f32 %v2865_v2, %v2866_v1  ;;  %v2877_v63 = vmax.f32 %v5635_v32, %v2876_v5 }
 0x2f7   : > { %v3403_v24 = vadd.f32 %v3402_v7, %v3401_v58  ;;  %v3406_v56 = vrot.slane %v3405_v22, 2  ;;  %v3416_v14 = vrot.slane %v5652_v9, 4  ;;  %v2872_v43 = vrot.slane %v2871_v8, 2 }
 0x2f8   : > { %v3411_v18 = vadd.f32 %v5647_v6, %v3410_v28  ;;  %v2863_v21 = vmax.f32 %v2861_v15, %v2862_v12  ;;  %v2868_v57 = vrot.slane %v2867_v53, 1  ;;  %v2878_v33 = vrot.slane %v2877_v63, 2 }
 0x2f9   : > { %v4500_v26 = vpop.eup %4499  ;;  %4511 = vrcp.f32 %v3403_v24  ;;  %v3407_v38 = vadd.f32 %v3406_v56, %v3405_v22  ;;  %v3417_v60 = vadd.f32 %v5652_v9, %v3416_v14  ;;  %v2873_v30 = vmax.f32 %v2871_v8, %v2872_v43  ;;  %v5688_v24 = vpop.xlane.xlu1 %2574 }
 0x2fa   : > { %v4502_v31 = vpop.eup %4501  ;;  %v3682_v16 = vmul.f32 %v4500_v26, %v5592_v47  ;;  %v3412_v36 = vrot.slane %v3411_v18, 2  ;;  %v3052_v13 = vsub.f32 %v5609_v44, %v2863_v21  ;;  %v2869_v42 = vmax.f32 %v2867_v53, %v2868_v57 }
 0x2fb   : > { %v4504_v39 = vpop.eup %4503  ;;  %v3683_v40 = vmul.f32 %v4502_v31, %v5594_v54  ;;  %v3408_v41 = vrot.slane %v3407_v38, 1  ;;  %v3418_v23 = vrot.slane %v3417_v60, 2  ;;  %v2874_v48 = vrot.slane %v2873_v30, 1 }
 0x2fc   : > { %v5662_v45 = vpop.eup %4505  ;;  %3747 = vst.msk [vmem:[%s5328_s10 + $0xe0] sm:$0xff] %vm3718_vm1, %v3682_v16  ;;  %v3684_v49 = vmul.f32 %v4504_v39, %v5599_v61  ;;  %v3413_v55 = vadd.f32 %v3412_v36, %v3411_v18  ;;  %v3154_v47 = vmul.f32 1.442695, %v3052_v13  ;;  %v3053_v0 = vsub.f32 %v5619_v20, %v2869_v42 }
 0x2fd   : > { %v4508_v50 = vpop.eup %4507  ;;  %3748 = vst.msk [vmem:[%s5328_s10 + $0xe8] sm:$0xff] %vm3718_vm1, %v3683_v40  ;;  %v3409_v44 = vadd.f32 %v3408_v41, %v3407_v38  ;;  %v3419_v54 = vadd.f32 %v3418_v23, %v3417_v60  ;;  %v3422_v52 = vrot.slane %v5662_v45, 4  ;;  %v2875_v27 = vmax.f32 %v2873_v30, %v2874_v48 }
 0x2fe   : > { %v5675_v59 = vpop.eup %4509  ;;  %3749 = vst.msk [vmem:[%s5328_s10 + $0xf0] sm:$0xff] %vm3718_vm1, %v3684_v49  ;;  %v3685_v61 = vmul.f32 %v4508_v50, %v5605_v34  ;;  %v3414_v20 = vrot.slane %v3413_v55, 1  ;;  %4513 = vpow2.f32 %v3154_v47  ;;  %v3156_v29 = vmul.f32 1.442695, %v3053_v0 }
 0x2ff   : > { %4515 = vrcp.f32 %v3409_v44  ;;  %v3420_v25 = vrot.slane %v3419_v54, 1  ;;  %v3423_v62 = vadd.f32 %v5662_v45, %v3422_v52  ;;  %v3428_v17 = vrot.slane %v5675_v59, 4 }
 0x300   : > { %3750 = vst.msk [vmem:[%s5328_s10 + $0xf8] sm:$0xff] %vm3718_vm1, %v3685_v61  ;;  %v3415_v2 = vadd.f32 %v3414_v20, %v3413_v55  ;;  %4517 = vpow2.f32 %v3156_v29  ;;  %v3054_v58 = vsub.f32 %v5626_v37, %v2875_v27  ;;  %v2879_v19 = vmax.f32 %v2877_v63, %v2878_v33  ;;  %v5690_v37 = vpop.xlane.xlu0 %2577 }
 0x301   : > { %v3421_v11 = vadd.f32 %v3420_v25, %v3419_v54  ;;  %v3424_v15 = vrot.slane %v3423_v62, 2  ;;  %v3429_v34 = vadd.f32 %v5675_v59, %v3428_v17  ;;  %v2883_v1 = vmax.f32 %v5640_v4, %v2882_v35 }
 0x302   : > { %4519 = vrcp.f32 %v3415_v2  ;;  %v3158_v5 = vmul.f32 1.442695, %v3054_v58  ;;  %v2880_v7 = vrot.slane %v2879_v19, 1  ;;  %v2888_v22 = vrot.slane %v5671_v51, 4  ;;  %v5716_v2 = vpop.xlane.xlu1 %2580 }
 0x303   : > { %v4512_v8 = vpop.eup %4511  ;;  %4521 = vrcp.f32 %v3421_v11  ;;  %v3425_v28 = vadd.f32 %v3424_v15, %v3423_v62  ;;  %v3430_v12 = vrot.slane %v3429_v34, 2  ;;  %v2884_v53 = vrot.slane %v2883_v1, 2 }
 0x304   : > { %v3686_v63 = vmul.f32 %v4512_v8, %v5621_v10  ;;  %4523 = vpow2.f32 %v3158_v5  ;;  %v2881_v56 = vmax.f32 %v2879_v19, %v2880_v7  ;;  %v2889_v35 = vmax.f32 %v5671_v51, %v2888_v22 }
 0x305   : > { %v3426_v14 = vrot.slane %v3425_v28, 1  ;;  %v3431_v43 = vadd.f32 %v3430_v12, %v3429_v34  ;;  %v2885_v18 = vmax.f32 %v2883_v1, %v2884_v53  ;;  %v2894_v21 = vrot.slane %v5673_v46, 4 }
 0x306   : > { %3751 = vst.msk [vmem:[%s5328_s10 + $0x100] sm:$0xff] %vm3718_vm1, %v3686_v63  ;;  %v3055_v57 = vsub.f32 %v5635_v32, %v2881_v56  ;;  %v2890_v33 = vrot.slane %v2889_v35, 2  ;;  %v2900_v26 = vrot.slane %v5688_v24, 4  ;;  %v2906_v38 = vrot.slane %v5690_v37, 4 }
 0x307   : > { %v3427_v60 = vadd.f32 %v3426_v14, %v3425_v28  ;;  %v3432_v10 = vrot.slane %v3431_v43, 1  ;;  %v2886_v30 = vrot.slane %v2885_v18, 1  ;;  %v2895_v31 = vmax.f32 %v5673_v46, %v2894_v21  ;;  %v5727_v28 = vpop.xlane.xlu0 %2583 }
 0x308   : > { %v5701_v16 = vpop.eup %4513  ;;  %v3160_v36 = vmul.f32 1.442695, %v3055_v57  ;;  %v2891_v13 = vmax.f32 %v2889_v35, %v2890_v33  ;;  %v2901_v42 = vmax.f32 %v5688_v24, %v2900_v26  ;;  %v2907_v39 = vmax.f32 %v5690_v37, %v2906_v38  ;;  %v5733_v33 = vpop.xlane.xlu1 %2586 }
 0x309   : > { %v4516_v32 = vpop.eup %4515  ;;  %4525 = vrcp.f32 %v3427_v60  ;;  %v3433_v40 = vadd.f32 %v3432_v10, %v3431_v43  ;;  %v3434_v41 = vrot.slane %v5701_v16, 4  ;;  %v2887_v23 = vmax.f32 %v2885_v18, %v2886_v30 }
 0x30a   : > { %v5706_v48 = vpop.eup %4517  ;;  %v3687_v49 = vmul.f32 %v4516_v32, %v5637_v3  ;;  %4527 = vpow2.f32 %v3160_v36  ;;  %v2892_v55 = vrot.slane %v2891_v13, 1  ;;  %v2896_v47 = vrot.slane %v2895_v31, 2 }
 0x30b   : > { %4529 = vrcp.f32 %v3433_v40  ;;  %v3435_v0 = vadd.f32 %v5701_v16, %v3434_v41  ;;  %v3440_v50 = vrot.slane %v5706_v48, 4  ;;  %v3056_v44 = vsub.f32 %v5640_v4, %v2887_v23 }
 0x30c   : > { %v4520_v54 = vpop.eup %4519  ;;  %3752 = vst.msk [vmem:[%s5328_s10 + $0x108] sm:$0xff] %vm3718_vm1, %v3687_v49  ;;  %v2893_v52 = vmax.f32 %v2891_v13, %v2892_v55  ;;  %v2897_v27 = vmax.f32 %v2895_v31, %v2896_v47  ;;  %v2902_v61 = vrot.slane %v2901_v42, 2  ;;  %v2908_v20 = vrot.slane %v2907_v39, 2 }
 0x30d   : > { %v4522_v29 = vpop.eup %4521  ;;  %v3688_v3 = vmul.f32 %v4520_v54, %v5647_v6  ;;  %v3436_v25 = vrot.slane %v3435_v0, 2  ;;  %v3441_v62 = vadd.f32 %v5706_v48, %v3440_v50  ;;  %v3162_v17 = vmul.f32 1.442695, %v3056_v44  ;;  %v5754_v44 = vpop.xlane.xlu1 %2592 }
 0x30e   : > { %v5718_v58 = vpop.eup %4523  ;;  %v3689_v4 = vmul.f32 %v4522_v29, %v5652_v9  ;;  %v3057_v19 = vsub.f32 %v5671_v51, %v2893_v52  ;;  %v2898_v11 = vrot.slane %v2897_v27, 1  ;;  %v2903_v15 = vmax.f32 %v2901_v42, %v2902_v61 }
 0x30f   : > { %3753 = vst.msk [vmem:[%s5328_s10 + $0x110] sm:$0xff] %vm3718_vm1, %v3688_v3  ;;  %v3437_v34 = vadd.f32 %v3436_v25, %v3435_v0  ;;  %v3442_v1 = vrot.slane %v3441_v62, 2  ;;  %v3446_v6 = vrot.slane %v5718_v58, 4  ;;  %4531 = vpow2.f32 %v3162_v17 }
 0x310   : > { %3754 = vst.msk [vmem:[%s5328_s10 + $0x118] sm:$0xff] %vm3718_vm1, %v3689_v4  ;;  %v3164_v5 = vmul.f32 1.442695, %v3057_v19  ;;  %v2899_v7 = vmax.f32 %v2897_v27, %v2898_v11  ;;  %v2904_v22 = vrot.slane %v2903_v15, 1  ;;  %v2909_v8 = vmax.f32 %v2907_v39, %v2908_v20 }
 0x311   : > { %v3438_v9 = vrot.slane %v3437_v34, 1  ;;  %v3443_v12 = vadd.f32 %v3442_v1, %v3441_v62  ;;  %v3447_v51 = vadd.f32 %v5718_v58, %v3446_v6  ;;  %v2912_v53 = vrot.slane %v5716_v2, 4 }
 0x312   : > { %4533 = vpow2.f32 %v3164_v5  ;;  %v3058_v63 = vsub.f32 %v5673_v46, %v2899_v7  ;;  %v2905_v56 = vmax.f32 %v2903_v15, %v2904_v22  ;;  %v2910_v35 = vrot.slane %v2909_v8, 1 }
 0x313   : > { %v4526_v14 = vpop.eup %4525  ;;  %v3439_v43 = vadd.f32 %v3438_v9, %v3437_v34  ;;  %v3444_v18 = vrot.slane %v3443_v12, 1  ;;  %v3448_v21 = vrot.slane %v3447_v51, 2  ;;  %v2913_v57 = vmax.f32 %v5716_v2, %v2912_v53 }
 0x314   : > { %v5735_v26 = vpop.eup %4527  ;;  %v3690_v38 = vmul.f32 %v4526_v14, %v5662_v45  ;;  %v3166_v60 = vmul.f32 1.442695, %v3058_v63  ;;  %v3059_v10 = vsub.f32 %v5688_v24, %v2905_v56  ;;  %v2911_v30 = vmax.f32 %v2909_v8, %v2910_v35  ;;  %v5744_v45 = vpop.xlane.xlu0 %2589 }
 0x315   : > { %v4530_v46 = vpop.eup %4529  ;;  %4535 = vrcp.f32 %v3439_v43  ;;  %v3445_v31 = vadd.f32 %v3444_v18, %v3443_v12  ;;  %v3449_v36 = vadd.f32 %v3448_v21, %v3447_v51  ;;  %v3452_v13 = vrot.slane %v5735_v26, 4 }
 0x316   : > { %3755 = vst.msk [vmem:[%s5328_s10 + $0x120] sm:$0xff] %vm3718_vm1, %v3690_v38  ;;  %v3691_v42 = vmul.f32 %v4530_v46, %v5675_v59  ;;  %4537 = vpow2.f32 %v3166_v60  ;;  %v3168_v39 = vmul.f32 1.442695, %v3059_v10  ;;  %v3060_v32 = vsub.f32 %v5690_v37, %v2911_v30 }
 0x317   : > { %4539 = vrcp.f32 %v3445_v31  ;;  %v3450_v24 = vrot.slane %v3449_v36, 1  ;;  %v3453_v40 = vadd.f32 %v5735_v26, %v3452_v13  ;;  %v2914_v41 = vrot.slane %v2913_v57, 2 }
 0x318   : > { %3756 = vst.msk [vmem:[%s5328_s10 + $0x128] sm:$0xff] %vm3718_vm1, %v3691_v42  ;;  %4541 = vpow2.f32 %v3168_v39  ;;  %v3170_v23 = vmul.f32 1.442695, %v3060_v32  ;;  %v2918_v49 = vrot.slane %v5727_v28, 4  ;;  %v2924_v55 = vrot.slane %v5733_v33, 4 }
 0x319   : > { %v5751_v59 = vpop.eup %4531  ;;  %v3451_v47 = vadd.f32 %v3450_v24, %v3449_v36  ;;  %v3454_v0 = vrot.slane %v3453_v40, 2  ;;  %v2915_v37 = vmax.f32 %v2913_v57, %v2914_v41  ;;  %v2930_v50 = vrot.slane %v5744_v45, 4 }
 0x31a   : > { %v3458_v54 = vrot.slane %v5751_v59, 4  ;;  %4543 = vpow2.f32 %v3170_v23  ;;  %v2919_v52 = vmax.f32 %v5727_v28, %v2918_v49  ;;  %v2925_v27 = vmax.f32 %v5733_v33, %v2924_v55 }
 0x31b   : > { %4545 = vrcp.f32 %v3451_v47  ;;  %v3455_v61 = vadd.f32 %v3454_v0, %v3453_v40  ;;  %v2916_v20 = vrot.slane %v2915_v37, 1  ;;  %v2931_v29 = vmax.f32 %v5744_v45, %v2930_v50 }
 0x31c   : > { %v5760_v3 = vpop.eup %4533  ;;  %v3459_v25 = vadd.f32 %v5751_v59, %v3458_v54  ;;  %v2920_v62 = vrot.slane %v2919_v52, 2  ;;  %v2926_v17 = vrot.slane %v2925_v27, 2  ;;  %v2936_v4 = vrot.slane %v5754_v44, 4  ;;  %v5791_v54 = vpop.xlane.xlu1 %2598 }
 0x31d   : > { %v3456_v19 = vrot.slane %v3455_v61, 1  ;;  %v3464_v11 = vrot.slane %v5760_v3, 4  ;;  %v2917_v15 = vmax.f32 %v2915_v37, %v2916_v20  ;;  %v2932_v34 = vrot.slane %v2931_v29, 2 }
 0x31e   : > { %v3460_v1 = vrot.slane %v3459_v25, 2  ;;  %v2921_v6 = vmax.f32 %v2919_v52, %v2920_v62  ;;  %v2927_v5 = vmax.f32 %v2925_v27, %v2926_v17  ;;  %v2937_v7 = vmax.f32 %v5754_v44, %v2936_v4 }
 0x31f   : > { %v4536_v22 = vpop.eup %4535  ;;  %v3457_v8 = vadd.f32 %v3456_v19, %v3455_v61  ;;  %v3465_v9 = vadd.f32 %v5760_v3, %v3464_v11  ;;  %v3061_v12 = vsub.f32 %v5716_v2, %v2917_v15  ;;  %v2933_v51 = vmax.f32 %v2931_v29, %v2932_v34 }
 0x320   : > { %v5768_v53 = vpop.eup %4537  ;;  %v3692_v63 = vmul.f32 %v4536_v22, %v5701_v16  ;;  %v3461_v56 = vadd.f32 %v3460_v1, %v3459_v25  ;;  %v2922_v35 = vrot.slane %v2921_v6, 1  ;;  %v2928_v14 = vrot.slane %v2927_v5, 1 }
 0x321   : > { %v4540_v43 = vpop.eup %4539  ;;  %4547 = vrcp.f32 %v3457_v8  ;;  %v3466_v18 = vrot.slane %v3465_v9, 2  ;;  %v3470_v21 = vrot.slane %v5768_v53, 4  ;;  %v3172_v57 = vmul.f32 1.442695, %v3061_v12 }
 0x322   : > { %v5772_v38 = vpop.eup %4541  ;;  %3757 = vst.msk [vmem:[%s5328_s10 + $0x130] sm:$0xff] %vm3718_vm1, %v3692_v63  ;;  %v3693_v2 = vmul.f32 %v4540_v43, %v5706_v48  ;;  %v3462_v60 = vrot.slane %v3461_v56, 1  ;;  %v2923_v10 = vmax.f32 %v2921_v6, %v2922_v35  ;;  %v2929_v30 = vmax.f32 %v2927_v5, %v2928_v14  ;;  %v5785_v48 = vpop.xlane.xlu0 %2595 }
 0x323   : > { %v3467_v16 = vadd.f32 %v3466_v18, %v3465_v9  ;;  %v3471_v46 = vadd.f32 %v5768_v53, %v3470_v21  ;;  %v3476_v31 = vrot.slane %v5772_v38, 4  ;;  %4549 = vpow2.f32 %v3172_v57 }
 0x324   : > { %v5779_v36 = vpop.eup %4543  ;;  %3758 = vst.msk [vmem:[%s5328_s10 + $0x138] sm:$0xff] %vm3718_vm1, %v3693_v2  ;;  %v3463_v13 = vadd.f32 %v3462_v60, %v3461_v56  ;;  %v3062_v42 = vsub.f32 %v5727_v28, %v2923_v10  ;;  %v3063_v39 = vsub.f32 %v5733_v33, %v2929_v30  ;;  %v2934_v32 = vrot.slane %v2933_v51, 1 }
 0x325   : > { %v4546_v24 = vpop.eup %4545  ;;  %v3468_v40 = vrot.slane %v3467_v16, 1  ;;  %v3472_v41 = vrot.slane %v3471_v46, 2  ;;  %v3477_v23 = vadd.f32 %v5772_v38, %v3476_v31  ;;  %v3482_v49 = vrot.slane %v5779_v36, 4 }
 0x326   : > { %v3694_v55 = vmul.f32 %v4546_v24, %v5718_v58  ;;  %4551 = vrcp.f32 %v3463_v13  ;;  %v3174_v47 = vmul.f32 1.442695, %v3062_v42  ;;  %v3176_v0 = vmul.f32 1.442695, %v3063_v39  ;;  %v5798_v4 = vpop.xlane.xlu0 %2601 }
 0x327   : > { %v3469_v37 = vadd.f32 %v3468_v40, %v3467_v16  ;;  %v3473_v28 = vadd.f32 %v3472_v41, %v3471_v46  ;;  %v3478_v50 = vrot.slane %v3477_v23, 2  ;;  %v3483_v33 = vadd.f32 %v5779_v36, %v3482_v49 }
 0x328   : > { %3759 = vst.msk [vmem:[%s5328_s10 + $0x140] sm:$0xff] %vm3718_vm1, %v3694_v55  ;;  %4553 = vpow2.f32 %v3174_v47  ;;  %v2935_v52 = vmax.f32 %v2933_v51, %v2934_v32  ;;  %v2938_v27 = vrot.slane %v2937_v7, 2  ;;  %v2942_v61 = vrot.slane %v5785_v48, 4  ;;  %v5805_v51 = vpop.xlane.xlu1 %2604 }
 0x329   : > { %4555 = vrcp.f32 %v3469_v37  ;;  %v3474_v20 = vrot.slane %v3473_v28, 1  ;;  %v3479_v58 = vadd.f32 %v3478_v50, %v3477_v23  ;;  %v3484_v29 = vrot.slane %v3483_v33, 2 }
 0x32a   : > { %4557 = vpow2.f32 %v3176_v0  ;;  %v3064_v25 = vsub.f32 %v5744_v45, %v2935_v52  ;;  %v2939_v62 = vmax.f32 %v2937_v7, %v2938_v27  ;;  %v2943_v17 = vmax.f32 %v5785_v48, %v2942_v61  ;;  %v5814_v10 = vpop.xlane.xlu0 %2607 }
 0x32b   : > { %v4548_v19 = vpop.eup %4547  ;;  %v3475_v11 = vadd.f32 %v3474_v20, %v3473_v28  ;;  %v3480_v15 = vrot.slane %v3479_v58, 1  ;;  %v3485_v34 = vadd.f32 %v3484_v29, %v3483_v33  ;;  %v2948_v1 = vrot.slane %v5791_v54, 4 }
 0x32c   : > { %v3695_v6 = vmul.f32 %v4548_v19, %v5735_v26  ;;  %v3178_v5 = vmul.f32 1.442695, %v3064_v25  ;;  %v2940_v22 = vrot.slane %v2939_v62, 1  ;;  %v2944_v8 = vrot.slane %v2943_v17, 2 }
 0x32d   : > { %v5802_v9 = vpop.eup %4549  ;;  %4559 = vrcp.f32 %v3475_v11  ;;  %v3481_v45 = vadd.f32 %v3480_v15, %v3479_v58  ;;  %v3486_v7 = vrot.slane %v3485_v34, 1  ;;  %v2949_v12 = vmax.f32 %v5791_v54, %v2948_v1 }
 0x32e   : > { %3760 = vst.msk [vmem:[%s5328_s10 + $0x148] sm:$0xff] %vm3718_vm1, %v3695_v6  ;;  %v3488_v63 = vrot.slane %v5802_v9, 4  ;;  %4561 = vpow2.f32 %v3178_v5  ;;  %v2941_v56 = vmax.f32 %v2939_v62, %v2940_v22  ;;  %v2945_v35 = vmax.f32 %v2943_v17, %v2944_v8  ;;  %v5840_v5 = vpop.xlane.xlu1 %2610 }
 0x32f   : > { %4563 = vrcp.f32 %v3481_v45  ;;  %v3487_v26 = vadd.f32 %v3486_v7, %v3485_v34  ;;  %v2950_v14 = vrot.slane %v2949_v12, 2  ;;  %v2954_v43 = vrot.slane %v5798_v4, 4 }
 0x330   : > { %v4552_v18 = vpop.eup %4551  ;;  %v3489_v21 = vadd.f32 %v5802_v9, %v3488_v63  ;;  %v3065_v57 = vsub.f32 %v5754_v44, %v2941_v56  ;;  %v2946_v2 = vrot.slane %v2945_v35, 1  ;;  %v2960_v60 = vrot.slane %v5805_v51, 4  ;;  %v5846_v63 = vpop.xlane.xlu0 %2613 }
 0x331   : > { %v3696_v30 = vmul.f32 %v4552_v18, %v5751_v59  ;;  %4565 = vrcp.f32 %v3487_v26  ;;  %v2951_v16 = vmax.f32 %v2949_v12, %v2950_v14  ;;  %v2955_v46 = vmax.f32 %v5798_v4, %v2954_v43 }
 0x332   : > { %v5818_v31 = vpop.eup %4553  ;;  %v3490_v13 = vrot.slane %v3489_v21, 2  ;;  %v3180_v42 = vmul.f32 1.442695, %v3065_v57  ;;  %v2947_v39 = vmax.f32 %v2945_v35, %v2946_v2  ;;  %v2961_v32 = vmax.f32 %v5805_v51, %v2960_v60 }
 0x333   : > { %v4556_v44 = vpop.eup %4555  ;;  %3761 = vst.msk [vmem:[%s5328_s10 + $0x150] sm:$0xff] %vm3718_vm1, %v3696_v30  ;;  %v3494_v24 = vrot.slane %v5818_v31, 4  ;;  %v2952_v40 = vrot.slane %v2951_v16, 1  ;;  %v2956_v41 = vrot.slane %v2955_v46, 2  ;;  %v2966_v59 = vrot.slane %v5814_v10, 4 }
 0x334   : > { %v5825_v23 = vpop.eup %4557  ;;  %v3697_v49 = vmul.f32 %v4556_v44, %v5760_v3  ;;  %v3491_v55 = vadd.f32 %v3490_v13, %v3489_v21  ;;  %4567 = vpow2.f32 %v3180_v42  ;;  %v3066_v47 = vsub.f32 %v5785_v48, %v2947_v39  ;;  %v5860_v13 = vpop.xlane.xlu1 %2616 }
 0x335   : > { %v3495_v0 = vadd.f32 %v5818_v31, %v3494_v24  ;;  %v3500_v37 = vrot.slane %v5825_v23, 4  ;;  %v2953_v28 = vmax.f32 %v2951_v16, %v2952_v40  ;;  %v2957_v50 = vmax.f32 %v2955_v46, %v2956_v41  ;;  %v5865_v40 = vpop.xlane.xlu0 %2619 }
 0x336   : > { %3762 = vst.msk [vmem:[%s5328_s10 + $0x158] sm:$0xff] %vm3718_vm1, %v3697_v49  ;;  %v3492_v33 = vrot.slane %v3491_v55, 1  ;;  %v3182_v52 = vmul.f32 1.442695, %v3066_v47  ;;  %v2962_v27 = vrot.slane %v2961_v32, 2  ;;  %v2967_v61 = vmax.f32 %v5814_v10, %v2966_v59 }
 0x337   : > { %v4560_v20 = vpop.eup %4559  ;;  %v3496_v3 = vrot.slane %v3495_v0, 2  ;;  %v3501_v58 = vadd.f32 %v5825_v23, %v3500_v37  ;;  %v3067_v48 = vsub.f32 %v5791_v54, %v2953_v28  ;;  %v2958_v29 = vrot.slane %v2957_v50, 1 }
 0x338   : > { %v5836_v25 = vpop.eup %4561  ;;  %v3698_v62 = vmul.f32 %v4560_v20, %v5768_v53  ;;  %v3493_v17 = vadd.f32 %v3492_v33, %v3491_v55  ;;  %4569 = vpow2.f32 %v3182_v52  ;;  %v2963_v19 = vmax.f32 %v2961_v32, %v2962_v27 }
 0x339   : > { %v4564_v11 = vpop.eup %4563  ;;  %v3497_v15 = vadd.f32 %v3496_v3, %v3495_v0  ;;  %v3502_v34 = vrot.slane %v3501_v58, 2  ;;  %v3506_v1 = vrot.slane %v5836_v25, 4  ;;  %v3184_v6 = vmul.f32 1.442695, %v3067_v48 }
 0x33a   : > { %3763 = vst.msk [vmem:[%s5328_s10 + $0x160] sm:$0xff] %vm3718_vm1, %v3698_v62  ;;  %v3699_v54 = vmul.f32 %v4564_v11, %v5772_v38  ;;  %4571 = vrcp.f32 %v3493_v17  ;;  %v2959_v22 = vmax.f32 %v2957_v50, %v2958_v29  ;;  %v2964_v8 = vrot.slane %v2963_v19, 1 }
 0x33b   : > { %v4566_v53 = vpop.eup %4565  ;;  %v3498_v45 = vrot.slane %v3497_v15, 1  ;;  %v3503_v7 = vadd.f32 %v3502_v34, %v3501_v58  ;;  %v3507_v12 = vadd.f32 %v5836_v25, %v3506_v1  ;;  %4573 = vpow2.f32 %v3184_v6 }
 0x33c   : > { %3764 = vst.msk [vmem:[%s5328_s10 + $0x168] sm:$0xff] %vm3718_vm1, %v3699_v54  ;;  %v3700_v56 = vmul.f32 %v4566_v53, %v5779_v36  ;;  %v3068_v35 = vsub.f32 %v5798_v4, %v2959_v22  ;;  %v2965_v26 = vmax.f32 %v2963_v19, %v2964_v8  ;;  %v2968_v38 = vrot.slane %v2967_v61, 2 }
 0x33d   : > { %v3499_v14 = vadd.f32 %v3498_v45, %v3497_v15  ;;  %v3504_v43 = vrot.slane %v3503_v7, 1  ;;  %v3508_v18 = vrot.slane %v3507_v12, 2  ;;  %v2972_v21 = vrot.slane %v5840_v5, 4 }
 0x33e   : > { %v5853_v57 = vpop.eup %4567  ;;  %3765 = vst.msk [vmem:[%s5328_s10 + $0x170] sm:$0xff] %vm3718_vm1, %v3700_v56  ;;  %v3186_v2 = vmul.f32 1.442695, %v3068_v35  ;;  %v3069_v60 = vsub.f32 %v5805_v51, %v2965_v26  ;;  %v2969_v30 = vmax.f32 %v2967_v61, %v2968_v38  ;;  %v2978_v16 = vrot.slane %v5846_v63, 4 }
 0x33f   : > { %4575 = vrcp.f32 %v3499_v14  ;;  %v3505_v36 = vadd.f32 %v3504_v43, %v3503_v7  ;;  %v3509_v4 = vadd.f32 %v3508_v18, %v3507_v12  ;;  %v3512_v46 = vrot.slane %v5853_v57, 4  ;;  %v5883_v7 = vpop.xlane.xlu1 %2622 }
 0x340   : > { %4577 = vpow2.f32 %v3186_v2  ;;  %v3188_v42 = vmul.f32 1.442695, %v3069_v60  ;;  %v2970_v39 = vrot.slane %v2969_v30, 1  ;;  %v2973_v32 = vmax.f32 %v5840_v5, %v2972_v21 }
 0x341   : > { %4579 = vrcp.f32 %v3505_v36  ;;  %v3510_v44 = vrot.slane %v3509_v4, 1  ;;  %v3513_v24 = vadd.f32 %v5853_v57, %v3512_v46  ;;  %v2979_v51 = vmax.f32 %v5846_v63, %v2978_v16 }
 0x342   : > { %v5867_v41 = vpop.eup %4569  ;;  %4581 = vpow2.f32 %v3188_v42  ;;  %v2971_v59 = vmax.f32 %v2969_v30, %v2970_v39  ;;  %v2974_v49 = vrot.slane %v2973_v32, 2  ;;  %v2984_v55 = vrot.slane %v5860_v13, 4 }
 0x343   : > { %v3511_v47 = vadd.f32 %v3510_v44, %v3509_v4  ;;  %v3514_v0 = vrot.slane %v3513_v24, 2  ;;  %v3518_v37 = vrot.slane %v5867_v41, 4  ;;  %v2980_v28 = vrot.slane %v2979_v51, 2 }
 0x344   : > { %v4572_v50 = vpop.eup %4571  ;;  %v3070_v33 = vsub.f32 %v5814_v10, %v2971_v59  ;;  %v2975_v52 = vmax.f32 %v2973_v32, %v2974_v49  ;;  %v2985_v27 = vmax.f32 %v5860_v13, %v2984_v55  ;;  %v2990_v61 = vrot.slane %v5865_v40, 4  ;;  %v5904_v59 = vpop.xlane.xlu1 %2628 }
 0x345   : > { %v5874_v20 = vpop.eup %4573  ;;  %v3701_v3 = vmul.f32 %v4572_v50, %v5802_v9  ;;  %4583 = vrcp.f32 %v3511_v47  ;;  %v3515_v58 = vadd.f32 %v3514_v0, %v3513_v24  ;;  %v3519_v48 = vadd.f32 %v5867_v41, %v3518_v37 }
 0x346   : > { %v3524_v29 = vrot.slane %v5874_v20, 4  ;;  %v3190_v62 = vmul.f32 1.442695, %v3070_v33  ;;  %v2976_v17 = vrot.slane %v2975_v52, 1  ;;  %v2981_v19 = vmax.f32 %v2979_v51, %v2980_v28  ;;  %v5902_v51 = vpop.xlane.xlu0 %2625 }
 0x347   : > { %3766 = vst.msk [vmem:[%s5328_s10 + $0x178] sm:$0xff] %vm3718_vm1, %v3701_v3  ;;  %v3516_v10 = vrot.slane %v3515_v58, 1  ;;  %v3520_v11 = vrot.slane %v3519_v48, 2  ;;  %v2986_v15 = vrot.slane %v2985_v27, 2  ;;  %v2991_v34 = vmax.f32 %v5865_v40, %v2990_v61 }
 0x348   : > { %v3525_v1 = vadd.f32 %v5874_v20, %v3524_v29  ;;  %4585 = vpow2.f32 %v3190_v62  ;;  %v2977_v9 = vmax.f32 %v2975_v52, %v2976_v17  ;;  %v2982_v6 = vrot.slane %v2981_v19, 1 }
 0x349   : > { %v4576_v54 = vpop.eup %4575  ;;  %v3517_v22 = vadd.f32 %v3516_v10, %v3515_v58  ;;  %v3521_v8 = vadd.f32 %v3520_v11, %v3519_v48  ;;  %v2987_v53 = vmax.f32 %v2985_v27, %v2986_v15  ;;  %v2992_v45 = vrot.slane %v2991_v34, 2 }
 0x34a   : > { %v5885_v12 = vpop.eup %4577  ;;  %v3702_v56 = vmul.f32 %v4576_v54, %v5818_v31  ;;  %v3526_v35 = vrot.slane %v3525_v1, 2  ;;  %v3071_v26 = vsub.f32 %v5840_v5, %v2977_v9  ;;  %v2983_v38 = vmax.f32 %v2981_v19, %v2982_v6 }
 0x34b   : > { %v4580_v14 = vpop.eup %4579  ;;  %4587 = vrcp.f32 %v3517_v22  ;;  %v3522_v43 = vrot.slane %v3521_v8, 1  ;;  %v3530_v18 = vrot.slane %v5885_v12, 4  ;;  %v2988_v21 = vrot.slane %v2987_v53, 1 }
 0x34c   : > { %v5890_v2 = vpop.eup %4581  ;;  %3767 = vst.msk [vmem:[%s5328_s10 + $0x180] sm:$0xff] %vm3718_vm1, %v3702_v56  ;;  %v3703_v60 = vmul.f32 %v4580_v14, %v5825_v23  ;;  %v3527_v30 = vadd.f32 %v3526_v35, %v3525_v1  ;;  %v3192_v16 = vmul.f32 1.442695, %v3071_v26  ;;  %v3072_v31 = vsub.f32 %v5846_v63, %v2983_v38 }
 0x34d   : > { %v3523_v36 = vadd.f32 %v3522_v43, %v3521_v8  ;;  %v3531_v5 = vadd.f32 %v5885_v12, %v3530_v18  ;;  %v3536_v4 = vrot.slane %v5890_v2, 4  ;;  %v2989_v46 = vmax.f32 %v2987_v53, %v2988_v21 }
 0x34e   : > { %3768 = vst.msk [vmem:[%s5328_s10 + $0x188] sm:$0xff] %vm3718_vm1, %v3703_v60  ;;  %v3528_v42 = vrot.slane %v3527_v30, 1  ;;  %4589 = vpow2.f32 %v3192_v16  ;;  %v3194_v39 = vmul.f32 1.442695, %v3072_v31  ;;  %v2993_v32 = vmax.f32 %v2991_v34, %v2992_v45 }
 0x34f   : > { %v4584_v44 = vpop.eup %4583  ;;  %4591 = vrcp.f32 %v3523_v36  ;;  %v3532_v23 = vrot.slane %v3531_v5, 2  ;;  %v3537_v24 = vadd.f32 %v5890_v2, %v3536_v4  ;;  %v3073_v63 = vsub.f32 %v5860_v13, %v2989_v46 }
 0x350   : > { %v3704_v49 = vmul.f32 %v4584_v44, %v5836_v25  ;;  %v3529_v55 = vadd.f32 %v3528_v42, %v3527_v30  ;;  %4593 = vpow2.f32 %v3194_v39  ;;  %v2994_v47 = vrot.slane %v2993_v32, 1 }
 0x351   : > { %v3533_v0 = vadd.f32 %v3532_v23, %v3531_v5  ;;  %v3538_v37 = vrot.slane %v3537_v24, 2  ;;  %v3196_v28 = vmul.f32 1.442695, %v3073_v63  ;;  %v2996_v50 = vrot.slane %v5883_v7, 4 }
 0x352   : > { %v5908_v33 = vpop.eup %4585  ;;  %3769 = vst.msk [vmem:[%s5328_s10 + $0x190] sm:$0xff] %vm3718_vm1, %v3704_v49  ;;  %4595 = vrcp.f32 %v3529_v55  ;;  %v2995_v13 = vmax.f32 %v2993_v32, %v2994_v47  ;;  %v3002_v52 = vrot.slane %v5902_v51, 4  ;;  %v3008_v27 = vrot.slane %v5904_v59, 4 }
 0x353   : > { %v3534_v61 = vrot.slane %v3533_v0, 1  ;;  %v3539_v25 = vadd.f32 %v3538_v37, %v3537_v24  ;;  %v3542_v3 = vrot.slane %v5908_v33, 4  ;;  %4597 = vpow2.f32 %v3196_v28 }
 0x354   : > { %v3074_v58 = vsub.f32 %v5865_v40, %v2995_v13  ;;  %v2997_v48 = vmax.f32 %v5883_v7, %v2996_v50  ;;  %v3003_v29 = vmax.f32 %v5902_v51, %v3002_v52  ;;  %v3009_v62 = vmax.f32 %v5904_v59, %v3008_v27 }
 0x355   : > { %v4588_v17 = vpop.eup %4587  ;;  %v3535_v19 = vadd.f32 %v3534_v61, %v3533_v0  ;;  %v3540_v10 = vrot.slane %v3539_v25, 1  ;;  %v3543_v11 = vadd.f32 %v5908_v33, %v3542_v3 }
 0x356   : > { %v3705_v15 = vmul.f32 %v4588_v17, %v5853_v57  ;;  %v3198_v34 = vmul.f32 1.442695, %v3074_v58  ;;  %v2998_v1 = vrot.slane %v2997_v48, 2  ;;  %v3004_v9 = vrot.slane %v3003_v29, 2 }
 0x357   : > { %4599 = vrcp.f32 %v3535_v19  ;;  %v3541_v6 = vadd.f32 %v3540_v10, %v3539_v25  ;;  %v3544_v40 = vrot.slane %v3543_v11, 2  ;;  %v3010_v54 = vrot.slane %v3009_v62, 2 }
 0x358   : > { %v5921_v22 = vpop.eup %4589  ;;  %3770 = vst.msk [vmem:[%s5328_s10 + $0x198] sm:$0xff] %vm3718_vm1, %v3705_v15  ;;  %4601 = vpow2.f32 %v3198_v34  ;;  %v2999_v8 = vmax.f32 %v2997_v48, %v2998_v1  ;;  %v3005_v53 = vmax.f32 %v3003_v29, %v3004_v9 }
 0x359   : > { %v4592_v45 = vpop.eup %4591  ;;  %4603 = vrcp.f32 %v3541_v6  ;;  %v3545_v56 = vadd.f32 %v3544_v40, %v3543_v11  ;;  %v3548_v57 = vrot.slane %v5921_v22, 4  ;;  %v3011_v35 = vmax.f32 %v3009_v62, %v3010_v54 }
 0x35a   : > { %v5926_v26 = vpop.eup %4593  ;;  %v3706_v38 = vmul.f32 %v4592_v45, %v5867_v41  ;;  %v3000_v14 = vrot.slane %v2999_v8, 1  ;;  %v3006_v43 = vrot.slane %v3005_v53, 1 }
 0x35b   : > { %v3546_v18 = vrot.slane %v3545_v56, 1  ;;  %v3549_v21 = vadd.f32 %v5921_v22, %v3548_v57  ;;  %v3554_v60 = vrot.slane %v5926_v26, 4  ;;  %v3012_v30 = vrot.slane %v3011_v35, 1 }
 0x35c   : > { %v4596_v16 = vpop.eup %4595  ;;  %3771 = vst.msk [vmem:[%s5328_s10 + $0x1a0] sm:$0xff] %vm3718_vm1, %v3706_v38  ;;  %v3001_v31 = vmax.f32 %v2999_v8, %v3000_v14  ;;  %v3007_v36 = vmax.f32 %v3005_v53, %v3006_v43 }
 0x35d   : > { %v5933_v5 = vpop.eup %4597  ;;  %v3707_v4 = vmul.f32 %v4596_v16, %v5874_v20  ;;  %v3547_v46 = vadd.f32 %v3546_v18, %v3545_v56  ;;  %v3550_v41 = vrot.slane %v3549_v21, 2  ;;  %v3555_v42 = vadd.f32 %v5926_v26, %v3554_v60 }
 0x35e   : > { %v3560_v39 = vrot.slane %v5933_v5, 4  ;;  %v3075_v32 = vsub.f32 %v5883_v7, %v3001_v31  ;;  %v3076_v44 = vsub.f32 %v5902_v51, %v3007_v36  ;;  %v3013_v23 = vmax.f32 %v3011_v35, %v3012_v30 }
 0x35f   : > { %3772 = vst.msk [vmem:[%s5328_s10 + $0x1a8] sm:$0xff] %vm3718_vm1, %v3707_v4  ;;  %4605 = vrcp.f32 %v3547_v46  ;;  %v3551_v24 = vadd.f32 %v3550_v41, %v3549_v21  ;;  %v3556_v63 = vrot.slane %v3555_v42, 2 }
 0x360   : > { %v3561_v49 = vadd.f32 %v5933_v5, %v3560_v39  ;;  %v3200_v55 = vmul.f32 1.442695, %v3075_v32  ;;  %v3202_v20 = vmul.f32 1.442695, %v3076_v44  ;;  %v3077_v47 = vsub.f32 %v5904_v59, %v3013_v23 }
 0x361   : > { %v4600_v0 = vpop.eup %4599  ;;  %v3552_v37 = vrot.slane %v3551_v24, 1  ;;  %v3557_v28 = vadd.f32 %v3556_v63, %v3555_v42 }
 0x362   : > { %v4602_v50 = vpop.eup %4601  ;;  %v3708_v7 = vmul.f32 %v4600_v0, %v5885_v12  ;;  %v3562_v51 = vrot.slane %v3561_v49, 2  ;;  %4607 = vpow2.f32 %v3200_v55  ;;  %v3204_v13 = vmul.f32 1.442695, %v3077_v47 }
 0x363   : > { %v4604_v52 = vpop.eup %4603  ;;  %v3553_v27 = vadd.f32 %v3552_v37, %v3551_v24  ;;  %v3558_v61 = vrot.slane %v3557_v28, 1  ;;  %v3566_v25 = vrot.slane %v4602_v50, 4  ;;  %4609 = vpow2.f32 %v3202_v20 }
 0x364   : > { %3773 = vst.msk [vmem:[%s5328_s10 + $0x1b0] sm:$0xff] %vm3718_vm1, %v3708_v7  ;;  %v3709_v3 = vmul.f32 %v4604_v52, %v5890_v2  ;;  %v3563_v59 = vadd.f32 %v3562_v51, %v3561_v49  ;;  %4611 = vpow2.f32 %v3204_v13 }
 0x365   : > { %4613 = vrcp.f32 %v3553_v27  ;;  %v3559_v58 = vadd.f32 %v3558_v61, %v3557_v28  ;;  %v3567_v48 = vadd.f32 %v4602_v50, %v3566_v25 }
 0x366   : > { %3774 = vst.msk [vmem:[%s5328_s10 + $0x1b8] sm:$0xff] %vm3718_vm1, %v3709_v3  ;;  %v3564_v12 = vrot.slane %v3563_v59, 1 }
 0x367   : > { %4615 = vrcp.f32 %v3559_v58  ;;  %v3568_v29 = vrot.slane %v3567_v48, 2 }
 0x368   : > { %v3565_v62 = vadd.f32 %v3564_v12, %v3563_v59 }
 0x369   : > { %v4606_v17 = vpop.eup %4605  ;;  %v3569_v19 = vadd.f32 %v3568_v29, %v3567_v48 }
 0x36a   : > { %v3710_v10 = vmul.f32 %v4606_v17, %v5908_v33  ;;  %4617 = vrcp.f32 %v3565_v62 }
 0x36b   : > { %v3570_v11 = vrot.slane %v3569_v19, 1 }
 0x36c   : > { %v4608_v15 = vpop.eup %4607  ;;  %3775 = vst.msk [vmem:[%s5328_s10 + $0x1c0] sm:$0xff] %vm3718_vm1, %v3710_v10 }
 0x36d   : > { %v4610_v2 = vpop.eup %4609  ;;  %v3571_v34 = vadd.f32 %v3570_v11, %v3569_v19  ;;  %v3572_v1 = vrot.slane %v4608_v15, 4 }
 0x36e   : > { %v4612_v9 = vpop.eup %4611  ;;  %v3578_v6 = vrot.slane %v4610_v2, 4 }
 0x36f   : > { %v4614_v40 = vpop.eup %4613  ;;  %4619 = vrcp.f32 %v3571_v34  ;;  %v3573_v54 = vadd.f32 %v4608_v15, %v3572_v1  ;;  %v3584_v8 = vrot.slane %v4612_v9, 4 }
 0x370   : > { %v3711_v53 = vmul.f32 %v4614_v40, %v5921_v22  ;;  %v3579_v45 = vadd.f32 %v4610_v2, %v3578_v6 }
 0x371   : > { %v4616_v33 = vpop.eup %4615  ;;  %v3574_v56 = vrot.slane %v3573_v54, 2  ;;  %v3585_v57 = vadd.f32 %v4612_v9, %v3584_v8 }
 0x372   : > { %3776 = vst.msk [vmem:[%s5328_s10 + $0x1c8] sm:$0xff] %vm3718_vm1, %v3711_v53  ;;  %v3712_v35 = vmul.f32 %v4616_v33, %v5926_v26  ;;  %v3580_v38 = vrot.slane %v3579_v45, 2 }
 0x373   : > { %v3575_v14 = vadd.f32 %v3574_v56, %v3573_v54  ;;  %v3586_v43 = vrot.slane %v3585_v57, 2 }
 0x374   : > { %v4618_v18 = vpop.eup %4617  ;;  %3777 = vst.msk [vmem:[%s5328_s10 + $0x1d0] sm:$0xff] %vm3718_vm1, %v3712_v35  ;;  %v3581_v21 = vadd.f32 %v3580_v38, %v3579_v45 }
 0x375   : > { %v3713_v60 = vmul.f32 %v4618_v18, %v5933_v5  ;;  %v3576_v22 = vrot.slane %v3575_v14, 1  ;;  %v3587_v30 = vadd.f32 %v3586_v43, %v3585_v57 }
 0x376   : > { %v3582_v16 = vrot.slane %v3581_v21, 1 }
 0x377   : > { %3778 = vst.msk [vmem:[%s5328_s10 + $0x1d8] sm:$0xff] %vm3718_vm1, %v3713_v60  ;;  %v3577_v31 = vadd.f32 %v3576_v22, %v3575_v14  ;;  %v3588_v36 = vrot.slane %v3587_v30, 1 }
 0x378   : > { %v3583_v26 = vadd.f32 %v3582_v16, %v3581_v21 }
 0x379   : > { %v4620_v4 = vpop.eup %4619  ;;  %4621 = vrcp.f32 %v3577_v31  ;;  %v3589_v46 = vadd.f32 %v3588_v36, %v3587_v30 }
 0x37a   : > { %v3714_v41 = vmul.f32 %v4620_v4, %v4602_v50  ;;  %4623 = vrcp.f32 %v3583_v26 }
 0x37b   : > { %4625 = vrcp.f32 %v3589_v46 }
 0x37c   : > { %3779 = vst.msk [vmem:[%s5328_s10 + $0x1e0] sm:$0xff] %vm3718_vm1, %v3714_v41 }
 0x383   : > { %v4622_v5 = vpop.eup %4621 }
 0x384   : > { %v4624_v42 = vpop.eup %4623  ;;  %v3715_v39 = vmul.f32 %v4622_v5, %v4608_v15 }
 0x385   : > { %v4626_v32 = vpop.eup %4625  ;;  %v3716_v44 = vmul.f32 %v4624_v42, %v4610_v2 }
 0x386   : > { %3780 = vst.msk [vmem:[%s5328_s10 + $0x1e8] sm:$0xff] %vm3718_vm1, %v3715_v39  ;;  %v3717_v23 = vmul.f32 %v4626_v32, %v4612_v9 }
 0x387   : > { %3781 = vst.msk [vmem:[%s5328_s10 + $0x1f0] sm:$0xff] %vm3718_vm1, %v3716_v44 }
 0x388   : > { %3782 = vst.msk [vmem:[%s5328_s10 + $0x1f8] sm:$0xff] %vm3718_vm1, %v3717_v23 }
 0x389 PF: > { %s16_s21 = sadd.s32 1, %s4633_s21  }
 0x38a   : > { %p13_p5 = scmp.ge.s32.totalorder %s16_s21, 6  }
 0x38c   :  { %15 = sbr.rel (!%p13_p5) target bundleno = 1 (0x1), region = 77 }

</bundles_post_ra>
